<compile_context>
chip_gen: v7x
topology: tpu7x:2x2x1
jax: 0.10.0
libtpu: 0.0.40
codegen_flags: <defaults>
</compile_context>

<pallas_src>
import jax
import jax.numpy as jnp
from jax import lax
from jax.experimental import pallas as pl
from jax.experimental.pallas import tpu as pltpu

LANE = 128


def _round_up(x, m):
    return (x + m - 1) // m * m


def _pick_tb(B, cap=64):
    """Images per grid step.  Multiple of 16 so every in-kernel row slice is
    aligned to the bf16 sublane tile; aims for >=2 grid steps (v7x megacore)
    once the batch is big enough."""
    tb = _round_up(max(1, -(-B // 2)), 16)
    return int(max(16, min(cap, tb)))


# ---------------------------------------------------------------------------
# The fused whole-network kernel.
# x_ref : (32*TB, 128) bf16   input rows interleaved as row = r*TB + t
#                             (r = image row 0..31, t = image in tile),
#                             lanes = w*3 + c (96 used, zero padded to 128).
# wb1   : (5, 128, 256) bf16  conv1 banded weights (one slab per kernel row).
# wb2   : (5, 128, 256) bf16  conv2 banded weights.
# wf1   : (5, 128, 128) bf16  fc1, NCHW flatten baked in (one slab per pooled row).
# wf2/3 : (128, 128)    bf16  fc2 / fc3 (transposed, zero padded).
# o_ref : (TB, 128)     f32   logits (10 used lanes).
# ---------------------------------------------------------------------------
def _net_kernel(x_ref, wb1_ref, bb1_ref, wb2_ref, bb2_ref, wf1_ref, bf1_ref,
                wf2_ref, bf2_ref, wf3_ref, bf3_ref, o_ref):
    TB = o_ref.shape[0]            # images per grid step (multiple of 16)
    f32 = jnp.float32
    bf16 = jnp.bfloat16

    # ---- conv1 (5x5, 3->6): 5 banded GEMMs over row taps, + bias + ReLU ------
    h = jnp.dot(x_ref[0:28 * TB, :], wb1_ref[0], preferred_element_type=f32)
    for ky in range(1, 5):
        h += jnp.dot(x_ref[ky * TB:(ky + 28) * TB, :], wb1_ref[ky],
                     preferred_element_type=f32)
    h = jnp.maximum(h + bb1_ref[...], 0.0).astype(bf16)        # (28*TB, 256)
    # 2x2/stride-2 max pool: lane halves = the two x-parities, row pairs = y's.
    g = jnp.maximum(h[:, :128], h[:, 128:]).reshape(14, 2 * TB, 128)
    p1 = jnp.maximum(g[:, :TB, :], g[:, TB:, :]).reshape(14 * TB, 128)
    # p1: rows = (py, t), lanes = px*6 + c   (84 used of 128), bf16.

    # ---- conv2 (5x5, 6->16): same structure ----------------------------------
    h = jnp.dot(p1[0:10 * TB, :], wb2_ref[0], preferred_element_type=f32)
    for ky in range(1, 5):
        h += jnp.dot(p1[ky * TB:(ky + 10) * TB, :], wb2_ref[ky],
                     preferred_element_type=f32)
    h = jnp.maximum(h + bb2_ref[...], 0.0).astype(bf16)        # (10*TB, 256)
    g = jnp.maximum(h[:, :128], h[:, 128:]).reshape(5, 2 * TB, 128)
    p2 = jnp.maximum(g[:, :TB, :], g[:, TB:, :]).reshape(5 * TB, 128)
    # p2: rows = (py2, t), lanes = px2*16 + c2  (80 used of 128), bf16.

    # ---- fc1 (NCHW flatten baked into 5 per-row weight slabs) + ReLU ---------
    a = jnp.dot(p2[0:TB, :], wf1_ref[0], preferred_element_type=f32)
    for py in range(1, 5):
        a += jnp.dot(p2[py * TB:(py + 1) * TB, :], wf1_ref[py],
                     preferred_element_type=f32)
    a = jnp.maximum(a + bf1_ref[...], 0.0).astype(bf16)

    # ---- fc2 + ReLU, fc3 ------------------------------------------------------
    a = jnp.dot(a, wf2_ref[...], preferred_element_type=f32)
    a = jnp.maximum(a + bf2_ref[...], 0.0).astype(bf16)
    a = jnp.dot(a, wf3_ref[...], preferred_element_type=f32)
    o_ref[...] = a + bf3_ref[...]


# ---------------------------------------------------------------------------
# Wrapper: input layout prep (cheap, one pass over the B*12KB input) + the call.
# ---------------------------------------------------------------------------
def _prep_input(x_nchw, TB):
    B, C, H, W = x_nchw.shape
    assert (C, H, W) == (3, 32, 32), "Net expects (B, 3, 32, 32) inputs"
    nb = -(-B // TB)
    Bpad = nb * TB
    x = jnp.transpose(x_nchw, (0, 2, 3, 1)).reshape(B, H, W * C)   # lane = w*3+c
    x = jnp.pad(x, ((0, Bpad - B), (0, 0), (0, LANE - W * C)))
    x = x.astype(jnp.bfloat16)
    # Interleave (row, image-in-tile) so every slab the kernel needs is a
    # contiguous, 16-row-aligned slice:  row = r*TB + t.
    x = x.reshape(nb, TB, H, LANE).transpose(0, 2, 1, 3)
    return x.reshape(nb * H * TB, LANE), nb, Bpad


def net_forward(prep, x_nchw, *, tb_cap=64):
    B = x_nchw.shape[0]
    TB = _pick_tb(B, tb_cap)
    x, nb, Bpad = _prep_input(x_nchw, TB)

    out = pl.pallas_call(
        _net_kernel,
        out_shape=jax.ShapeDtypeStruct((Bpad, LANE), jnp.float32),
        grid=(nb,),
        in_specs=[
            pl.BlockSpec((32 * TB, LANE), lambda i: (i, 0)),     # input batch tile
            pl.BlockSpec((5, 128, 256), lambda i: (0, 0, 0)),    # conv1 banded W
            pl.BlockSpec((1, 256), lambda i: (0, 0)),            # conv1 bias
            pl.BlockSpec((5, 128, 256), lambda i: (0, 0, 0)),    # conv2 banded W
            pl.BlockSpec((1, 256), lambda i: (0, 0)),            # conv2 bias
            pl.BlockSpec((5, 128, 128), lambda i: (0, 0, 0)),    # fc1 (flatten baked)
            pl.BlockSpec((1, 128), lambda i: (0, 0)),            # fc1 bias
            pl.BlockSpec((128, 128), lambda i: (0, 0)),          # fc2
            pl.BlockSpec((1, 128), lambda i: (0, 0)),            # fc2 bias
            pl.BlockSpec((128, 128), lambda i: (0, 0)),          # fc3
            pl.BlockSpec((1, 128), lambda i: (0, 0)),            # fc3 bias
        ],
        out_specs=pl.BlockSpec((TB, LANE), lambda i: (i, 0)),
        compiler_params=pltpu.CompilerParams(
            dimension_semantics=("parallel",),
            vmem_limit_bytes=32 * 1024 * 1024),
    )(x, prep["wb1"], prep["bb1"], prep["wb2"], prep["bb2"],
      prep["wf1"], prep["bf1"], prep["wf2"], prep["bf2"],
      prep["wf3"], prep["bf3"])
    return out[:B, :10]


# ---------------------------------------------------------------------------
# Parameters: PyTorch-layout init + one-time banded/padded/bf16 layout prep.
# ---------------------------------------------------------------------------
def init_params(key):
    def uniform(key, shape, fan_in):
        bound = 1.0 / jnp.sqrt(jnp.float32(fan_in))
        return jax.random.uniform(key, shape, jnp.float32, -bound, bound)

    keys = jax.random.split(key, 10)
    return {
        "conv1_w": uniform(keys[0], (6, 3, 5, 5), 3 * 5 * 5),
        "conv1_b": uniform(keys[1], (6,), 3 * 5 * 5),
        "conv2_w": uniform(keys[2], (16, 6, 5, 5), 6 * 5 * 5),
        "conv2_b": uniform(keys[3], (16,), 6 * 5 * 5),
        "fc1_w": uniform(keys[4], (120, 16 * 5 * 5), 16 * 5 * 5),
        "fc1_b": uniform(keys[5], (120,), 16 * 5 * 5),
        "fc2_w": uniform(keys[6], (84, 120), 120),
        "fc2_b": uniform(keys[7], (84,), 120),
        "fc3_w": uniform(keys[8], (10, 84), 84),
        "fc3_b": uniform(keys[9], (10,), 84),
    }


def prepare_params(params):
    """One-time prep: PyTorch layouts -> banded / padded bf16 kernel matrices.

    Conv weights become banded matrices W[ky] of shape (128, 256): row j is the
    input lane index (column*Cin + ci), output lane dx*128 + px*Cout + co holds
    conv output column ox = 2*px + dx, so the pool over x is a max of the two
    128-lane halves.  fc1 is stored as 5 slabs (one per pooled row) with the
    PyTorch NCHW flatten order baked in."""
    f32, bf16 = jnp.float32, jnp.bfloat16

    def conv_banded(w, cin, cout, pout):
        ky, kx, ci, dx, px, co = jnp.meshgrid(
            jnp.arange(5), jnp.arange(5), jnp.arange(cin),
            jnp.arange(2), jnp.arange(pout), jnp.arange(cout), indexing="ij")
        row = (2 * px + dx + kx) * cin + ci          # input lane index
        lane = dx * 128 + px * cout + co             # output lane index
        vals = w.astype(f32)[co, ci, ky, kx]
        return jnp.zeros((5, 128, 256), f32).at[ky, row, lane].set(vals).astype(bf16)

    def conv_bias_banded(b, cout, pout):
        dx, px, co = jnp.meshgrid(jnp.arange(2), jnp.arange(pout),
                                  jnp.arange(cout), indexing="ij")
        lane = dx * 128 + px * cout + co
        return jnp.zeros((1, 256), f32).at[0, lane].set(b.astype(f32)[co])

    # fc1: bake the NCHW flatten (feature = c*25 + py*5 + px) into 5 row slabs.
    py, px, c, n = jnp.meshgrid(jnp.arange(5), jnp.arange(5), jnp.arange(16),
                                jnp.arange(120), indexing="ij")
    wf1 = jnp.zeros((5, 128, 128), f32).at[py, px * 16 + c, n].set(
        params["fc1_w"].astype(f32)[n, c * 25 + py * 5 + px]).astype(bf16)

    def fc_pad(w_oi):
        o, i = w_oi.shape
        return jnp.zeros((128, 128), f32).at[:i, :o].set(
            w_oi.T.astype(f32)).astype(bf16)

    def bias_pad(b, width=128):
        return jnp.zeros((1, width), f32).at[0, :b.shape[0]].set(b.astype(f32))

    return {
        "wb1": conv_banded(params["conv1_w"], 3, 6, 14),
        "bb1": conv_bias_banded(params["conv1_b"], 6, 14),
        "wb2": conv_banded(params["conv2_w"], 6, 16, 5),
        "bb2": conv_bias_banded(params["conv2_b"], 16, 5),
        "wf1": wf1, "bf1": bias_pad(params["fc1_b"]),
        "wf2": fc_pad(params["fc2_w"]), "bf2": bias_pad(params["fc2_b"]),
        "wf3": fc_pad(params["fc3_w"]), "bf3": bias_pad(params["fc3_b"]),
    }


# ---------------------------------------------------------------------------
# Pure-JAX f32 reference (matches Net.forward) for the correctness check.
# ---------------------------------------------------------------------------
def net_reference(params, x):
    hp = lax.Precision.HIGHEST

    def conv(x, w, b):
        y = lax.conv_general_dilated(
            x, w, window_strides=(1, 1), padding="VALID",
            dimension_numbers=("NCHW", "OIHW", "NCHW"), precision=hp)
        return jnp.maximum(y + b[None, :, None, None], 0.0)

    def pool(y):
        B, C, H, W = y.shape
        return y.reshape(B, C, H // 2, 2, W // 2, 2).max(axis=(3, 5))

    y = pool(conv(x, params["conv1_w"], params["conv1_b"]))
    y = pool(conv(y, params["conv2_w"], params["conv2_b"]))
    y = y.reshape(y.shape[0], 16 * 5 * 5)
    y = jnp.maximum(jnp.dot(y, params["fc1_w"].T, precision=hp) + params["fc1_b"], 0.0)
    y = jnp.maximum(jnp.dot(y, params["fc2_w"].T, precision=hp) + params["fc2_b"], 0.0)
    return jnp.dot(y, params["fc3_w"].T, precision=hp) + params["fc3_b"]


if __name__ == "__main__":
    key = jax.random.PRNGKey(0)
    k_params, k_x = jax.random.split(key)
    params = init_params(k_params)
    prep = jax.block_until_ready(prepare_params(params))   # one-time layout prep
    # Spatial size must be 32x32 for the 16*5*5 flatten to be consistent.
    x = jax.random.normal(k_x, (2, 3, 32, 32), dtype=jnp.float32)

    fwd = jax.jit(net_forward)
    out = jax.block_until_ready(fwd(prep, x))
    assert out.shape == (2, 10) and out.dtype == jnp.float32

    ref = net_reference(params, x)
    err = float(jnp.max(jnp.abs(out - ref)))
    assert err < 3e-2, f"kernel/reference mismatch: max |err| = {err}"
    print("KERNEL_OK")
</pallas_src>

<mosaic_0001>
module attributes {stable_mosaic.version = 11 : i64} {
  func.func @_net_kernel(%arg0: i32, %arg1: memref<512x128xbf16, #tpu.memory_space<vmem>>, %arg2: memref<5x128x256xbf16, #tpu.memory_space<vmem>>, %arg3: memref<1x256xf32, #tpu.memory_space<vmem>>, %arg4: memref<5x128x256xbf16, #tpu.memory_space<vmem>>, %arg5: memref<1x256xf32, #tpu.memory_space<vmem>>, %arg6: memref<5x128x128xbf16, #tpu.memory_space<vmem>>, %arg7: memref<1x128xf32, #tpu.memory_space<vmem>>, %arg8: memref<128x128xbf16, #tpu.memory_space<vmem>>, %arg9: memref<1x128xf32, #tpu.memory_space<vmem>>, %arg10: memref<128x128xbf16, #tpu.memory_space<vmem>>, %arg11: memref<1x128xf32, #tpu.memory_space<vmem>>, %arg12: memref<16x128xf32, #tpu.memory_space<vmem>>) attributes {dimension_semantics = [#tpu.dimension_semantics<parallel>], iteration_bounds = array<i64: 1>, scalar_prefetch = 0 : i64, scratch_operands = 0 : i64, tpu.core_type = #tpu.core_type<tc>, window_params = [{transform_indices = @transform_0, window_bounds = array<i64: 512, 128>}, {pipeline_mode = #tpu.pipeline_mode<synchronous>, transform_indices = @transform_1, window_bounds = array<i64: 5, 128, 256>}, {pipeline_mode = #tpu.pipeline_mode<synchronous>, transform_indices = @transform_2, window_bounds = array<i64: 1, 256>}, {pipeline_mode = #tpu.pipeline_mode<synchronous>, transform_indices = @transform_3, window_bounds = array<i64: 5, 128, 256>}, {pipeline_mode = #tpu.pipeline_mode<synchronous>, transform_indices = @transform_4, window_bounds = array<i64: 1, 256>}, {pipeline_mode = #tpu.pipeline_mode<synchronous>, transform_indices = @transform_5, window_bounds = array<i64: 5, 128, 128>}, {pipeline_mode = #tpu.pipeline_mode<synchronous>, transform_indices = @transform_6, window_bounds = array<i64: 1, 128>}, {pipeline_mode = #tpu.pipeline_mode<synchronous>, transform_indices = @transform_7, window_bounds = array<i64: 128, 128>}, {pipeline_mode = #tpu.pipeline_mode<synchronous>, transform_indices = @transform_8, window_bounds = array<i64: 1, 128>}, {pipeline_mode = #tpu.pipeline_mode<synchronous>, transform_indices = @transform_9, window_bounds = array<i64: 128, 128>}, {pipeline_mode = #tpu.pipeline_mode<synchronous>, transform_indices = @transform_10, window_bounds = array<i64: 1, 128>}, {transform_indices = @transform_11, window_bounds = array<i64: 16, 128>}]} {
    %c0 = arith.constant 0 : index
    %c0_0 = arith.constant 0 : index
    %0 = vector.load %arg1[%c0, %c0_0] : memref<512x128xbf16, #tpu.memory_space<vmem>>, vector<448x128xbf16>
    %c0_1 = arith.constant 0 : index
    %c0_2 = arith.constant 0 : index
    %c0_3 = arith.constant 0 : index
    %1 = vector.load %arg2[%c0_1, %c0_2, %c0_3] : memref<5x128x256xbf16, #tpu.memory_space<vmem>>, vector<1x128x256xbf16>
    %2 = vector.shape_cast %1 : vector<1x128x256xbf16> to vector<128x256xbf16>
    %cst = arith.constant dense<0.000000e+00> : vector<448x256xf32>
    %3 = tpu.matmul %0, %2, %cst {dimension_numbers = #tpu.dot_dimension_numbers<[1], [0], [0], [1], [0, 0, 1, 1], [], []>} : vector<448x128xbf16>, vector<128x256xbf16>, vector<448x256xf32> -> vector<448x256xf32>
    %c16 = arith.constant 16 : index
    %c0_4 = arith.constant 0 : index
    %4 = vector.load %arg1[%c16, %c0_4] : memref<512x128xbf16, #tpu.memory_space<vmem>>, vector<448x128xbf16>
    %c1 = arith.constant 1 : index
    %c0_5 = arith.constant 0 : index
    %c0_6 = arith.constant 0 : index
    %5 = vector.load %arg2[%c1, %c0_5, %c0_6] : memref<5x128x256xbf16, #tpu.memory_space<vmem>>, vector<1x128x256xbf16>
    %6 = vector.shape_cast %5 : vector<1x128x256xbf16> to vector<128x256xbf16>
    %cst_7 = arith.constant dense<0.000000e+00> : vector<448x256xf32>
    %7 = tpu.matmul %4, %6, %cst_7 {dimension_numbers = #tpu.dot_dimension_numbers<[1], [0], [0], [1], [0, 0, 1, 1], [], []>} : vector<448x128xbf16>, vector<128x256xbf16>, vector<448x256xf32> -> vector<448x256xf32>
    %8 = arith.addf %3, %7 : vector<448x256xf32>
    %c32 = arith.constant 32 : index
    %c0_8 = arith.constant 0 : index
    %9 = vector.load %arg1[%c32, %c0_8] : memref<512x128xbf16, #tpu.memory_space<vmem>>, vector<448x128xbf16>
    %c2 = arith.constant 2 : index
    %c0_9 = arith.constant 0 : index
    %c0_10 = arith.constant 0 : index
    %10 = vector.load %arg2[%c2, %c0_9, %c0_10] : memref<5x128x256xbf16, #tpu.memory_space<vmem>>, vector<1x128x256xbf16>
    %11 = vector.shape_cast %10 : vector<1x128x256xbf16> to vector<128x256xbf16>
    %cst_11 = arith.constant dense<0.000000e+00> : vector<448x256xf32>
    %12 = tpu.matmul %9, %11, %cst_11 {dimension_numbers = #tpu.dot_dimension_numbers<[1], [0], [0], [1], [0, 0, 1, 1], [], []>} : vector<448x128xbf16>, vector<128x256xbf16>, vector<448x256xf32> -> vector<448x256xf32>
    %13 = arith.addf %8, %12 : vector<448x256xf32>
    %c48 = arith.constant 48 : index
    %c0_12 = arith.constant 0 : index
    %14 = vector.load %arg1[%c48, %c0_12] : memref<512x128xbf16, #tpu.memory_space<vmem>>, vector<448x128xbf16>
    %c3 = arith.constant 3 : index
    %c0_13 = arith.constant 0 : index
    %c0_14 = arith.constant 0 : index
    %15 = vector.load %arg2[%c3, %c0_13, %c0_14] : memref<5x128x256xbf16, #tpu.memory_space<vmem>>, vector<1x128x256xbf16>
    %16 = vector.shape_cast %15 : vector<1x128x256xbf16> to vector<128x256xbf16>
    %cst_15 = arith.constant dense<0.000000e+00> : vector<448x256xf32>
    %17 = tpu.matmul %14, %16, %cst_15 {dimension_numbers = #tpu.dot_dimension_numbers<[1], [0], [0], [1], [0, 0, 1, 1], [], []>} : vector<448x128xbf16>, vector<128x256xbf16>, vector<448x256xf32> -> vector<448x256xf32>
    %18 = arith.addf %13, %17 : vector<448x256xf32>
    %c64 = arith.constant 64 : index
    %c0_16 = arith.constant 0 : index
    %19 = vector.load %arg1[%c64, %c0_16] : memref<512x128xbf16, #tpu.memory_space<vmem>>, vector<448x128xbf16>
    %c4 = arith.constant 4 : index
    %c0_17 = arith.constant 0 : index
    %c0_18 = arith.constant 0 : index
    %20 = vector.load %arg2[%c4, %c0_17, %c0_18] : memref<5x128x256xbf16, #tpu.memory_space<vmem>>, vector<1x128x256xbf16>
    %21 = vector.shape_cast %20 : vector<1x128x256xbf16> to vector<128x256xbf16>
    %cst_19 = arith.constant dense<0.000000e+00> : vector<448x256xf32>
    %22 = tpu.matmul %19, %21, %cst_19 {dimension_numbers = #tpu.dot_dimension_numbers<[1], [0], [0], [1], [0, 0, 1, 1], [], []>} : vector<448x128xbf16>, vector<128x256xbf16>, vector<448x256xf32> -> vector<448x256xf32>
    %23 = arith.addf %18, %22 : vector<448x256xf32>
    %c0_20 = arith.constant 0 : index
    %c0_21 = arith.constant 0 : index
    %24 = vector.load %arg3[%c0_20, %c0_21] : memref<1x256xf32, #tpu.memory_space<vmem>>, vector<1x256xf32>
    %25 = vector.broadcast %24 : vector<1x256xf32> to vector<448x256xf32>
    %26 = arith.addf %23, %25 : vector<448x256xf32>
    %cst_22 = arith.constant 0.000000e+00 : f32
    %27 = vector.broadcast %cst_22 : f32 to vector<448x256xf32>
    %28 = arith.maximumf %26, %27 : vector<448x256xf32>
    %29 = arith.truncf %28 : vector<448x256xf32> to vector<448x256xbf16>
    %30 = vector.extract_strided_slice %29 {offsets = [0, 0], sizes = [448, 128], strides = [1, 1]} : vector<448x256xbf16> to vector<448x128xbf16>
    %31 = vector.extract_strided_slice %29 {offsets = [0, 128], sizes = [448, 128], strides = [1, 1]} : vector<448x256xbf16> to vector<448x128xbf16>
    %32 = arith.maximumf %30, %31 : vector<448x128xbf16>
    %33 = vector.shape_cast %32 : vector<448x128xbf16> to vector<14x32x128xbf16>
    %34 = vector.extract_strided_slice %33 {offsets = [0, 0, 0], sizes = [14, 16, 128], strides = [1, 1, 1]} : vector<14x32x128xbf16> to vector<14x16x128xbf16>
    %35 = vector.extract_strided_slice %33 {offsets = [0, 16, 0], sizes = [14, 16, 128], strides = [1, 1, 1]} : vector<14x32x128xbf16> to vector<14x16x128xbf16>
    %36 = arith.maximumf %34, %35 : vector<14x16x128xbf16>
    %37 = vector.shape_cast %36 : vector<14x16x128xbf16> to vector<224x128xbf16>
    %38 = vector.extract_strided_slice %37 {offsets = [0, 0], sizes = [160, 128], strides = [1, 1]} : vector<224x128xbf16> to vector<160x128xbf16>
    %c0_23 = arith.constant 0 : index
    %c0_24 = arith.constant 0 : index
    %c0_25 = arith.constant 0 : index
    %39 = vector.load %arg4[%c0_23, %c0_24, %c0_25] : memref<5x128x256xbf16, #tpu.memory_space<vmem>>, vector<1x128x256xbf16>
    %40 = vector.shape_cast %39 : vector<1x128x256xbf16> to vector<128x256xbf16>
    %cst_26 = arith.constant dense<0.000000e+00> : vector<160x256xf32>
    %41 = tpu.matmul %38, %40, %cst_26 {dimension_numbers = #tpu.dot_dimension_numbers<[1], [0], [0], [1], [0, 0, 1, 1], [], []>} : vector<160x128xbf16>, vector<128x256xbf16>, vector<160x256xf32> -> vector<160x256xf32>
    %42 = vector.extract_strided_slice %37 {offsets = [16, 0], sizes = [160, 128], strides = [1, 1]} : vector<224x128xbf16> to vector<160x128xbf16>
    %c1_27 = arith.constant 1 : index
    %c0_28 = arith.constant 0 : index
    %c0_29 = arith.constant 0 : index
    %43 = vector.load %arg4[%c1_27, %c0_28, %c0_29] : memref<5x128x256xbf16, #tpu.memory_space<vmem>>, vector<1x128x256xbf16>
    %44 = vector.shape_cast %43 : vector<1x128x256xbf16> to vector<128x256xbf16>
    %cst_30 = arith.constant dense<0.000000e+00> : vector<160x256xf32>
    %45 = tpu.matmul %42, %44, %cst_30 {dimension_numbers = #tpu.dot_dimension_numbers<[1], [0], [0], [1], [0, 0, 1, 1], [], []>} : vector<160x128xbf16>, vector<128x256xbf16>, vector<160x256xf32> -> vector<160x256xf32>
    %46 = arith.addf %41, %45 : vector<160x256xf32>
    %47 = vector.extract_strided_slice %37 {offsets = [32, 0], sizes = [160, 128], strides = [1, 1]} : vector<224x128xbf16> to vector<160x128xbf16>
    %c2_31 = arith.constant 2 : index
    %c0_32 = arith.constant 0 : index
    %c0_33 = arith.constant 0 : index
    %48 = vector.load %arg4[%c2_31, %c0_32, %c0_33] : memref<5x128x256xbf16, #tpu.memory_space<vmem>>, vector<1x128x256xbf16>
    %49 = vector.shape_cast %48 : vector<1x128x256xbf16> to vector<128x256xbf16>
    %cst_34 = arith.constant dense<0.000000e+00> : vector<160x256xf32>
    %50 = tpu.matmul %47, %49, %cst_34 {dimension_numbers = #tpu.dot_dimension_numbers<[1], [0], [0], [1], [0, 0, 1, 1], [], []>} : vector<160x128xbf16>, vector<128x256xbf16>, vector<160x256xf32> -> vector<160x256xf32>
    %51 = arith.addf %46, %50 : vector<160x256xf32>
    %52 = vector.extract_strided_slice %37 {offsets = [48, 0], sizes = [160, 128], strides = [1, 1]} : vector<224x128xbf16> to vector<160x128xbf16>
    %c3_35 = arith.constant 3 : index
    %c0_36 = arith.constant 0 : index
    %c0_37 = arith.constant 0 : index
    %53 = vector.load %arg4[%c3_35, %c0_36, %c0_37] : memref<5x128x256xbf16, #tpu.memory_space<vmem>>, vector<1x128x256xbf16>
    %54 = vector.shape_cast %53 : vector<1x128x256xbf16> to vector<128x256xbf16>
    %cst_38 = arith.constant dense<0.000000e+00> : vector<160x256xf32>
    %55 = tpu.matmul %52, %54, %cst_38 {dimension_numbers = #tpu.dot_dimension_numbers<[1], [0], [0], [1], [0, 0, 1, 1], [], []>} : vector<160x128xbf16>, vector<128x256xbf16>, vector<160x256xf32> -> vector<160x256xf32>
    %56 = arith.addf %51, %55 : vector<160x256xf32>
    %57 = vector.extract_strided_slice %37 {offsets = [64, 0], sizes = [160, 128], strides = [1, 1]} : vector<224x128xbf16> to vector<160x128xbf16>
    %c4_39 = arith.constant 4 : index
    %c0_40 = arith.constant 0 : index
    %c0_41 = arith.constant 0 : index
    %58 = vector.load %arg4[%c4_39, %c0_40, %c0_41] : memref<5x128x256xbf16, #tpu.memory_space<vmem>>, vector<1x128x256xbf16>
    %59 = vector.shape_cast %58 : vector<1x128x256xbf16> to vector<128x256xbf16>
    %cst_42 = arith.constant dense<0.000000e+00> : vector<160x256xf32>
    %60 = tpu.matmul %57, %59, %cst_42 {dimension_numbers = #tpu.dot_dimension_numbers<[1], [0], [0], [1], [0, 0, 1, 1], [], []>} : vector<160x128xbf16>, vector<128x256xbf16>, vector<160x256xf32> -> vector<160x256xf32>
    %61 = arith.addf %56, %60 : vector<160x256xf32>
    %c0_43 = arith.constant 0 : index
    %c0_44 = arith.constant 0 : index
    %62 = vector.load %arg5[%c0_43, %c0_44] : memref<1x256xf32, #tpu.memory_space<vmem>>, vector<1x256xf32>
    %63 = vector.broadcast %62 : vector<1x256xf32> to vector<160x256xf32>
    %64 = arith.addf %61, %63 : vector<160x256xf32>
    %cst_45 = arith.constant 0.000000e+00 : f32
    %65 = vector.broadcast %cst_45 : f32 to vector<160x256xf32>
    %66 = arith.maximumf %64, %65 : vector<160x256xf32>
    %67 = arith.truncf %66 : vector<160x256xf32> to vector<160x256xbf16>
    %68 = vector.extract_strided_slice %67 {offsets = [0, 0], sizes = [160, 128], strides = [1, 1]} : vector<160x256xbf16> to vector<160x128xbf16>
    %69 = vector.extract_strided_slice %67 {offsets = [0, 128], sizes = [160, 128], strides = [1, 1]} : vector<160x256xbf16> to vector<160x128xbf16>
    %70 = arith.maximumf %68, %69 : vector<160x128xbf16>
    %71 = vector.shape_cast %70 : vector<160x128xbf16> to vector<5x32x128xbf16>
    %72 = vector.extract_strided_slice %71 {offsets = [0, 0, 0], sizes = [5, 16, 128], strides = [1, 1, 1]} : vector<5x32x128xbf16> to vector<5x16x128xbf16>
    %73 = vector.extract_strided_slice %71 {offsets = [0, 16, 0], sizes = [5, 16, 128], strides = [1, 1, 1]} : vector<5x32x128xbf16> to vector<5x16x128xbf16>
    %74 = arith.maximumf %72, %73 : vector<5x16x128xbf16>
    %75 = vector.shape_cast %74 : vector<5x16x128xbf16> to vector<80x128xbf16>
    %76 = vector.extract_strided_slice %75 {offsets = [0, 0], sizes = [16, 128], strides = [1, 1]} : vector<80x128xbf16> to vector<16x128xbf16>
    %c0_46 = arith.constant 0 : index
    %c0_47 = arith.constant 0 : index
    %c0_48 = arith.constant 0 : index
    %77 = vector.load %arg6[%c0_46, %c0_47, %c0_48] : memref<5x128x128xbf16, #tpu.memory_space<vmem>>, vector<1x128x128xbf16>
    %78 = vector.shape_cast %77 : vector<1x128x128xbf16> to vector<128x128xbf16>
    %cst_49 = arith.constant dense<0.000000e+00> : vector<16x128xf32>
    %79 = tpu.matmul %76, %78, %cst_49 {dimension_numbers = #tpu.dot_dimension_numbers<[1], [0], [0], [1], [0, 0, 1, 1], [], []>} : vector<16x128xbf16>, vector<128x128xbf16>, vector<16x128xf32> -> vector<16x128xf32>
    %80 = vector.extract_strided_slice %75 {offsets = [16, 0], sizes = [16, 128], strides = [1, 1]} : vector<80x128xbf16> to vector<16x128xbf16>
    %c1_50 = arith.constant 1 : index
    %c0_51 = arith.constant 0 : index
    %c0_52 = arith.constant 0 : index
    %81 = vector.load %arg6[%c1_50, %c0_51, %c0_52] : memref<5x128x128xbf16, #tpu.memory_space<vmem>>, vector<1x128x128xbf16>
    %82 = vector.shape_cast %81 : vector<1x128x128xbf16> to vector<128x128xbf16>
    %cst_53 = arith.constant dense<0.000000e+00> : vector<16x128xf32>
    %83 = tpu.matmul %80, %82, %cst_53 {dimension_numbers = #tpu.dot_dimension_numbers<[1], [0], [0], [1], [0, 0, 1, 1], [], []>} : vector<16x128xbf16>, vector<128x128xbf16>, vector<16x128xf32> -> vector<16x128xf32>
    %84 = arith.addf %79, %83 : vector<16x128xf32>
    %85 = vector.extract_strided_slice %75 {offsets = [32, 0], sizes = [16, 128], strides = [1, 1]} : vector<80x128xbf16> to vector<16x128xbf16>
    %c2_54 = arith.constant 2 : index
    %c0_55 = arith.constant 0 : index
    %c0_56 = arith.constant 0 : index
    %86 = vector.load %arg6[%c2_54, %c0_55, %c0_56] : memref<5x128x128xbf16, #tpu.memory_space<vmem>>, vector<1x128x128xbf16>
    %87 = vector.shape_cast %86 : vector<1x128x128xbf16> to vector<128x128xbf16>
    %cst_57 = arith.constant dense<0.000000e+00> : vector<16x128xf32>
    %88 = tpu.matmul %85, %87, %cst_57 {dimension_numbers = #tpu.dot_dimension_numbers<[1], [0], [0], [1], [0, 0, 1, 1], [], []>} : vector<16x128xbf16>, vector<128x128xbf16>, vector<16x128xf32> -> vector<16x128xf32>
    %89 = arith.addf %84, %88 : vector<16x128xf32>
    %90 = vector.extract_strided_slice %75 {offsets = [48, 0], sizes = [16, 128], strides = [1, 1]} : vector<80x128xbf16> to vector<16x128xbf16>
    %c3_58 = arith.constant 3 : index
    %c0_59 = arith.constant 0 : index
    %c0_60 = arith.constant 0 : index
    %91 = vector.load %arg6[%c3_58, %c0_59, %c0_60] : memref<5x128x128xbf16, #tpu.memory_space<vmem>>, vector<1x128x128xbf16>
    %92 = vector.shape_cast %91 : vector<1x128x128xbf16> to vector<128x128xbf16>
    %cst_61 = arith.constant dense<0.000000e+00> : vector<16x128xf32>
    %93 = tpu.matmul %90, %92, %cst_61 {dimension_numbers = #tpu.dot_dimension_numbers<[1], [0], [0], [1], [0, 0, 1, 1], [], []>} : vector<16x128xbf16>, vector<128x128xbf16>, vector<16x128xf32> -> vector<16x128xf32>
    %94 = arith.addf %89, %93 : vector<16x128xf32>
    %95 = vector.extract_strided_slice %75 {offsets = [64, 0], sizes = [16, 128], strides = [1, 1]} : vector<80x128xbf16> to vector<16x128xbf16>
    %c4_62 = arith.constant 4 : index
    %c0_63 = arith.constant 0 : index
    %c0_64 = arith.constant 0 : index
    %96 = vector.load %arg6[%c4_62, %c0_63, %c0_64] : memref<5x128x128xbf16, #tpu.memory_space<vmem>>, vector<1x128x128xbf16>
    %97 = vector.shape_cast %96 : vector<1x128x128xbf16> to vector<128x128xbf16>
    %cst_65 = arith.constant dense<0.000000e+00> : vector<16x128xf32>
    %98 = tpu.matmul %95, %97, %cst_65 {dimension_numbers = #tpu.dot_dimension_numbers<[1], [0], [0], [1], [0, 0, 1, 1], [], []>} : vector<16x128xbf16>, vector<128x128xbf16>, vector<16x128xf32> -> vector<16x128xf32>
    %99 = arith.addf %94, %98 : vector<16x128xf32>
    %c0_66 = arith.constant 0 : index
    %c0_67 = arith.constant 0 : index
    %100 = vector.load %arg7[%c0_66, %c0_67] : memref<1x128xf32, #tpu.memory_space<vmem>>, vector<1x128xf32>
    %101 = vector.broadcast %100 : vector<1x128xf32> to vector<16x128xf32>
    %102 = arith.addf %99, %101 : vector<16x128xf32>
    %cst_68 = arith.constant 0.000000e+00 : f32
    %103 = vector.broadcast %cst_68 : f32 to vector<16x128xf32>
    %104 = arith.maximumf %102, %103 : vector<16x128xf32>
    %105 = arith.truncf %104 : vector<16x128xf32> to vector<16x128xbf16>
    %c0_69 = arith.constant 0 : index
    %c0_70 = arith.constant 0 : index
    %106 = vector.load %arg8[%c0_69, %c0_70] : memref<128x128xbf16, #tpu.memory_space<vmem>>, vector<128x128xbf16>
    %cst_71 = arith.constant dense<0.000000e+00> : vector<16x128xf32>
    %107 = tpu.matmul %105, %106, %cst_71 {dimension_numbers = #tpu.dot_dimension_numbers<[1], [0], [0], [1], [0, 0, 1, 1], [], []>} : vector<16x128xbf16>, vector<128x128xbf16>, vector<16x128xf32> -> vector<16x128xf32>
    %c0_72 = arith.constant 0 : index
    %c0_73 = arith.constant 0 : index
    %108 = vector.load %arg9[%c0_72, %c0_73] : memref<1x128xf32, #tpu.memory_space<vmem>>, vector<1x128xf32>
    %109 = vector.broadcast %108 : vector<1x128xf32> to vector<16x128xf32>
    %110 = arith.addf %107, %109 : vector<16x128xf32>
    %cst_74 = arith.constant 0.000000e+00 : f32
    %111 = vector.broadcast %cst_74 : f32 to vector<16x128xf32>
    %112 = arith.maximumf %110, %111 : vector<16x128xf32>
    %113 = arith.truncf %112 : vector<16x128xf32> to vector<16x128xbf16>
    %c0_75 = arith.constant 0 : index
    %c0_76 = arith.constant 0 : index
    %114 = vector.load %arg10[%c0_75, %c0_76] : memref<128x128xbf16, #tpu.memory_space<vmem>>, vector<128x128xbf16>
    %cst_77 = arith.constant dense<0.000000e+00> : vector<16x128xf32>
    %115 = tpu.matmul %113, %114, %cst_77 {dimension_numbers = #tpu.dot_dimension_numbers<[1], [0], [0], [1], [0, 0, 1, 1], [], []>} : vector<16x128xbf16>, vector<128x128xbf16>, vector<16x128xf32> -> vector<16x128xf32>
    %c0_78 = arith.constant 0 : index
    %c0_79 = arith.constant 0 : index
    %116 = vector.load %arg11[%c0_78, %c0_79] : memref<1x128xf32, #tpu.memory_space<vmem>>, vector<1x128xf32>
    %117 = vector.broadcast %116 : vector<1x128xf32> to vector<16x128xf32>
    %118 = arith.addf %115, %117 : vector<16x128xf32>
    %c0_80 = arith.constant 0 : index
    %c0_81 = arith.constant 0 : index
    %119 = vector.load %arg12[%c0_80, %c0_81] : memref<16x128xf32, #tpu.memory_space<vmem>>, vector<16x128xf32>
    tpu.vector_store %arg12[%c0_80, %c0_81], %118 {strides = array<i32>} : memref<16x128xf32, #tpu.memory_space<vmem>>, vector<16x128xf32>,
    return
  }
  func.func @transform_0(%arg0: i32) -> (i32, i32) {
    %c0_i32 = arith.constant 0 : i32
    %c0_i32_0 = arith.constant 0 : i32
    return %arg0, %c0_i32 : i32, i32
  }
  func.func @transform_1(%arg0: i32) -> (i32, i32, i32) {
    %c0_i32 = arith.constant 0 : i32
    %c0_i32_0 = arith.constant 0 : i32
    %c0_i32_1 = arith.constant 0 : i32
    %c0_i32_2 = arith.constant 0 : i32
    return %c0_i32, %c0_i32_0, %c0_i32_1 : i32, i32, i32
  }
  func.func @transform_2(%arg0: i32) -> (i32, i32) {
    %c0_i32 = arith.constant 0 : i32
    %c0_i32_0 = arith.constant 0 : i32
    %c0_i32_1 = arith.constant 0 : i32
    return %c0_i32, %c0_i32_0 : i32, i32
  }
  func.func @transform_3(%arg0: i32) -> (i32, i32, i32) {
    %c0_i32 = arith.constant 0 : i32
    %c0_i32_0 = arith.constant 0 : i32
    %c0_i32_1 = arith.constant 0 : i32
    %c0_i32_2 = arith.constant 0 : i32
    return %c0_i32, %c0_i32_0, %c0_i32_1 : i32, i32, i32
  }
  func.func @transform_4(%arg0: i32) -> (i32, i32) {
    %c0_i32 = arith.constant 0 : i32
    %c0_i32_0 = arith.constant 0 : i32
    %c0_i32_1 = arith.constant 0 : i32
    return %c0_i32, %c0_i32_0 : i32, i32
  }
  func.func @transform_5(%arg0: i32) -> (i32, i32, i32) {
    %c0_i32 = arith.constant 0 : i32
    %c0_i32_0 = arith.constant 0 : i32
    %c0_i32_1 = arith.constant 0 : i32
    %c0_i32_2 = arith.constant 0 : i32
    return %c0_i32, %c0_i32_0, %c0_i32_1 : i32, i32, i32
  }
  func.func @transform_6(%arg0: i32) -> (i32, i32) {
    %c0_i32 = arith.constant 0 : i32
    %c0_i32_0 = arith.constant 0 : i32
    %c0_i32_1 = arith.constant 0 : i32
    return %c0_i32, %c0_i32_0 : i32, i32
  }
  func.func @transform_7(%arg0: i32) -> (i32, i32) {
    %c0_i32 = arith.constant 0 : i32
    %c0_i32_0 = arith.constant 0 : i32
    %c0_i32_1 = arith.constant 0 : i32
    return %c0_i32, %c0_i32_0 : i32, i32
  }
  func.func @transform_8(%arg0: i32) -> (i32, i32) {
    %c0_i32 = arith.constant 0 : i32
    %c0_i32_0 = arith.constant 0 : i32
    %c0_i32_1 = arith.constant 0 : i32
    return %c0_i32, %c0_i32_0 : i32, i32
  }
  func.func @transform_9(%arg0: i32) -> (i32, i32) {
    %c0_i32 = arith.constant 0 : i32
    %c0_i32_0 = arith.constant 0 : i32
    %c0_i32_1 = arith.constant 0 : i32
    return %c0_i32, %c0_i32_0 : i32, i32
  }
  func.func @transform_10(%arg0: i32) -> (i32, i32) {
    %c0_i32 = arith.constant 0 : i32
    %c0_i32_0 = arith.constant 0 : i32
    %c0_i32_1 = arith.constant 0 : i32
    return %c0_i32, %c0_i32_0 : i32, i32
  }
  func.func @transform_11(%arg0: i32) -> (i32, i32) {
    %c0_i32 = arith.constant 0 : i32
    %c0_i32_0 = arith.constant 0 : i32
    return %arg0, %c0_i32 : i32, i32
  }
}

</mosaic_0001>

<bundles_post_ra>
// kernel: net_forward.1
= control target key start
LH: loop header
LB: loop body
LE: loop exit
PB: predicated region body
PF: predicated region fallthrough
CT: control target
= control target key end

     0   :  { %v9698_v1 = vmov 0   ;;  %vm7621_vm0 = vmmov 0   ;;  %s9686_s1 = inlined_call_operand.vmem [shape: bf16[5,128,256], index: 1, kind: input, shape index: {}]   ;;  %s9687_s0 = inlined_call_operand.vmem [shape: bf16[512,128], index: 0, kind: input, shape index: {}]   ;;  %s9688_s3 = inlined_call_operand.vmem [shape: bf16[5,128,256], index: 3, kind: input, shape index: {}]   ;;  %s9689_s2 = inlined_call_operand.vmem [shape: f32[1,256], index: 2, kind: input, shape index: {}]   ;;  %s9690_s5 = inlined_call_operand.vmem [shape: bf16[5,128,128], index: 5, kind: input, shape index: {}]   ;;  %s9691_s4 = inlined_call_operand.vmem [shape: f32[1,256], index: 4, kind: input, shape index: {}]   ;;  %s9692_s7 = inlined_call_operand.vmem [shape: bf16[128,128], index: 7, kind: input, shape index: {}]   ;;  %s9693_s9 = inlined_call_operand.vmem [shape: bf16[128,128], index: 9, kind: input, shape index: {}]   ;;  %s9694_s6 = inlined_call_operand.vmem [shape: f32[1,128], index: 6, kind: input, shape index: {}]   ;;  %s9695_s8 = inlined_call_operand.vmem [shape: f32[1,128], index: 8, kind: input, shape index: {}]   ;;  %s9696_s10 = inlined_call_operand.vmem [shape: f32[1,128], index: 10, kind: input, shape index: {}]   ;;  %s9697_s11 = inlined_call_operand.vmem [shape: f32[16,128], index: 11, kind: output, shape index: {}]  }
   0x1   :  { %v7192_v0 = vld [vmem:[%s9686_s1 + $0x4] ss:$8 sps:$4 sm:$0xff]   ;;  %809 = vmatprep.mubr.bf16.mxu0 %v9698_v1  ;;  %410 = vmatprep.mubr.bf16.mxu1 %v9698_v1  ;;  %v7194_v2 = vld [vmem:[%s9686_s1] ss:$8 sps:$4 sm:$0xff]   ;;  %v7195_v3 = vld [vmem:[%s9686_s1 + $0x14] ss:$8 sps:$4 sm:$0xff]  }
   0x2   :  { %777 = vmatprep.subr.bf16.mxu0 %v7192_v0  ;;  %v7197_v4 = vld [vmem:[%s9686_s1 + $0x10] ss:$8 sps:$4 sm:$0xff]   ;;  %v7198_v5 = vld [vmem:[%s9686_s1 + $0x24] ss:$8 sps:$4 sm:$0xff]   ;;  %v7200_v6 = vld [vmem:[%s9686_s1 + $0x20] ss:$8 sps:$4 sm:$0xff]  }
   0x3   :  { %778 = vmatpush1.bf16.msra.mxu0 %v7194_v2  ;;  %v7201_v7 = vld [vmem:[%s9686_s1 + $0x34] ss:$8 sps:$4 sm:$0xff]   ;;  %v7203_v8 = vld [vmem:[%s9686_s1 + $0x30] ss:$8 sps:$4 sm:$0xff]   ;;  %v7204_v9 = vld [vmem:[%s9686_s1 + $0x44] ss:$8 sps:$4 sm:$0xff]  }
   0x4   :  { %779 = vmatprep.subr.bf16.mxu0 %v7195_v3  ;;  %v7206_v10 = vld [vmem:[%s9686_s1 + $0x40] ss:$8 sps:$4 sm:$0xff]   ;;  %v7207_v11 = vld [vmem:[%s9686_s1 + $0x54] ss:$8 sps:$4 sm:$0xff]   ;;  %v7209_v12 = vld [vmem:[%s9686_s1 + $0x50] ss:$8 sps:$4 sm:$0xff]  }
   0x5   :  { %v7210_v13 = vld [vmem:[%s9686_s1 + $0x64] ss:$8 sps:$4 sm:$0xff]   ;;  %v7212_v14 = vld [vmem:[%s9686_s1 + $0x60] ss:$8 sps:$4 sm:$0xff]   ;;  %v7213_v15 = vld [vmem:[%s9686_s1 + $0x74] ss:$8 sps:$4 sm:$0xff]  }
   0x6   :  { %v7215_v16 = vld [vmem:[%s9686_s1 + $0x70] ss:$8 sps:$4 sm:$0xff]   ;;  %v7219_v17 = vld [vmem:[%s9686_s1 + $0x104] ss:$8 sps:$4 sm:$0xff]   ;;  %v7217_v19 = vld [vmem:[%s9686_s1 + $0x100] ss:$8 sps:$4 sm:$0xff]  }
   0x7   :  { %780 = vmatpush1.bf16.msra.mxu0 %v7197_v4  ;;  %v7216_v18 = vld [vmem:[%s9687_s0] sm:$0xff]   ;;  %v7225_v20 = vld [vmem:[%s9686_s1 + $0x114] ss:$8 sps:$4 sm:$0xff]   ;;  %v7223_v21 = vld [vmem:[%s9686_s1 + $0x110] ss:$8 sps:$4 sm:$0xff]  }
   0x8   :  { %781 = vmatprep.subr.bf16.mxu0 %v7198_v5  ;;  %v7220_v22 = vld [vmem:[%s9687_s0 + $0x8] sm:$0xff]   ;;  %v7237_v25 = vld [vmem:[%s9686_s1 + $0x134] ss:$8 sps:$4 sm:$0xff]   ;;  %v7235_v26 = vld [vmem:[%s9686_s1 + $0x130] ss:$8 sps:$4 sm:$0xff]  }
   0x9   :  { %v7231_v23 = vld [vmem:[%s9686_s1 + $0x124] ss:$8 sps:$4 sm:$0xff]   ;;  %v7229_v24 = vld [vmem:[%s9686_s1 + $0x120] ss:$8 sps:$4 sm:$0xff]   ;;  %v7221_v28 = vld [vmem:[%s9687_s0 + $0x10] sm:$0xff]  }
   0xa   :  { %v7243_v27 = vld [vmem:[%s9686_s1 + $0x144] ss:$8 sps:$4 sm:$0xff]   ;;  %v7241_v29 = vld [vmem:[%s9686_s1 + $0x140] ss:$8 sps:$4 sm:$0xff]   ;;  %v7249_v30 = vld [vmem:[%s9686_s1 + $0x154] ss:$8 sps:$4 sm:$0xff]  }
   0xb   :  { %782 = vmatpush1.bf16.msra.mxu0 %v7200_v6  ;;  %v7247_v31 = vld [vmem:[%s9686_s1 + $0x150] ss:$8 sps:$4 sm:$0xff]   ;;  %v7255_v32 = vld [vmem:[%s9686_s1 + $0x164] ss:$8 sps:$4 sm:$0xff]   ;;  %v7253_v34 = vld [vmem:[%s9686_s1 + $0x160] ss:$8 sps:$4 sm:$0xff]  }
   0xc   :  { %783 = vmatprep.subr.bf16.mxu0 %v7201_v7  ;;  %v7786_v33 = vld [vmem:[%s9687_s0 + $0x18] sm:$0xff]   ;;  %v7796_v35 = vld [vmem:[%s9687_s0 + $0x20] sm:$0xff]   ;;  %v7803_v36 = vld [vmem:[%s9687_s0 + $0x28] sm:$0xff]  }
   0xd   :  { %v7259_v37 = vld [vmem:[%s9686_s1 + $0x170] ss:$8 sps:$4 sm:$0xff]   ;;  %v7261_v38 = vld [vmem:[%s9686_s1 + $0x174] ss:$8 sps:$4 sm:$0xff]   ;;  %v7830_v41 = vld [vmem:[%s9687_s0 + $0x40] sm:$0xff]  }
   0xe   :  { %v7816_v39 = vld [vmem:[%s9687_s0 + $0x30] sm:$0xff]   ;;  %v7823_v40 = vld [vmem:[%s9687_s0 + $0x38] sm:$0xff]   ;;  %v7267_v42 = vld [vmem:[%s9686_s1 + $0x184] ss:$8 sps:$4 sm:$0xff]  }
   0xf   :  { %784 = vmatpush1.bf16.msra.mxu0 %v7203_v8  ;;  %v7840_v43 = vld [vmem:[%s9687_s0 + $0x48] sm:$0xff]   ;;  %v7847_v44 = vld [vmem:[%s9687_s0 + $0x50] sm:$0xff]   ;;  %v7854_v45 = vld [vmem:[%s9687_s0 + $0x58] sm:$0xff]  }
  0x10   :  { %785 = vmatprep.subr.bf16.mxu0 %v7204_v9  ;;  %v7861_v46 = vld [vmem:[%s9687_s0 + $0x60] sm:$0xff]   ;;  %v7868_v47 = vld [vmem:[%s9687_s0 + $0x68] sm:$0xff]   ;;  %v7875_v48 = vld [vmem:[%s9687_s0 + $0x70] sm:$0xff]  }
  0x11   :  { %v7882_v49 = vld [vmem:[%s9687_s0 + $0x78] sm:$0xff]   ;;  %v7889_v50 = vld [vmem:[%s9687_s0 + $0x80] sm:$0xff]   ;;  %v7896_v51 = vld [vmem:[%s9687_s0 + $0x88] sm:$0xff]  }
  0x12   :  { %v7903_v52 = vld [vmem:[%s9687_s0 + $0x90] sm:$0xff]   ;;  %v7910_v53 = vld [vmem:[%s9687_s0 + $0x98] sm:$0xff]   ;;  %v7917_v54 = vld [vmem:[%s9687_s0 + $0xa0] sm:$0xff]  }
  0x13   :  { %786 = vmatpush1.bf16.msra.mxu0 %v7206_v10  ;;  %v7924_v55 = vld [vmem:[%s9687_s0 + $0xa8] sm:$0xff]   ;;  %v7931_v56 = vld [vmem:[%s9687_s0 + $0xb0] sm:$0xff]   ;;  %v7938_v57 = vld [vmem:[%s9687_s0 + $0xb8] sm:$0xff]  }
  0x14   :  { %787 = vmatprep.subr.bf16.mxu0 %v7207_v11  ;;  %v7264_v58 = vld [vmem:[%s9687_s0 + $0x10] sm:$0xff]   ;;  %v7265_v59 = vld [vmem:[%s9686_s1 + $0x180] ss:$8 sps:$4 sm:$0xff]   ;;  %v7280_v62 = vld [vmem:[%s9686_s1 + $0x1a4] ss:$8 sps:$4 sm:$0xff]  }
  0x15   :  { %v7273_v60 = vld [vmem:[%s9686_s1 + $0x194] ss:$8 sps:$4 sm:$0xff]   ;;  %v7271_v61 = vld [vmem:[%s9686_s1 + $0x190] ss:$8 sps:$4 sm:$0xff]   ;;  %v7278_v0 = vld [vmem:[%s9686_s1 + $0x1a0] ss:$8 sps:$4 sm:$0xff]  }
  0x16   :  { %v7268_v63 = vld [vmem:[%s9687_s0 + $0x18] sm:$0xff]   ;;  %v7293_v4 = vld [vmem:[%s9686_s1 + $0x1c4] ss:$8 sps:$4 sm:$0xff]   ;;  %v7291_v6 = vld [vmem:[%s9686_s1 + $0x1c0] ss:$8 sps:$4 sm:$0xff]  }
  0x17   :  { %788 = vmatpush1.bf16.msra.mxu0 %v7209_v12  ;;  %v7286_v2 = vld [vmem:[%s9686_s1 + $0x1b4] ss:$8 sps:$4 sm:$0xff]   ;;  %v7284_v3 = vld [vmem:[%s9686_s1 + $0x1b0] ss:$8 sps:$4 sm:$0xff]   ;;  %v7269_v5 = vld [vmem:[%s9687_s0 + $0x20] sm:$0xff]  }
  0x18   :  { %789 = vmatprep.subr.bf16.mxu0 %v7210_v13  ;;  %v7299_v7 = vld [vmem:[%s9686_s1 + $0x1d4] ss:$8 sps:$4 sm:$0xff]   ;;  %v7297_v8 = vld [vmem:[%s9686_s1 + $0x1d0] ss:$8 sps:$4 sm:$0xff]   ;;  %v7270_v9 = vld [vmem:[%s9687_s0 + $0x28] sm:$0xff]  }
  0x19   :  { %v7274_v10 = vld [vmem:[%s9687_s0 + $0x30] sm:$0xff]   ;;  %v7275_v11 = vld [vmem:[%s9687_s0 + $0x38] sm:$0xff]   ;;  %v7304_v12 = vld [vmem:[%s9686_s1 + $0x1e0] ss:$8 sps:$4 sm:$0xff]  }
  0x1a   :  { %v7306_v13 = vld [vmem:[%s9686_s1 + $0x1e4] ss:$8 sps:$4 sm:$0xff]  }
  0x1b   :  { %790 = vmatpush1.bf16.msra.mxu0 %v7212_v14  ;;  %v7276_v14 = vld [vmem:[%s9687_s0 + $0x40] sm:$0xff]  }
  0x1c   :  { %791 = vmatprep.subr.bf16.mxu0 %v7213_v15  ;;  %v7277_v15 = vld [vmem:[%s9687_s0 + $0x48] sm:$0xff]  }
  0x1f   :  { %792 = vmatpush1.bf16.msra.mxu0 %v7215_v16  ;;  %v7281_v16 = vld [vmem:[%s9687_s0 + $0x50] sm:$0xff]  }
  0x20   :  { %1411 = vmatprep.subr.bf16.mxu0 %v7219_v17  ;;  %v7310_v17 = vld [vmem:[%s9686_s1 + $0x1f0] ss:$8 sps:$4 sm:$0xff]  }
  0x22   :  { %810 = vmatmul.mubr.bf16.vlgmr.msra.gmra.mrb[0].mxu0 %v7216_v18  ;;  %v7312_v18 = vld [vmem:[%s9686_s1 + $0x1f4] ss:$8 sps:$4 sm:$0xff]  }
  0x23   :  { %1412 = vmatpush1.bf16.msra.mxu0 %v7217_v19  ;;  %819 = vmatprep.mubr.bf16.mxu0 %v9698_v1  ;;  %v7282_v19 = vld [vmem:[%s9687_s0 + $0x58] sm:$0xff]  }
  0x24   :  { %1413 = vmatprep.subr.bf16.mxu0 %v7225_v20  ;;  %v7283_v20 = vld [vmem:[%s9687_s0 + $0x60] sm:$0xff]  }
  0x27   :  { %1414 = vmatpush1.bf16.msra.mxu0 %v7223_v21  ;;  %v7287_v21 = vld [vmem:[%s9687_s0 + $0x68] sm:$0xff]  }
  0x28   :  { %1415 = vmatprep.subr.bf16.mxu0 %v7231_v23  ;;  %v7319_v23 = vld [vmem:[%s9686_s1 + $0x204] ss:$8 sps:$4 sm:$0xff]  }
  0x2a   :  { %820 = vmatmul.mubr.bf16.gmra.mrb[4].mxu0 %v7220_v22  ;;  %v7288_v22 = vld [vmem:[%s9687_s0 + $0x70] sm:$0xff]  }
  0x2b   :  { %829 = vmatprep.mubr.bf16.mxu0 %v9698_v1  ;;  %1416 = vmatpush1.bf16.msra.mxu0 %v7229_v24  ;;  %v7289_v24 = vld [vmem:[%s9687_s0 + $0x78] sm:$0xff]  }
  0x2c   :  { %1417 = vmatprep.subr.bf16.mxu0 %v7237_v25  ;;  %v7290_v25 = vld [vmem:[%s9687_s0 + $0x80] sm:$0xff]  }
  0x2f   :  { %1418 = vmatpush1.bf16.msra.mxu0 %v7235_v26  ;;  %v7294_v26 = vld [vmem:[%s9687_s0 + $0x88] sm:$0xff]  }
  0x30   :  { %1419 = vmatprep.subr.bf16.mxu0 %v7243_v27  ;;  %v7295_v27 = vld [vmem:[%s9687_s0 + $0x90] sm:$0xff]  }
  0x32   :  { %830 = vmatmul.mubr.bf16.gmra.mrb[8].mxu0 %v7221_v28  ;;  %v7296_v28 = vld [vmem:[%s9687_s0 + $0x98] sm:$0xff]  }
  0x33   :  { %839 = vmatprep.mubr.bf16.mxu0 %v9698_v1  ;;  %1420 = vmatpush1.bf16.msra.mxu0 %v7241_v29  ;;  %v7300_v29 = vld [vmem:[%s9687_s0 + $0xa0] sm:$0xff]  }
  0x34   :  { %1421 = vmatprep.subr.bf16.mxu0 %v7249_v30  ;;  %v7301_v30 = vld [vmem:[%s9687_s0 + $0xa8] sm:$0xff]  }
  0x37   :  { %1422 = vmatpush1.bf16.msra.mxu0 %v7247_v31  ;;  %v7302_v31 = vld [vmem:[%s9687_s0 + $0xb0] sm:$0xff]  }
  0x38   :  { %1423 = vmatprep.subr.bf16.mxu0 %v7255_v32  ;;  %v7303_v32 = vld [vmem:[%s9687_s0 + $0xb8] sm:$0xff]  }
  0x3a   :  { %840 = vmatmul.mubr.bf16.gmra.mrb[12].mxu0 %v7786_v33 }
  0x3b   :  { %849 = vmatprep.mubr.bf16.mxu0 %v9698_v1  ;;  %1424 = vmatpush1.bf16.msra.mxu0 %v7253_v34  ;;  %v7307_v34 = vld [vmem:[%s9687_s0 + $0xc0] sm:$0xff]  }
  0x3c   :  { %1425 = vmatprep.subr.bf16.mxu0 %v7261_v38  ;;  %v7309_v38 = vld [vmem:[%s9687_s0 + $0xd0] sm:$0xff]  }
  0x3f   :  { %1426 = vmatpush1.bf16.msra.mxu0 %v7259_v37  ;;  %v7308_v37 = vld [vmem:[%s9687_s0 + $0xc8] sm:$0xff]  }
  0x40   :  { %2157 = vmatprep.subr.bf16.mxu0 %v7267_v42  ;;  %v7313_v42 = vld [vmem:[%s9687_s0 + $0xd8] sm:$0xff]  }
  0x42   :  { %850 = vmatmul.mubr.bf16.gmra.mrb[16].mxu0 %v7796_v35 }
  0x43   :  { %859 = vmatprep.mubr.bf16.mxu0 %v9698_v1 }
  0x4a   :  { %860 = vmatmul.mubr.bf16.gmra.mrb[20].mxu0 %v7803_v36 }
  0x4b   :  { %869 = vmatprep.mubr.bf16.mxu0 %v9698_v1 }
  0x52   :  { %870 = vmatmul.mubr.bf16.gmra.mrb[24].mxu0 %v7816_v39 }
  0x53   :  { %879 = vmatprep.mubr.bf16.mxu0 %v9698_v1 }
  0x5a   :  { %880 = vmatmul.mubr.bf16.gmra.mrb[28].mxu0 %v7823_v40 }
  0x5b   :  { %889 = vmatprep.mubr.bf16.mxu0 %v9698_v1 }
  0x62   :  { %890 = vmatmul.mubr.bf16.gmra.mrb[32].mxu0 %v7830_v41 }
  0x63   :  { %899 = vmatprep.mubr.bf16.mxu0 %v9698_v1 }
  0x6a   :  { %900 = vmatmul.mubr.bf16.gmra.mrb[36].mxu0 %v7840_v43 }
  0x6b   :  { %909 = vmatprep.mubr.bf16.mxu0 %v9698_v1 }
  0x72   :  { %910 = vmatmul.mubr.bf16.gmra.mrb[40].mxu0 %v7847_v44 }
  0x73   :  { %919 = vmatprep.mubr.bf16.mxu0 %v9698_v1 }
  0x7a   :  { %920 = vmatmul.mubr.bf16.gmra.mrb[44].mxu0 %v7854_v45 }
  0x7b   :  { %929 = vmatprep.mubr.bf16.mxu0 %v9698_v1 }
  0x82   :  { %930 = vmatmul.mubr.bf16.gmra.mrb[48].mxu0 %v7861_v46 }
  0x83   :  { %939 = vmatprep.mubr.bf16.mxu0 %v9698_v1 }
  0x8a   :  { %940 = vmatmul.mubr.bf16.gmra.mrb[52].mxu0 %v7868_v47 }
  0x8b   :  { %949 = vmatprep.mubr.bf16.mxu0 %v9698_v1 }
  0x92   :  { %950 = vmatmul.mubr.bf16.gmra.mrb[56].mxu0 %v7875_v48 }
  0x93   :  { %959 = vmatprep.mubr.bf16.mxu0 %v9698_v1 }
  0x9a   :  { %960 = vmatmul.mubr.bf16.gmra.mrb[60].mxu0 %v7882_v49 }
  0x9b   :  { %969 = vmatprep.mubr.bf16.mxu0 %v9698_v1 }
  0xa2   :  { %970 = vmatmul.mubr.bf16.gmra.mrb[64].mxu0 %v7889_v50 }
  0xa3   :  { %979 = vmatprep.mubr.bf16.mxu0 %v9698_v1 }
  0xaa   :  { %980 = vmatmul.mubr.bf16.gmra.mrb[68].mxu0 %v7896_v51 }
  0xab   :  { %989 = vmatprep.mubr.bf16.mxu0 %v9698_v1 }
  0xb2   :  { %990 = vmatmul.mubr.bf16.gmra.mrb[72].mxu0 %v7903_v52 }
  0xb3   :  { %999 = vmatprep.mubr.bf16.mxu0 %v9698_v1 }
  0xba   :  { %1000 = vmatmul.mubr.bf16.gmra.mrb[76].mxu0 %v7910_v53 }
  0xbb   :  { %1009 = vmatprep.mubr.bf16.mxu0 %v9698_v1 }
  0xc2   :  { %1010 = vmatmul.mubr.bf16.gmra.mrb[80].mxu0 %v7917_v54 }
  0xc3   :  { %1019 = vmatprep.mubr.bf16.mxu0 %v9698_v1 }
  0xca   :  { %1020 = vmatmul.mubr.bf16.gmra.mrb[84].mxu0 %v7924_v55 }
  0xcb   :  { %1029 = vmatprep.mubr.bf16.mxu0 %v9698_v1 }
  0xd2   :  { %1030 = vmatmul.mubr.bf16.gmra.mrb[88].mxu0 %v7931_v56 }
  0xd3   :  { %1039 = vmatprep.mubr.bf16.mxu0 %v9698_v1 }
  0xda   :  { %1040 = vmatmul.mubr.bf16.gmra.mrb[92].mxu0 %v7938_v57 }
  0xdb   :  { %1443 = vmatprep.mubr.bf16.mxu0 %v9698_v1 }
  0xe2   :  { %1444 = vmatmul.mubr.bf16.vlgmr.msra.gmra.mrb[0].mxu0 %v7264_v58  ;;  %v7314_v58 = vld [vmem:[%s9687_s0 + $0xe0] sm:$0xff]  }
  0xe3   :  { %2158 = vmatpush1.bf16.msra.mxu0 %v7265_v59  ;;  %1453 = vmatprep.mubr.bf16.mxu0 %v9698_v1  ;;  %v7315_v59 = vld [vmem:[%s9687_s0 + $0xe8] sm:$0xff]  }
  0xe4   :  { %2159 = vmatprep.subr.bf16.mxu0 %v7273_v60  ;;  %v7316_v60 = vld [vmem:[%s9687_s0 + $0x18] sm:$0xff]  }
  0xe7   :  { %2160 = vmatpush1.bf16.msra.mxu0 %v7271_v61  ;;  %v7317_v61 = vld [vmem:[%s9686_s1 + $0x200] ss:$8 sps:$4 sm:$0xff]  }
  0xe8   :  { %2161 = vmatprep.subr.bf16.mxu0 %v7280_v62  ;;  %v7325_v62 = vld [vmem:[%s9686_s1 + $0x214] ss:$8 sps:$4 sm:$0xff]  }
  0xea   :  { %1454 = vmatmul.mubr.bf16.gmra.mrb[4].mxu0 %v7268_v63  ;;  %v7323_v63 = vld [vmem:[%s9686_s1 + $0x210] ss:$8 sps:$4 sm:$0xff]  }
  0xeb   :  { %1463 = vmatprep.mubr.bf16.mxu0 %v9698_v1  ;;  %2162 = vmatpush1.bf16.msra.mxu0 %v7278_v0  ;;  %v7332_v0 = vld [vmem:[%s9686_s1 + $0x224] ss:$8 sps:$4 sm:$0xff]  }
  0xec   :  { %2163 = vmatprep.subr.bf16.mxu0 %v7286_v2  ;;  %v7320_v2 = vld [vmem:[%s9687_s0 + $0x20] sm:$0xff]  }
  0xef   :  { %2164 = vmatpush1.bf16.msra.mxu0 %v7284_v3  ;;  %v7330_v3 = vld [vmem:[%s9686_s1 + $0x220] ss:$8 sps:$4 sm:$0xff]  }
  0xf0   :  { %2165 = vmatprep.subr.bf16.mxu0 %v7293_v4  ;;  %v7338_v4 = vld [vmem:[%s9686_s1 + $0x234] ss:$8 sps:$4 sm:$0xff]  }
  0xf2   :  { %1464 = vmatmul.mubr.bf16.gmra.mrb[8].mxu0 %v7269_v5  ;;  %v7336_v5 = vld [vmem:[%s9686_s1 + $0x230] ss:$8 sps:$4 sm:$0xff]  }
  0xf3   :  { %1473 = vmatprep.mubr.bf16.mxu0 %v9698_v1  ;;  %2166 = vmatpush1.bf16.msra.mxu0 %v7291_v6  ;;  %v7345_v6 = vld [vmem:[%s9686_s1 + $0x244] ss:$8 sps:$4 sm:$0xff]  }
  0xf4   :  { %2167 = vmatprep.subr.bf16.mxu0 %v7299_v7  ;;  %v7321_v7 = vld [vmem:[%s9687_s0 + $0x28] sm:$0xff]  }
  0xf7   :  { %2168 = vmatpush1.bf16.msra.mxu0 %v7297_v8  ;;  %v7343_v8 = vld [vmem:[%s9686_s1 + $0x240] ss:$8 sps:$4 sm:$0xff]  }
  0xf8   :  { %2169 = vmatprep.subr.bf16.mxu0 %v7306_v13  ;;  %v7326_v13 = vld [vmem:[%s9687_s0 + $0x38] sm:$0xff]  }
  0xfa   :  { %1474 = vmatmul.mubr.bf16.gmra.mrb[12].mxu0 %v7270_v9  ;;  %v7351_v9 = vld [vmem:[%s9686_s1 + $0x254] ss:$8 sps:$4 sm:$0xff]  }
  0xfb   :  { %1483 = vmatprep.mubr.bf16.mxu0 %v9698_v1  ;;  %2170 = vmatpush1.bf16.msra.mxu0 %v7304_v12  ;;  %v7354_v12 = vld [vmem:[%s9686_s1 + $0x84] ss:$8 sps:$4 sm:$0xff]  }
  0xfc   :  { %2171 = vmatprep.subr.bf16.mxu0 %v7312_v18  ;;  %378 = vmatprep.subr.bf16.mxu1 %v7354_v12  ;;  %v7327_v18 = vld [vmem:[%s9687_s0 + $0x40] sm:$0xff]  }
  0xfd   :  { %v7616_v12 = vld [vmem:[%s9686_s1 + $0x60] ss:$8 sps:$4 sm:$0xff]  }
  0xff   :  { %2172 = vmatpush1.bf16.msra.mxu0 %v7310_v17  ;;  %v7361_v17 = vld [vmem:[%s9686_s1 + $0xa4] ss:$8 sps:$4 sm:$0xff]  }
 0x100   :  { %2903 = vmatprep.subr.bf16.mxu0 %v7319_v23  ;;  %v7370_v23 = vld [vmem:[%s9686_s1 + $0xb0] ss:$8 sps:$4 sm:$0xff]  }
 0x102   :  { %1484 = vmatmul.mubr.bf16.gmra.mrb[16].mxu0 %v7274_v10  ;;  %v7349_v10 = vld [vmem:[%s9686_s1 + $0x250] ss:$8 sps:$4 sm:$0xff]  }
 0x103   :  { %1493 = vmatprep.mubr.bf16.mxu0 %v9698_v1 }
 0x10a   :  { %1494 = vmatmul.mubr.bf16.gmra.mrb[20].mxu0 %v7275_v11  ;;  %v7322_v11 = vld [vmem:[%s9687_s0 + $0x30] sm:$0xff]  }
 0x10b   :  { %1503 = vmatprep.mubr.bf16.mxu0 %v9698_v1 }
 0x112   :  { %1504 = vmatmul.mubr.bf16.gmra.mrb[24].mxu0 %v7276_v14  ;;  %v7357_v14 = vld [vmem:[%s9686_s1 + $0x80] ss:$8 sps:$4 sm:$0xff]  }
 0x113   :  { %1513 = vmatprep.mubr.bf16.mxu0 %v9698_v1  ;;  %379 = vmatpush1.bf16.msra.mxu1 %v7357_v14  ;;  %v7340_v14 = vld [vmem:[%s9687_s0 + $0x78] sm:$0xff]  }
 0x11a   :  { %1514 = vmatmul.mubr.bf16.gmra.mrb[28].mxu0 %v7277_v15  ;;  %v7358_v15 = vld [vmem:[%s9686_s1 + $0x94] ss:$8 sps:$4 sm:$0xff]  }
 0x11b   :  { %1523 = vmatprep.mubr.bf16.mxu0 %v9698_v1  ;;  %380 = vmatprep.subr.bf16.mxu1 %v7358_v15  ;;  %v7341_v15 = vld [vmem:[%s9687_s0 + $0x80] sm:$0xff]  }
 0x122   :  { %1524 = vmatmul.mubr.bf16.gmra.mrb[32].mxu0 %v7281_v16  ;;  %v7360_v16 = vld [vmem:[%s9686_s1 + $0x90] ss:$8 sps:$4 sm:$0xff]  }
 0x123   :  { %1533 = vmatprep.mubr.bf16.mxu0 %v9698_v1  ;;  %381 = vmatpush1.bf16.msra.mxu1 %v7360_v16  ;;  %v7342_v16 = vld [vmem:[%s9687_s0 + $0x88] sm:$0xff]  }
 0x124   :  { %382 = vmatprep.subr.bf16.mxu1 %v7361_v17  ;;  %v7413_v17 = vld [vmem:[%s9687_s0 + $0xc8] sm:$0xff]  }
 0x12a   :  { %1534 = vmatmul.mubr.bf16.gmra.mrb[36].mxu0 %v7282_v19  ;;  %v7367_v19 = vld [vmem:[%s9686_s1 + $0xa0] ss:$8 sps:$4 sm:$0xff]  }
 0x12b   :  { %1543 = vmatprep.mubr.bf16.mxu0 %v9698_v1  ;;  %383 = vmatpush1.bf16.msra.mxu1 %v7367_v19  ;;  %v7415_v19 = vld [vmem:[%s9687_s0 + $0xd0] sm:$0xff]  }
 0x132   :  { %1544 = vmatmul.mubr.bf16.gmra.mrb[40].mxu0 %v7283_v20  ;;  %v7364_v20 = vld [vmem:[%s9686_s1 + $0x260] ss:$8 sps:$4 sm:$0xff]  }
 0x133   :  { %1553 = vmatprep.mubr.bf16.mxu0 %v9698_v1 }
 0x13a   :  { %1554 = vmatmul.mubr.bf16.gmra.mrb[44].mxu0 %v7287_v21  ;;  %v7366_v21 = vld [vmem:[%s9686_s1 + $0x264] ss:$8 sps:$4 sm:$0xff]  }
 0x13b   :  { %1563 = vmatprep.mubr.bf16.mxu0 %v9698_v1 }
 0x142   :  { %1564 = vmatmul.mubr.bf16.gmra.mrb[48].mxu0 %v7288_v22  ;;  %v7368_v22 = vld [vmem:[%s9686_s1 + $0xb4] ss:$8 sps:$4 sm:$0xff]  }
 0x143   :  { %1573 = vmatprep.mubr.bf16.mxu0 %v9698_v1  ;;  %384 = vmatprep.subr.bf16.mxu1 %v7368_v22  ;;  %v7399_v22 = vld [vmem:[%s9687_s0 + $0x58] sm:$0xff]  }
 0x144   :  { %385 = vmatpush1.bf16.msra.mxu1 %v7370_v23  ;;  %v7419_v23 = vld [vmem:[%s9687_s0 + $0xe0] sm:$0xff]  }
 0x14a   :  { %1574 = vmatmul.mubr.bf16.gmra.mrb[52].mxu0 %v7289_v24  ;;  %v7371_v24 = vld [vmem:[%s9686_s1 + $0xc4] ss:$8 sps:$4 sm:$0xff]  }
 0x14b   :  { %1583 = vmatprep.mubr.bf16.mxu0 %v9698_v1  ;;  %386 = vmatprep.subr.bf16.mxu1 %v7371_v24  ;;  %v7400_v24 = vld [vmem:[%s9687_s0 + $0x60] sm:$0xff]  }
 0x152   :  { %1584 = vmatmul.mubr.bf16.gmra.mrb[56].mxu0 %v7290_v25  ;;  %v7328_v25 = vld [vmem:[%s9687_s0 + $0x48] sm:$0xff]  }
 0x153   :  { %1593 = vmatprep.mubr.bf16.mxu0 %v9698_v1 }
 0x15a   :  { %1594 = vmatmul.mubr.bf16.gmra.mrb[60].mxu0 %v7294_v26  ;;  %v7374_v26 = vld [vmem:[%s9686_s1 + $0xc0] ss:$8 sps:$4 sm:$0xff]  }
 0x15b   :  { %1603 = vmatprep.mubr.bf16.mxu0 %v9698_v1  ;;  %387 = vmatpush1.bf16.msra.mxu1 %v7374_v26  ;;  %v7402_v26 = vld [vmem:[%s9687_s0 + $0x70] sm:$0xff]  }
 0x162   :  { %1604 = vmatmul.mubr.bf16.gmra.mrb[64].mxu0 %v7295_v27  ;;  %v7375_v27 = vld [vmem:[%s9686_s1 + $0xd4] ss:$8 sps:$4 sm:$0xff]  }
 0x163   :  { %1613 = vmatprep.mubr.bf16.mxu0 %v9698_v1  ;;  %388 = vmatprep.subr.bf16.mxu1 %v7375_v27 }
 0x16a   :  { %1614 = vmatmul.mubr.bf16.gmra.mrb[68].mxu0 %v7296_v28  ;;  %v7377_v28 = vld [vmem:[%s9686_s1 + $0xd0] ss:$8 sps:$4 sm:$0xff]  }
 0x16b   :  { %1623 = vmatprep.mubr.bf16.mxu0 %v9698_v1  ;;  %389 = vmatpush1.bf16.msra.mxu1 %v7377_v28 }
 0x172   :  { %1624 = vmatmul.mubr.bf16.gmra.mrb[72].mxu0 %v7300_v29  ;;  %v7378_v29 = vld [vmem:[%s9686_s1 + $0xe4] ss:$8 sps:$4 sm:$0xff]  }
 0x173   :  { %1633 = vmatprep.mubr.bf16.mxu0 %v9698_v1  ;;  %390 = vmatprep.subr.bf16.mxu1 %v7378_v29 }
 0x17a   :  { %1634 = vmatmul.mubr.bf16.gmra.mrb[76].mxu0 %v7301_v30  ;;  %v7329_v30 = vld [vmem:[%s9687_s0 + $0x50] sm:$0xff]  }
 0x17b   :  { %1643 = vmatprep.mubr.bf16.mxu0 %v9698_v1 }
 0x182   :  { %1644 = vmatmul.mubr.bf16.gmra.mrb[80].mxu0 %v7302_v31  ;;  %v7381_v31 = vld [vmem:[%s9686_s1 + $0xe0] ss:$8 sps:$4 sm:$0xff]  }
 0x183   :  { %1653 = vmatprep.mubr.bf16.mxu0 %v9698_v1  ;;  %391 = vmatpush1.bf16.msra.mxu1 %v7381_v31  ;;  %v7403_v31 = vld [vmem:[%s9687_s0 + $0x78] sm:$0xff]  }
 0x18a   :  { %1654 = vmatmul.mubr.bf16.gmra.mrb[84].mxu0 %v7303_v32  ;;  %v7382_v32 = vld [vmem:[%s9686_s1 + $0xf4] ss:$8 sps:$4 sm:$0xff]  }
 0x18b   :  { %1663 = vmatprep.mubr.bf16.mxu0 %v9698_v1  ;;  %392 = vmatprep.subr.bf16.mxu1 %v7382_v32 }
 0x192   :  { %1664 = vmatmul.mubr.bf16.gmra.mrb[88].mxu0 %v7307_v34  ;;  %v7384_v34 = vld [vmem:[%s9686_s1 + $0xf0] ss:$8 sps:$4 sm:$0xff]  }
 0x193   :  { %1673 = vmatprep.mubr.bf16.mxu0 %v9698_v1  ;;  %393 = vmatpush1.bf16.msra.mxu1 %v7384_v34 }
 0x19a   :  { %1674 = vmatmul.mubr.bf16.gmra.mrb[92].mxu0 %v7308_v37  ;;  %v7333_v37 = vld [vmem:[%s9687_s0 + $0x58] sm:$0xff]  }
 0x19b   :  { %1683 = vmatprep.mubr.bf16.mxu0 %v9698_v1 }
 0x1a2   :  { %1684 = vmatmul.mubr.bf16.gmra.mrb[96].mxu0 %v7309_v38  ;;  %v7601_v38 = vld [vmem:[%s9686_s1 + $0x4] ss:$8 sps:$4 sm:$0xff]  }
 0x1a3   :  { %1693 = vmatprep.mubr.bf16.mxu0 %v9698_v1  ;;  %6565 = vmatprep.subr.bf16.mxu1 %v7601_v38  ;;  %v7404_v38 = vld [vmem:[%s9687_s0 + $0x80] sm:$0xff]  }
 0x1aa   :  { %1694 = vmatmul.mubr.bf16.gmra.mrb[100].mxu0 %v7313_v42  ;;  %v7602_v42 = vld [vmem:[%s9687_s0 + $0x8] sm:$0xff]  }
 0x1ab   :  { %1703 = vmatprep.mubr.bf16.mxu0 %v9698_v1  ;;  %411 = vmatmul.mubr.bf16.vlgmr.msra.gmra.mrb[0].mxu1 %v7602_v42 }
 0x1ac   :  { %420 = vmatprep.mubr.bf16.mxu1 %v9698_v1 }
 0x1b2   :  { %1704 = vmatmul.mubr.bf16.gmra.mrb[104].mxu0 %v7314_v58  ;;  %v7386_v58 = vld [vmem:[%s9686_s1 + $0x270] ss:$8 sps:$4 sm:$0xff]  }
 0x1b3   :  { %1713 = vmatprep.mubr.bf16.mxu0 %v9698_v1 }
 0x1ba   :  { %1714 = vmatmul.mubr.bf16.gmra.mrb[108].mxu0 %v7315_v59  ;;  %v7388_v59 = vld [vmem:[%s9686_s1 + $0x274] ss:$8 sps:$4 sm:$0xff]  }
 0x1bb   :  { %2189 = vmatprep.mubr.bf16.mxu0 %v9698_v1 }
 0x1c2   :  { %2190 = vmatmul.mubr.bf16.vlgmr.msra.gmra.mrb[0].mxu0 %v7316_v60  ;;  %v7603_v60 = vld [vmem:[%s9686_s1] ss:$8 sps:$4 sm:$0xff]  }
 0x1c3   :  { %2904 = vmatpush1.bf16.msra.mxu0 %v7317_v61  ;;  %2199 = vmatprep.mubr.bf16.mxu0 %v9698_v1  ;;  %v7604_v61 = vld [vmem:[%s9686_s1 + $0x14] ss:$8 sps:$4 sm:$0xff]  }
 0x1c4   :  { %2905 = vmatprep.subr.bf16.mxu0 %v7325_v62  ;;  %6573 = vmatpush1.bf16.msra.mxu1 %v7603_v60  ;;  %v7334_v62 = vld [vmem:[%s9687_s0 + $0x60] sm:$0xff]   ;;  %v7430_v60 = vld [vmem:[%s9688_s3 + $0x94] ss:$8 sps:$4 sm:$0xff]  }
 0x1c5   :  { %6566 = vmatprep.subr.bf16.mxu1 %v7604_v61  ;;  %v7428_v61 = vld [vmem:[%s9688_s3 + $0x90] ss:$8 sps:$4 sm:$0xff]  }
 0x1c7   :  { %2906 = vmatpush1.bf16.msra.mxu0 %v7323_v63  ;;  %v7605_v63 = vld [vmem:[%s9686_s1 + $0x10] ss:$8 sps:$4 sm:$0xff]  }
 0x1c8   :  { %2907 = vmatprep.subr.bf16.mxu0 %v7332_v0  ;;  %6574 = vmatpush1.bf16.msra.mxu1 %v7605_v63  ;;  %v7606_v0 = vld [vmem:[%s9686_s1 + $0x24] ss:$8 sps:$4 sm:$0xff]  }
 0x1c9   :  { %6567 = vmatprep.subr.bf16.mxu1 %v7606_v0  ;;  %v7433_v0 = vld [vmem:[%s9688_s3 + $0xa4] ss:$8 sps:$4 sm:$0xff]  }
 0x1ca   :  { %2200 = vmatmul.mubr.bf16.gmra.mrb[4].mxu0 %v7320_v2  ;;  %v7607_v2 = vld [vmem:[%s9687_s0 + $0x10] sm:$0xff]  }
 0x1cb   :  { %2209 = vmatprep.mubr.bf16.mxu0 %v9698_v1  ;;  %2908 = vmatpush1.bf16.msra.mxu0 %v7330_v3  ;;  %v7608_v3 = vld [vmem:[%s9686_s1 + $0x20] ss:$8 sps:$4 sm:$0xff]  }
 0x1cc   :  { %2909 = vmatprep.subr.bf16.mxu0 %v7338_v4  ;;  %421 = vmatmul.mubr.bf16.gmra.mrb[4].mxu1 %v7607_v2  ;;  %v7609_v4 = vld [vmem:[%s9686_s1 + $0x34] ss:$8 sps:$4 sm:$0xff]   ;;  %v7405_v2 = vld [vmem:[%s9687_s0 + $0x88] sm:$0xff]  }
 0x1cd   :  { %430 = vmatprep.mubr.bf16.mxu1 %v9698_v1  ;;  %6575 = vmatpush1.bf16.msra.mxu1 %v7608_v3 }
 0x1ce   :  { %6568 = vmatprep.subr.bf16.mxu1 %v7609_v4  ;;  %v7431_v4 = vld [vmem:[%s9688_s3 + $0xa0] ss:$8 sps:$4 sm:$0xff]  }
 0x1cf   :  { %2910 = vmatpush1.bf16.msra.mxu0 %v7336_v5  ;;  %v7335_v5 = vld [vmem:[%s9687_s0 + $0x68] sm:$0xff]  }
 0x1d0   :  { %2911 = vmatprep.subr.bf16.mxu0 %v7345_v6  ;;  %v7610_v6 = vld [vmem:[%s9686_s1 + $0x30] ss:$8 sps:$4 sm:$0xff]  }
 0x1d1   :  { %6576 = vmatpush1.bf16.msra.mxu1 %v7610_v6  ;;  %v7436_v6 = vld [vmem:[%s9688_s3 + $0xb4] ss:$8 sps:$4 sm:$0xff]  }
 0x1d2   :  { %2210 = vmatmul.mubr.bf16.gmra.mrb[8].mxu0 %v7321_v7  ;;  %v7611_v7 = vld [vmem:[%s9686_s1 + $0x44] ss:$8 sps:$4 sm:$0xff]  }
 0x1d3   :  { %2219 = vmatprep.mubr.bf16.mxu0 %v9698_v1  ;;  %2912 = vmatpush1.bf16.msra.mxu0 %v7343_v8  ;;  %v7612_v8 = vld [vmem:[%s9686_s1 + $0x40] ss:$8 sps:$4 sm:$0xff]  }
 0x1d4   :  { %2913 = vmatprep.subr.bf16.mxu0 %v7351_v9  ;;  %6569 = vmatprep.subr.bf16.mxu1 %v7611_v7  ;;  %v7613_v9 = vld [vmem:[%s9686_s1 + $0x54] ss:$8 sps:$4 sm:$0xff]   ;;  %v7434_v7 = vld [vmem:[%s9688_s3 + $0xb0] ss:$8 sps:$4 sm:$0xff]  }
 0x1d5   :  { %431 = vmatmul.mubr.bf16.gmra.mrb[8].mxu1 %v7786_v33  ;;  %v7614_v33 = vld [vmem:[%s9686_s1 + $0x50] ss:$8 sps:$4 sm:$0xff]  }
 0x1d6   :  { %440 = vmatprep.mubr.bf16.mxu1 %v9698_v1  ;;  %6577 = vmatpush1.bf16.msra.mxu1 %v7612_v8 }
 0x1d7   :  { %2914 = vmatpush1.bf16.msra.mxu0 %v7349_v10  ;;  %6570 = vmatprep.subr.bf16.mxu1 %v7613_v9  ;;  %v7339_v10 = vld [vmem:[%s9687_s0 + $0x70] sm:$0xff]  }
 0x1d8   :  { %2915 = vmatprep.subr.bf16.mxu0 %v7366_v21  ;;  %v7417_v21 = vld [vmem:[%s9687_s0 + $0xd8] sm:$0xff]  }
 0x1da   :  { %2220 = vmatmul.mubr.bf16.gmra.mrb[12].mxu0 %v7322_v11  ;;  %6578 = vmatpush1.bf16.msra.mxu1 %v7614_v33  ;;  %v7615_v11 = vld [vmem:[%s9686_s1 + $0x64] ss:$8 sps:$4 sm:$0xff]   ;;  %v7406_v33 = vld [vmem:[%s9687_s0 + $0x90] sm:$0xff]  }
 0x1db   :  { %2229 = vmatprep.mubr.bf16.mxu0 %v9698_v1  ;;  %2916 = vmatpush1.bf16.msra.mxu0 %v7364_v20  ;;  %v7398_v20 = vld [vmem:[%s9687_s0 + $0x50] sm:$0xff]  }
 0x1dc   :  { %2917 = vmatprep.subr.bf16.mxu0 %v7388_v59  ;;  %6571 = vmatprep.subr.bf16.mxu1 %v7615_v11 }
 0x1dd   :  { %441 = vmatmul.mubr.bf16.gmra.mrb[12].mxu1 %v7796_v35  ;;  %v7618_v35 = vld [vmem:[%s9686_s1 + $0x70] ss:$8 sps:$4 sm:$0xff]  }
 0x1de   :  { %450 = vmatprep.mubr.bf16.mxu1 %v9698_v1  ;;  %6579 = vmatpush1.bf16.msra.mxu1 %v7616_v12  ;;  %v7437_v12 = vld [vmem:[%s9688_s3 + $0xc0] ss:$8 sps:$4 sm:$0xff]  }
 0x1df   :  { %2918 = vmatpush1.bf16.msra.mxu0 %v7386_v58  ;;  %v7425_v58 = vld [vmem:[%s9688_s3 + $0x80] ss:$8 sps:$4 sm:$0xff]  }
 0x1e2   :  { %2230 = vmatmul.mubr.bf16.gmra.mrb[16].mxu0 %v7326_v13  ;;  %v7617_v13 = vld [vmem:[%s9686_s1 + $0x74] ss:$8 sps:$4 sm:$0xff]  }
 0x1e3   :  { %2239 = vmatprep.mubr.bf16.mxu0 %v9698_v1  ;;  %6572 = vmatprep.subr.bf16.mxu1 %v7617_v13 }
 0x1e4   :  { %6580 = vmatpush1.bf16.msra.mxu1 %v7618_v35  ;;  %v7440_v35 = vld [vmem:[%s9688_s3 + $0xd0] ss:$8 sps:$4 sm:$0xff]  }
 0x1e5   :  { %451 = vmatmul.mubr.bf16.gmra.mrb[16].mxu1 %v7803_v36  ;;  %v7346_v36 = vld [vmem:[%s9687_s0 + $0x90] sm:$0xff]  }
 0x1e6   :  { %460 = vmatprep.mubr.bf16.mxu1 %v9698_v1 }
 0x1ea   :  { %2240 = vmatmul.mubr.bf16.gmra.mrb[20].mxu0 %v7327_v18  ;;  %v7397_v18 = vld [vmem:[%s9687_s0 + $0x48] sm:$0xff]  }
 0x1eb   :  { %2249 = vmatprep.mubr.bf16.mxu0 %v9698_v1 }
 0x1ed   :  { %461 = vmatmul.mubr.bf16.gmra.mrb[20].mxu1 %v7816_v39  ;;  %v7347_v39 = vld [vmem:[%s9687_s0 + $0x98] sm:$0xff]  }
 0x1ee   :  { %470 = vmatprep.mubr.bf16.mxu1 %v9698_v1 }
 0x1f2   :  { %2250 = vmatmul.mubr.bf16.gmra.mrb[24].mxu0 %v7328_v25  ;;  %v7401_v25 = vld [vmem:[%s9687_s0 + $0x68] sm:$0xff]  }
 0x1f3   :  { %2259 = vmatprep.mubr.bf16.mxu0 %v9698_v1 }
 0x1f5   :  { %471 = vmatmul.mubr.bf16.gmra.mrb[24].mxu1 %v7823_v40  ;;  %v7348_v40 = vld [vmem:[%s9687_s0 + $0xa0] sm:$0xff]  }
 0x1f6   :  { %480 = vmatprep.mubr.bf16.mxu1 %v9698_v1 }
 0x1fa   :  { %2260 = vmatmul.mubr.bf16.gmra.mrb[28].mxu0 %v7329_v30 }
 0x1fb   :  { %2269 = vmatprep.mubr.bf16.mxu0 %v9698_v1 }
 0x1fd   :  { %481 = vmatmul.mubr.bf16.gmra.mrb[28].mxu1 %v7830_v41  ;;  %v7352_v41 = vld [vmem:[%s9687_s0 + $0xa8] sm:$0xff]  }
 0x1fe   :  { %490 = vmatprep.mubr.bf16.mxu1 %v9698_v1 }
 0x202   :  { %2270 = vmatmul.mubr.bf16.gmra.mrb[32].mxu0 %v7333_v37  ;;  %v7427_v37 = vld [vmem:[%s9688_s3 + $0x84] ss:$8 sps:$4 sm:$0xff]  }
 0x203   :  { %2279 = vmatprep.mubr.bf16.mxu0 %v9698_v1  ;;  %3775 = vmatprep.subr.bf16.mxu1 %v7427_v37 }
 0x205   :  { %491 = vmatmul.mubr.bf16.gmra.mrb[32].mxu1 %v7840_v43  ;;  %v7353_v43 = vld [vmem:[%s9687_s0 + $0xb0] sm:$0xff]  }
 0x206   :  { %500 = vmatprep.mubr.bf16.mxu1 %v9698_v1 }
 0x20a   :  { %2280 = vmatmul.mubr.bf16.gmra.mrb[36].mxu0 %v7334_v62 }
 0x20b   :  { %2289 = vmatprep.mubr.bf16.mxu0 %v9698_v1 }
 0x20d   :  { %501 = vmatmul.mubr.bf16.gmra.mrb[36].mxu1 %v7847_v44  ;;  %v7356_v44 = vld [vmem:[%s9687_s0 + $0xb8] sm:$0xff]  }
 0x20e   :  { %510 = vmatprep.mubr.bf16.mxu1 %v9698_v1 }
 0x212   :  { %2290 = vmatmul.mubr.bf16.gmra.mrb[40].mxu0 %v7335_v5 }
 0x213   :  { %2299 = vmatprep.mubr.bf16.mxu0 %v9698_v1 }
 0x215   :  { %511 = vmatmul.mubr.bf16.gmra.mrb[40].mxu1 %v7854_v45  ;;  %v7363_v45 = vld [vmem:[%s9687_s0 + $0xc0] sm:$0xff]  }
 0x216   :  { %520 = vmatprep.mubr.bf16.mxu1 %v9698_v1 }
 0x21a   :  { %2300 = vmatmul.mubr.bf16.gmra.mrb[44].mxu0 %v7339_v10  ;;  %v7439_v10 = vld [vmem:[%s9688_s3 + $0xc4] ss:$8 sps:$4 sm:$0xff]  }
 0x21b   :  { %2309 = vmatprep.mubr.bf16.mxu0 %v9698_v1 }
 0x21d   :  { %521 = vmatmul.mubr.bf16.gmra.mrb[44].mxu1 %v7861_v46  ;;  %v7373_v46 = vld [vmem:[%s9687_s0 + $0xc8] sm:$0xff]  }
 0x21e   :  { %530 = vmatprep.mubr.bf16.mxu1 %v9698_v1 }
 0x222   :  { %2310 = vmatmul.mubr.bf16.gmra.mrb[48].mxu0 %v7340_v14  ;;  %v7442_v14 = vld [vmem:[%s9688_s3 + $0xd4] ss:$8 sps:$4 sm:$0xff]  }
 0x223   :  { %2319 = vmatprep.mubr.bf16.mxu0 %v9698_v1 }
 0x225   :  { %531 = vmatmul.mubr.bf16.gmra.mrb[48].mxu1 %v7868_v47  ;;  %v7380_v47 = vld [vmem:[%s9687_s0 + $0xd0] sm:$0xff]  }
 0x226   :  { %540 = vmatprep.mubr.bf16.mxu1 %v9698_v1 }
 0x22a   :  { %2320 = vmatmul.mubr.bf16.gmra.mrb[52].mxu0 %v7341_v15 }
 0x22b   :  { %2329 = vmatprep.mubr.bf16.mxu0 %v9698_v1 }
 0x22d   :  { %541 = vmatmul.mubr.bf16.gmra.mrb[52].mxu1 %v7875_v48  ;;  %v7385_v48 = vld [vmem:[%s9687_s0 + $0xd8] sm:$0xff]  }
 0x22e   :  { %550 = vmatprep.mubr.bf16.mxu1 %v9698_v1 }
 0x232   :  { %2330 = vmatmul.mubr.bf16.gmra.mrb[56].mxu0 %v7342_v16 }
 0x233   :  { %2339 = vmatprep.mubr.bf16.mxu0 %v9698_v1 }
 0x235   :  { %551 = vmatmul.mubr.bf16.gmra.mrb[56].mxu1 %v7882_v49  ;;  %v7389_v49 = vld [vmem:[%s9687_s0 + $0xe0] sm:$0xff]  }
 0x236   :  { %560 = vmatprep.mubr.bf16.mxu1 %v9698_v1 }
 0x23a   :  { %2340 = vmatmul.mubr.bf16.gmra.mrb[60].mxu0 %v7346_v36  ;;  %v7445_v36 = vld [vmem:[%s9688_s3 + $0xe4] ss:$8 sps:$4 sm:$0xff]  }
 0x23b   :  { %2349 = vmatprep.mubr.bf16.mxu0 %v9698_v1 }
 0x23d   :  { %561 = vmatmul.mubr.bf16.gmra.mrb[60].mxu1 %v7889_v50  ;;  %v7390_v50 = vld [vmem:[%s9687_s0 + $0xe8] sm:$0xff]  }
 0x23e   :  { %570 = vmatprep.mubr.bf16.mxu1 %v9698_v1 }
 0x242   :  { %2350 = vmatmul.mubr.bf16.gmra.mrb[64].mxu0 %v7347_v39  ;;  %v7407_v39 = vld [vmem:[%s9687_s0 + $0x98] sm:$0xff]  }
 0x243   :  { %2359 = vmatprep.mubr.bf16.mxu0 %v9698_v1 }
 0x245   :  { %571 = vmatmul.mubr.bf16.gmra.mrb[64].mxu1 %v7896_v51  ;;  %v7391_v51 = vld [vmem:[%s9687_s0 + $0xf0] sm:$0xff]  }
 0x246   :  { %580 = vmatprep.mubr.bf16.mxu1 %v9698_v1 }
 0x24a   :  { %2360 = vmatmul.mubr.bf16.gmra.mrb[68].mxu0 %v7348_v40 }
 0x24b   :  { %2369 = vmatprep.mubr.bf16.mxu0 %v9698_v1 }
 0x24d   :  { %581 = vmatmul.mubr.bf16.gmra.mrb[68].mxu1 %v7903_v52  ;;  %v7392_v52 = vld [vmem:[%s9687_s0 + $0x20] sm:$0xff]  }
 0x24e   :  { %590 = vmatprep.mubr.bf16.mxu1 %v9698_v1 }
 0x252   :  { %2370 = vmatmul.mubr.bf16.gmra.mrb[72].mxu0 %v7352_v41  ;;  %v7443_v41 = vld [vmem:[%s9688_s3 + $0xe0] ss:$8 sps:$4 sm:$0xff]  }
 0x253   :  { %2379 = vmatprep.mubr.bf16.mxu0 %v9698_v1 }
 0x255   :  { %591 = vmatmul.mubr.bf16.gmra.mrb[72].mxu1 %v7910_v53  ;;  %v7393_v53 = vld [vmem:[%s9687_s0 + $0x28] sm:$0xff]  }
 0x256   :  { %600 = vmatprep.mubr.bf16.mxu1 %v9698_v1 }
 0x25a   :  { %2380 = vmatmul.mubr.bf16.gmra.mrb[76].mxu0 %v7353_v43 }
 0x25b   :  { %2389 = vmatprep.mubr.bf16.mxu0 %v9698_v1 }
 0x25d   :  { %601 = vmatmul.mubr.bf16.gmra.mrb[76].mxu1 %v7917_v54  ;;  %v7394_v54 = vld [vmem:[%s9687_s0 + $0x30] sm:$0xff]  }
 0x25e   :  { %610 = vmatprep.mubr.bf16.mxu1 %v9698_v1 }
 0x262   :  { %2390 = vmatmul.mubr.bf16.gmra.mrb[80].mxu0 %v7356_v44  ;;  %v7448_v44 = vld [vmem:[%s9688_s3 + $0xf4] ss:$8 sps:$4 sm:$0xff]  }
 0x263   :  { %2399 = vmatprep.mubr.bf16.mxu0 %v9698_v1 }
 0x265   :  { %611 = vmatmul.mubr.bf16.gmra.mrb[80].mxu1 %v7924_v55  ;;  %v7395_v55 = vld [vmem:[%s9687_s0 + $0x38] sm:$0xff]  }
 0x266   :  { %620 = vmatprep.mubr.bf16.mxu1 %v9698_v1 }
 0x26a   :  { %2400 = vmatmul.mubr.bf16.gmra.mrb[84].mxu0 %v7363_v45  ;;  %v7446_v45 = vld [vmem:[%s9688_s3 + $0xf0] ss:$8 sps:$4 sm:$0xff]  }
 0x26b   :  { %2409 = vmatprep.mubr.bf16.mxu0 %v9698_v1 }
 0x26d   :  { %621 = vmatmul.mubr.bf16.gmra.mrb[84].mxu1 %v7931_v56  ;;  %v7411_v56 = vld [vmem:[%s9687_s0 + $0xc0] sm:$0xff]  }
 0x26e   :  { %630 = vmatprep.mubr.bf16.mxu1 %v9698_v1 }
 0x272   :  { %2410 = vmatmul.mubr.bf16.gmra.mrb[88].mxu0 %v7373_v46 }
 0x273   :  { %2419 = vmatprep.mubr.bf16.mxu0 %v9698_v1 }
 0x275   :  { %631 = vmatmul.mubr.bf16.gmra.mrb[88].mxu1 %v7938_v57  ;;  %v7396_v57 = vld [vmem:[%s9687_s0 + $0x40] sm:$0xff]  }
 0x276   :  { %640 = vmatprep.mubr.bf16.mxu1 %v9698_v1 }
 0x27a   :  { %2420 = vmatmul.mubr.bf16.gmra.mrb[92].mxu0 %v7380_v47 }
 0x27b   :  { %2429 = vmatprep.mubr.bf16.mxu0 %v9698_v1 }
 0x27d   :  { %641 = vmatmul.mubr.bf16.gmra.mrb[92].mxu1 %v7411_v56 }
 0x27e   :  { %650 = vmatprep.mubr.bf16.mxu1 %v9698_v1  ;;  %v8470_v27 = vpop.f32.mrb[0].mxu1 }
 0x27f   :  { %v8473_v28 = vpop.f32.mrb[1].mxu1 }
 0x280   :  { %v8476_v29 = vpop.f32.mrb[2].mxu1 }
 0x281   :  { %v8478_v30 = vpop.f32.mrb[3].mxu1 }
 0x282   :  { %2430 = vmatmul.mubr.bf16.gmra.mrb[96].mxu0 %v7385_v48 }
 0x283   :  { %2439 = vmatprep.mubr.bf16.mxu0 %v9698_v1 }
 0x285   :  { %651 = vmatmul.mubr.bf16.gmra.mrb[96].mxu1 %v7413_v17 }
 0x286   :  { %660 = vmatprep.mubr.bf16.mxu1 %v9698_v1 }
 0x28a   :  { %2440 = vmatmul.mubr.bf16.gmra.mrb[100].mxu0 %v7389_v49 }
 0x28b   :  { %2449 = vmatprep.mubr.bf16.mxu0 %v9698_v1 }
 0x28d   :  { %661 = vmatmul.mubr.bf16.gmra.mrb[100].mxu1 %v7415_v19 }
 0x28e   :  { %670 = vmatprep.mubr.bf16.mxu1 %v9698_v1 }
 0x292   :  { %2450 = vmatmul.mubr.bf16.gmra.mrb[104].mxu0 %v7390_v50  ;;  %v7408_v50 = vld [vmem:[%s9687_s0 + $0xa0] sm:$0xff]  }
 0x293   :  { %2459 = vmatprep.mubr.bf16.mxu0 %v9698_v1 }
 0x295   :  { %671 = vmatmul.mubr.bf16.gmra.mrb[104].mxu1 %v7417_v21 }
 0x296   :  { %680 = vmatprep.mubr.bf16.mxu1 %v9698_v1 }
 0x29a   :  { %2460 = vmatmul.mubr.bf16.gmra.mrb[108].mxu0 %v7391_v51 }
 0x29b   :  { %2935 = vmatprep.mubr.bf16.mxu0 %v9698_v1 }
 0x29d   :  { %681 = vmatmul.mubr.bf16.gmra.mrb[108].mxu1 %v7419_v23 }
 0x29e   :  { %1049 = vmatprep.mubr.bf16.mxu1 %v9698_v1 }
 0x29f   :  { %v8483_v32 = vpop.f32.mrb[4].mxu1 }
 0x2a0   :  { %v8486_v34 = vpop.f32.mrb[5].mxu1 }
 0x2a1   :  { %v8495_v42 = vpop.f32.mrb[6].mxu1 }
 0x2a2   :  { %2936 = vmatmul.mubr.bf16.vlgmr.msra.gmra.mrb[0].mxu0 %v7392_v52  ;;  %v8500_v59 = vpop.f32.mrb[7].mxu1 }
 0x2a3   :  { %2945 = vmatprep.mubr.bf16.mxu0 %v9698_v1 }
 0x2a5   :  { %1050 = vmatmul.mubr.bf16.vlgmr.msra.gmra.mrb[96].mxu1 %v7411_v56 }
 0x2a6   :  { %1059 = vmatprep.mubr.bf16.mxu1 %v9698_v1  ;;  %3776 = vmatpush1.bf16.msra.mxu1 %v7425_v58 }
 0x2a7   :  { %3777 = vmatprep.subr.bf16.mxu1 %v7430_v60 }
 0x2a8   :  { %v8508_v62 = vpop.f32.mrb[8].mxu1 }
 0x2a9   :  { %v8511_v63 = vpop.f32.mrb[9].mxu1 }
 0x2aa   :  { %2946 = vmatmul.mubr.bf16.gmra.mrb[4].mxu0 %v7393_v53  ;;  %3778 = vmatpush1.bf16.msra.mxu1 %v7428_v61  ;;  %v8519_v3 = vpop.f32.mrb[10].mxu1 }
 0x2ab   :  { %2955 = vmatprep.mubr.bf16.mxu0 %v9698_v1  ;;  %3779 = vmatprep.subr.bf16.mxu1 %v7433_v0  ;;  %v8524_v5 = vpop.f32.mrb[11].mxu1 }
 0x2ad   :  { %1060 = vmatmul.mubr.bf16.gmra.mrb[100].mxu1 %v7413_v17 }
 0x2ae   :  { %1069 = vmatprep.mubr.bf16.mxu1 %v9698_v1  ;;  %3780 = vmatpush1.bf16.msra.mxu1 %v7431_v4 }
 0x2af   :  { %3781 = vmatprep.subr.bf16.mxu1 %v7436_v6 }
 0x2b0   :  { %v8532_v8 = vpop.f32.mrb[12].mxu1 }
 0x2b1   :  { %v8535_v9 = vpop.f32.mrb[13].mxu1 }
 0x2b2   :  { %2956 = vmatmul.mubr.bf16.gmra.mrb[8].mxu0 %v7394_v54  ;;  %3782 = vmatpush1.bf16.msra.mxu1 %v7434_v7  ;;  %v8543_v11 = vpop.f32.mrb[14].mxu1 }
 0x2b3   :  { %2965 = vmatprep.mubr.bf16.mxu0 %v9698_v1  ;;  %3783 = vmatprep.subr.bf16.mxu1 %v7439_v10  ;;  %v8548_v13 = vpop.f32.mrb[15].mxu1 }
 0x2b5   :  { %1070 = vmatmul.mubr.bf16.gmra.mrb[104].mxu1 %v7415_v19  ;;  %v7410_v19 = vld [vmem:[%s9687_s0 + $0xb0] sm:$0xff]  }
 0x2b6   :  { %1079 = vmatprep.mubr.bf16.mxu1 %v9698_v1  ;;  %3784 = vmatpush1.bf16.msra.mxu1 %v7437_v12 }
 0x2b7   :  { %3785 = vmatprep.subr.bf16.mxu1 %v7442_v14 }
 0x2b8   :  { %v8556_v15 = vpop.f32.mrb[16].mxu1 }
 0x2b9   :  { %v8559_v16 = vpop.f32.mrb[17].mxu1 }
 0x2ba   :  { %2966 = vmatmul.mubr.bf16.gmra.mrb[12].mxu0 %v7395_v55  ;;  %3786 = vmatpush1.bf16.msra.mxu1 %v7440_v35  ;;  %v8567_v40 = vpop.f32.mrb[18].mxu1  ;;  %v7409_v55 = vld [vmem:[%s9687_s0 + $0xa8] sm:$0xff]  }
 0x2bb   :  { %2975 = vmatprep.mubr.bf16.mxu0 %v9698_v1  ;;  %3787 = vmatprep.subr.bf16.mxu1 %v7445_v36  ;;  %v8572_v43 = vpop.f32.mrb[19].mxu1 }
 0x2bd   :  { %1080 = vmatmul.mubr.bf16.gmra.mrb[108].mxu1 %v7417_v21 }
 0x2be   :  { %3807 = vmatprep.mubr.bf16.mxu1 %v9698_v1  ;;  %3788 = vmatpush1.bf16.msra.mxu1 %v7443_v41 }
 0x2bf   :  { %3789 = vmatprep.subr.bf16.mxu1 %v7448_v44 }
 0x2c0   :  { %v8580_v46 = vpop.f32.mrb[20].mxu1 }
 0x2c1   :  { %v8583_v47 = vpop.f32.mrb[21].mxu1 }
 0x2c2   :  { %2976 = vmatmul.mubr.bf16.gmra.mrb[16].mxu0 %v7396_v57  ;;  %3790 = vmatpush1.bf16.msra.mxu1 %v7446_v45  ;;  %v8585_v48 = vpop.f32.mrb[22].mxu1 }
 0x2c3   :  { %2985 = vmatprep.mubr.bf16.mxu0 %v9698_v1  ;;  %v8587_v49 = vpop.f32.mrb[23].mxu1 }
 0x2c8   :  { %v8592_v51 = vpop.f32.mrb[24].mxu1 }
 0x2c9   :  { %v8595_v52 = vpop.f32.mrb[25].mxu1 }
 0x2ca   :  { %2986 = vmatmul.mubr.bf16.gmra.mrb[20].mxu0 %v7397_v18  ;;  %v8597_v53 = vpop.f32.mrb[26].mxu1 }
 0x2cb   :  { %2995 = vmatprep.mubr.bf16.mxu0 %v9698_v1  ;;  %v8599_v54 = vpop.f32.mrb[27].mxu1 }
 0x2d0   :  { %v8604_v56 = vpop.f32.mrb[28].mxu1 }
 0x2d1   :  { %v8607_v57 = vpop.f32.mrb[29].mxu1 }
 0x2d2   :  { %2996 = vmatmul.mubr.bf16.gmra.mrb[24].mxu0 %v7398_v20  ;;  %v8609_v17 = vpop.f32.mrb[30].mxu1 }
 0x2d3   :  { %3005 = vmatprep.mubr.bf16.mxu0 %v9698_v1  ;;  %v8611_v18 = vpop.f32.mrb[31].mxu1 }
 0x2d8   :  { %v8616_v20 = vpop.f32.mrb[32].mxu1 }
 0x2d9   :  { %v8619_v21 = vpop.f32.mrb[33].mxu1 }
 0x2da   :  { %3006 = vmatmul.mubr.bf16.gmra.mrb[28].mxu0 %v7399_v22  ;;  %v8621_v22 = vpop.f32.mrb[34].mxu1 }
 0x2db   :  { %3015 = vmatprep.mubr.bf16.mxu0 %v9698_v1  ;;  %v8623_v23 = vpop.f32.mrb[35].mxu1 }
 0x2e2   :  { %3016 = vmatmul.mubr.bf16.gmra.mrb[32].mxu0 %v7400_v24  ;;  %v7412_v24 = vld [vmem:[%s9687_s0 + $0xb8] sm:$0xff]  }
 0x2e3   :  { %3025 = vmatprep.mubr.bf16.mxu0 %v9698_v1 }
 0x2ea   :  { %3026 = vmatmul.mubr.bf16.gmra.mrb[36].mxu0 %v7401_v25  ;;  %v8628_v25 = vpop.f32.mrb[36].mxu1 }
 0x2eb   :  { %3035 = vmatprep.mubr.bf16.mxu0 %v9698_v1 }
 0x2f2   :  { %3036 = vmatmul.mubr.bf16.gmra.mrb[40].mxu0 %v7402_v26  ;;  %v8631_v26 = vpop.f32.mrb[37].mxu1 }
 0x2f3   :  { %3045 = vmatprep.mubr.bf16.mxu0 %v9698_v1 }
 0x2fa   :  { %3046 = vmatmul.mubr.bf16.gmra.mrb[44].mxu0 %v7403_v31  ;;  %v8633_v31 = vpop.f32.mrb[38].mxu1 }
 0x2fb   :  { %3055 = vmatprep.mubr.bf16.mxu0 %v9698_v1  ;;  %v8635_v37 = vpop.f32.mrb[39].mxu1 }
 0x2fc   :  { %v8640_v58 = vpop.f32.mrb[40].mxu1 }
 0x2fd   :  { %v8643_v60 = vpop.f32.mrb[41].mxu1 }
 0x2fe   :  { %v8645_v61 = vpop.f32.mrb[42].mxu1 }
 0x2ff   :  { %v8647_v0 = vpop.f32.mrb[43].mxu1 }
 0x300   :  { %v8652_v4 = vpop.f32.mrb[44].mxu1 }
 0x301   :  { %v8655_v6 = vpop.f32.mrb[45].mxu1 }
 0x302   :  { %3056 = vmatmul.mubr.bf16.gmra.mrb[48].mxu0 %v7404_v38  ;;  %v7414_v38 = vld [vmem:[%s9687_s0 + $0xc0] sm:$0xff]   ;;  %v8657_v7 = vpop.f32.mrb[46].mxu1 }
 0x303   :  { %3065 = vmatprep.mubr.bf16.mxu0 %v9698_v1  ;;  %9712 = vst [vmem:[#allocation2_spill] sm:$0xff] %v8657_v7  ;;  %v8659_v10 = vpop.f32.mrb[47].mxu1 }
 0x304   :  { %9713 = vst [vmem:[#allocation3_spill] sm:$0xff] %v8659_v10  ;;  %v8664_v12 = vpop.f32.mrb[48].mxu1 }
 0x305   :  { %9714 = vst [vmem:[#allocation4_spill] sm:$0xff] %v8664_v12  ;;  %v8667_v14 = vpop.f32.mrb[49].mxu1 }
 0x306   :  { %9715 = vst [vmem:[#allocation5_spill] sm:$0xff] %v8667_v14  ;;  %v8669_v35 = vpop.f32.mrb[50].mxu1 }
 0x307   :  { %9716 = vst [vmem:[#allocation6_spill] sm:$0xff] %v8669_v35  ;;  %v8671_v36 = vpop.f32.mrb[51].mxu1 }
 0x308   :  { %9717 = vst [vmem:[#allocation7_spill] sm:$0xff] %v8671_v36  ;;  %v8676_v41 = vpop.f32.mrb[52].mxu1 }
 0x309   :  { %9718 = vst [vmem:[#allocation8_spill] sm:$0xff] %v8676_v41  ;;  %v8679_v44 = vpop.f32.mrb[53].mxu1 }
 0x30a   :  { %3066 = vmatmul.mubr.bf16.gmra.mrb[52].mxu0 %v7405_v2  ;;  %v7416_v2 = vld [vmem:[%s9687_s0 + $0xc8] sm:$0xff]   ;;  %9719 = vst [vmem:[#allocation9_spill] sm:$0xff] %v8679_v44  ;;  %v8681_v45 = vpop.f32.mrb[54].mxu1 }
 0x30b   :  { %3075 = vmatprep.mubr.bf16.mxu0 %v9698_v1  ;;  %9720 = vst [vmem:[#allocation10_spill] sm:$0xff] %v8681_v45 }
 0x312   :  { %3076 = vmatmul.mubr.bf16.gmra.mrb[56].mxu0 %v7406_v33  ;;  %v7418_v33 = vld [vmem:[%s9687_s0 + $0xd0] sm:$0xff]  }
 0x313   :  { %3085 = vmatprep.mubr.bf16.mxu0 %v9698_v1 }
 0x31a   :  { %3086 = vmatmul.mubr.bf16.gmra.mrb[60].mxu0 %v7407_v39  ;;  %v7420_v39 = vld [vmem:[%s9687_s0 + $0xd8] sm:$0xff]  }
 0x31b   :  { %3095 = vmatprep.mubr.bf16.mxu0 %v9698_v1 }
 0x322   :  { %3096 = vmatmul.mubr.bf16.gmra.mrb[64].mxu0 %v7408_v50  ;;  %v8683_v50 = vpop.f32.mrb[55].mxu1 }
 0x323   :  { %3105 = vmatprep.mubr.bf16.mxu0 %v9698_v1  ;;  %9721 = vst [vmem:[#allocation11_spill] sm:$0xff] %v8683_v50 }
 0x32a   :  { %3106 = vmatmul.mubr.bf16.gmra.mrb[68].mxu0 %v7409_v55  ;;  %v7421_v55 = vld [vmem:[%s9687_s0 + $0xe0] sm:$0xff]  }
 0x32b   :  { %3115 = vmatprep.mubr.bf16.mxu0 %v9698_v1 }
 0x332   :  { %3116 = vmatmul.mubr.bf16.gmra.mrb[72].mxu0 %v7410_v19  ;;  %v8688_v19 = vpop.f32.mrb[56].mxu1 }
 0x333   :  { %3125 = vmatprep.mubr.bf16.mxu0 %v9698_v1  ;;  %9722 = vst [vmem:[#allocation12_spill] sm:$0xff] %v8688_v19 }
 0x33a   :  { %3126 = vmatmul.mubr.bf16.gmra.mrb[76].mxu0 %v7412_v24  ;;  %v8691_v24 = vpop.f32.mrb[57].mxu1 }
 0x33b   :  { %3135 = vmatprep.mubr.bf16.mxu0 %v9698_v1  ;;  %9723 = vst [vmem:[#allocation13_spill] sm:$0xff] %v8691_v24 }
 0x342   :  { %3136 = vmatmul.mubr.bf16.gmra.mrb[80].mxu0 %v7414_v38  ;;  %v8693_v38 = vpop.f32.mrb[58].mxu1 }
 0x343   :  { %3145 = vmatprep.mubr.bf16.mxu0 %v9698_v1  ;;  %9724 = vst [vmem:[#allocation14_spill] sm:$0xff] %v8693_v38 }
 0x34a   :  { %3146 = vmatmul.mubr.bf16.gmra.mrb[84].mxu0 %v7416_v2  ;;  %v8695_v2 = vpop.f32.mrb[59].mxu1 }
 0x34b   :  { %3155 = vmatprep.mubr.bf16.mxu0 %v9698_v1  ;;  %9725 = vst [vmem:[#allocation15_spill] sm:$0xff] %v8695_v2  ;;  %v8700_v50 = vpop.f32.mrb[60].mxu1 }
 0x34c   :  { %9726 = vst [vmem:[#allocation16_spill] sm:$0xff] %v8700_v50  ;;  %v8706_v19 = vpop.f32.mrb[61].mxu1 }
 0x34d   :  { %9727 = vst [vmem:[#allocation17_spill] sm:$0xff] %v8706_v19  ;;  %v8710_v38 = vpop.f32.mrb[62].mxu1  ;;  %v9732_v19 = vmov 0  }
 0x34e   :  { %9729 = vst [vmem:[#allocation19_spill] sm:$0xff] %v8710_v38  ;;  %v8712_v2 = vpop.f32.mrb[63].mxu1 }
 0x34f   :  { %9730 = vst [vmem:[#allocation20_spill] sm:$0xff] %v8712_v2 }
 0x352   :  { %3156 = vmatmul.mubr.bf16.gmra.mrb[88].mxu0 %v7418_v33  ;;  %v7422_v33 = vld [vmem:[%s9687_s0 + $0xe8] sm:$0xff]  }
 0x353   :  { %3165 = vmatprep.mubr.bf16.mxu0 %v9698_v1 }
 0x35a   :  { %3166 = vmatmul.mubr.bf16.gmra.mrb[92].mxu0 %v7420_v39  ;;  %v3330_v39 = vlaneseq }
 0x35b   :  { %3175 = vmatprep.mubr.bf16.mxu0 %v9698_v1 }
 0x35c   :  { %v8708_v24 = vshrl.u32 %v3330_v39, 7  ;;  %v8722_v39 = vpop.f32.mrb[64].mxu1 }
 0x35d   :  { %9731 = vst [vmem:[#allocation21_spill] sm:$0xff] %v8722_v39 }
 0x35e   :  { %9728 = vst [vmem:[#allocation18_spill] sm:$0xff] %v8708_v24  ;;  %v9700_v50 = vsub.s32 0, %v8708_v24  ;;  %v9701_v45 = vsub.s32 1, %v8708_v24 }
 0x362   :  { %3176 = vmatmul.mubr.bf16.gmra.mrb[96].mxu0 %v7421_v55  ;;  %v7451_v55 = vld [vmem:[%s9688_s3 + $0x4] ss:$8 sps:$4 sm:$0xff]  }
 0x363   :  { %3185 = vmatprep.mubr.bf16.mxu0 %v9698_v1  ;;  %3988 = vmatprep.subr.bf16.mxu1 %v7451_v55  ;;  %v8725_v55 = vpop.f32.mrb[65].mxu1 }
 0x364   :  { %9733 = vst [vmem:[#allocation22_spill] sm:$0xff] %v8725_v55  ;;  %v8731_v38 = vpop.f32.mrb[66].mxu1  ;;  %v7424_v55 = vld [vmem:[%s9687_s0 + $0xf8] sm:$0xff]  }
 0x365   :  { %9734 = vst [vmem:[#allocation23_spill] sm:$0xff] %v8731_v38  ;;  %v8737_v36 = vpop.f32.mrb[67].mxu1 }
 0x366   :  { %9735 = vst [vmem:[#allocation24_spill] sm:$0xff] %v8737_v36 }
 0x36a   :  { %3186 = vmatmul.mubr.bf16.gmra.mrb[100].mxu0 %v7422_v33  ;;  %v7423_v33 = vld [vmem:[%s9687_s0 + $0xf0] sm:$0xff]  }
 0x36b   :  { %3195 = vmatprep.mubr.bf16.mxu0 %v9698_v1  ;;  %v3328_v1 = vld [vmem:[%s9689_s2] sm:$0x3] }
 0x36c   :  { %v8729_v2 = vrot.slane %v3328_v1, %v9700_v50  ;;  %v8735_v41 = vrot.slane %v3328_v1, %v9701_v45 }
 0x372   :  { %3196 = vmatmul.mubr.bf16.gmra.mrb[104].mxu0 %v7423_v33 }
 0x373   :  { %3205 = vmatprep.mubr.bf16.mxu0 %v9732_v19 }
 0x375   :  { %v2937_v44 = vpop.f32.mrb[0].mxu0 }
 0x376   :  { %v6581_v33 = vadd.f32 %v2937_v44, %v8470_v27  ;;  %v2939_v39 = vpop.f32.mrb[1].mxu0  ;;  %v8749_v27 = vpop.f32.mrb[68].mxu1 }
 0x377   :  { %v6582_v35 = vadd.f32 %v2939_v39, %v8473_v28  ;;  %v2941_v50 = vpop.f32.mrb[2].mxu0  ;;  %9736 = vst [vmem:[#allocation25_spill] sm:$0xff] %v8749_v27  ;;  %v8752_v36 = vpop.f32.mrb[69].mxu1 }
 0x378   :  { %v3340_v14 = vadd.f32 %v6581_v33, %v8729_v2  ;;  %v6583_v38 = vadd.f32 %v2941_v50, %v8476_v29  ;;  %v2943_v12 = vpop.f32.mrb[3].mxu0  ;;  %9737 = vst [vmem:[#allocation26_spill] sm:$0xff] %v8752_v36  ;;  %v8754_v10 = vpop.f32.mrb[70].mxu1 }
 0x379   :  { %v3341_v1 = vadd.f32 %v6582_v35, %v8735_v41  ;;  %v6584_v45 = vadd.f32 %v2943_v12, %v8478_v30  ;;  %v8756_v7 = vpop.f32.mrb[71].mxu1 }
 0x37a   :  { %v3342_v24 = vadd.f32 %v6583_v38, %v8729_v2  ;;  %3206 = vmatmul.mubr.bf16.gmra.mrb[108].mxu0 %v7424_v55  ;;  %v3452_v28 = vmax.f32 %v3340_v14, 0.0  ;;  %9738 = vst [vmem:[#allocation27_spill] sm:$0xff] %v8756_v7 }
 0x37b   :  { %v3343_v44 = vadd.f32 %v6584_v45, %v8735_v41  ;;  %v3453_v33 = vmax.f32 %v3341_v1, 0.0 }
 0x37c   :  { %v3454_v39 = vmax.f32 %v3342_v24, 0.0 }
 0x37d   :  { %v3455_v29 = vmax.f32 %v3343_v44, 0.0  ;;  %v2947_v50 = vpop.f32.mrb[4].mxu0 }
 0x37e   :  { %v3564_v35 = vpack.c.bf16 %v3454_v39, %v3452_v28  ;;  %v6585_v30 = vadd.f32 %v2947_v50, %v8483_v32  ;;  %v2949_v12 = vpop.f32.mrb[5].mxu0  ;;  %v8765_v28 = vpop.f32.mrb[72].mxu1 }
 0x37f   :  { %v3565_v38 = vpack.c.bf16 %v3455_v29, %v3453_v33  ;;  %v6586_v55 = vadd.f32 %v2949_v12, %v8486_v34  ;;  %v2951_v27 = vpop.f32.mrb[6].mxu0  ;;  %v8768_v39 = vpop.f32.mrb[73].mxu1 }
 0x380   :  { %v3344_v45 = vadd.f32 %v6585_v30, %v8729_v2  ;;  %v6587_v14 = vadd.f32 %v2951_v27, %v8495_v42  ;;  %v2953_v24 = vpop.f32.mrb[7].mxu0  ;;  %v8770_v29 = vpop.f32.mrb[74].mxu1 }
 0x381   :  { %v3620_v36 = vmax.bf16 %v3565_v38, %v3564_v35  ;;  %v3345_v1 = vadd.f32 %v6586_v55, %v8735_v41  ;;  %v6588_v44 = vadd.f32 %v2953_v24, %v8500_v59  ;;  %v8772_v35 = vpop.f32.mrb[75].mxu1 }
 0x382   :  { %v3346_v7 = vadd.f32 %v6587_v14, %v8729_v2  ;;  %v3456_v34 = vmax.f32 %v3344_v45, 0.0  ;;  %9739 = vst [vmem:[#allocation28_spill] sm:$0xff] %v8772_v35 }
 0x383   :  { %v3347_v32 = vadd.f32 %v6588_v44, %v8735_v41  ;;  %v3457_v50 = vmax.f32 %v3345_v1, 0.0 }
 0x384   :  { %v3458_v33 = vmax.f32 %v3346_v7, 0.0 }
 0x385   :  { %v3459_v42 = vmax.f32 %v3347_v32, 0.0  ;;  %v2957_v27 = vpop.f32.mrb[8].mxu0 }
 0x386   :  { %v3566_v30 = vpack.c.bf16 %v3458_v33, %v3456_v34  ;;  %v6589_v59 = vadd.f32 %v2957_v27, %v8508_v62  ;;  %v2959_v12 = vpop.f32.mrb[9].mxu0  ;;  %v8781_v34 = vpop.f32.mrb[76].mxu1 }
 0x387   :  { %v3567_v38 = vpack.c.bf16 %v3459_v42, %v3457_v50  ;;  %v6590_v55 = vadd.f32 %v2959_v12, %v8511_v63  ;;  %v2961_v14 = vpop.f32.mrb[10].mxu0  ;;  %v8786_v63 = vpop.f32.mrb[77].mxu1 }
 0x388   :  { %v3348_v24 = vadd.f32 %v6589_v59, %v8729_v2  ;;  %v6591_v45 = vadd.f32 %v2961_v14, %v8519_v3  ;;  %v2963_v7 = vpop.f32.mrb[11].mxu0  ;;  %v8788_v27 = vpop.f32.mrb[78].mxu1 }
 0x389   :  { %v3621_v44 = vmax.bf16 %v3567_v38, %v3566_v30  ;;  %v3349_v1 = vadd.f32 %v6590_v55, %v8735_v41  ;;  %v6592_v32 = vadd.f32 %v2963_v7, %v8524_v5  ;;  %v8790_v12 = vpop.f32.mrb[79].mxu1 }
 0x38a   :  { %v3350_v35 = vadd.f32 %v6591_v45, %v8729_v2  ;;  %v3460_v50 = vmax.f32 %v3348_v24, 0.0 }
 0x38b   :  { %v8783_v62 = vmax.bf16 %v3621_v44, %v3620_v36  ;;  %v3351_v33 = vadd.f32 %v6592_v32, %v8735_v41  ;;  %v3461_v3 = vmax.f32 %v3349_v1, 0.0 }
 0x38c   :  { %v3462_v42 = vmax.f32 %v3350_v35, 0.0 }
 0x38d   :  { %9740 = vst [vmem:[#allocation29_spill] sm:$0xff] %v8783_v62  ;;  %v3463_v30 = vmax.f32 %v3351_v33, 0.0  ;;  %v2967_v59 = vpop.f32.mrb[12].mxu0 }
 0x38e   :  { %v3568_v5 = vpack.c.bf16 %v3462_v42, %v3460_v50  ;;  %v6593_v38 = vadd.f32 %v2967_v59, %v8532_v8  ;;  %v2969_v55 = vpop.f32.mrb[13].mxu0  ;;  %v8799_v50 = vpop.f32.mrb[80].mxu1 }
 0x38f   :  { %v3569_v14 = vpack.c.bf16 %v3463_v30, %v3461_v3  ;;  %v6594_v36 = vadd.f32 %v2969_v55, %v8535_v9  ;;  %v2971_v45 = vpop.f32.mrb[14].mxu0  ;;  %v8802_v42 = vpop.f32.mrb[81].mxu1 }
 0x390   :  { %v3352_v7 = vadd.f32 %v6593_v38, %v8729_v2  ;;  %v6595_v24 = vadd.f32 %v2971_v45, %v8543_v11  ;;  %v2973_v35 = vpop.f32.mrb[15].mxu0  ;;  %v8804_v30 = vpop.f32.mrb[82].mxu1 }
 0x391   :  { %v3622_v44 = vmax.bf16 %v3569_v14, %v3568_v5  ;;  %v3353_v1 = vadd.f32 %v6594_v36, %v8735_v41  ;;  %v6596_v32 = vadd.f32 %v2973_v35, %v8548_v13  ;;  %v8806_v5 = vpop.f32.mrb[83].mxu1 }
 0x392   :  { %v3354_v33 = vadd.f32 %v6595_v24, %v8729_v2  ;;  %v3464_v9 = vmax.f32 %v3352_v7, 0.0 }
 0x393   :  { %v3355_v8 = vadd.f32 %v6596_v32, %v8735_v41  ;;  %v3465_v59 = vmax.f32 %v3353_v1, 0.0 }
 0x394   :  { %v3466_v3 = vmax.f32 %v3354_v33, 0.0 }
 0x395   :  { %v3467_v11 = vmax.f32 %v3355_v8, 0.0  ;;  %v2977_v38 = vpop.f32.mrb[16].mxu0 }
 0x396   :  { %v3570_v55 = vpack.c.bf16 %v3466_v3, %v3464_v9  ;;  %v6597_v13 = vadd.f32 %v2977_v38, %v8556_v15  ;;  %v2979_v14 = vpop.f32.mrb[17].mxu0  ;;  %v7449_v15 = vld [vmem:[%s9688_s3] ss:$8 sps:$4 sm:$0xff]   ;;  %v8818_v9 = vpop.f32.mrb[84].mxu1 }
 0x397   :  { %v3571_v36 = vpack.c.bf16 %v3467_v11, %v3465_v59  ;;  %v6598_v45 = vadd.f32 %v2979_v14, %v8559_v16  ;;  %v2981_v24 = vpop.f32.mrb[18].mxu0  ;;  %v8826_v59 = vpop.f32.mrb[85].mxu1 }
 0x398   :  { %v3356_v35 = vadd.f32 %v6597_v13, %v8729_v2  ;;  %v6599_v7 = vadd.f32 %v2981_v24, %v8567_v40  ;;  %v2983_v32 = vpop.f32.mrb[19].mxu0  ;;  %v7454_v40 = vld [vmem:[%s9688_s3 + $0x14] ss:$8 sps:$4 sm:$0xff]   ;;  %v8828_v38 = vpop.f32.mrb[86].mxu1 }
 0x399   :  { %v3623_v33 = vmax.bf16 %v3571_v36, %v3570_v55  ;;  %v3357_v1 = vadd.f32 %v6598_v45, %v8735_v41  ;;  %v6600_v8 = vadd.f32 %v2983_v32, %v8572_v43  ;;  %v8831_v36 = vpop.f32.mrb[87].mxu1 }
 0x39a   :  { %v3358_v62 = vadd.f32 %v6599_v7, %v8729_v2  ;;  %v3468_v11 = vmax.f32 %v3356_v35, 0.0 }
 0x39b   :  { %v8820_v16 = vmax.bf16 %v3623_v33, %v3622_v44  ;;  %v3359_v3 = vadd.f32 %v6600_v8, %v8735_v41  ;;  %v3469_v55 = vmax.f32 %v3357_v1, 0.0  ;;  %v7457_v33 = vld [vmem:[%s9688_s3 + $0x24] ss:$8 sps:$4 sm:$0xff]  }
 0x39c   :  { %v3470_v43 = vmax.f32 %v3358_v62, 0.0  ;;  %v7452_v62 = vld [vmem:[%s9688_s3 + $0x10] ss:$8 sps:$4 sm:$0xff]  }
 0x39d   :  { %v3471_v13 = vmax.f32 %v3359_v3, 0.0  ;;  %v2987_v14 = vpop.f32.mrb[20].mxu0  ;;  %3808 = vmatmul.mubr.bf16.vlgmr.msra.gmra.mrb[112].mxu1 %v8820_v16 }
 0x39e   :  { %v3572_v44 = vpack.c.bf16 %v3470_v43, %v3468_v11  ;;  %v6601_v45 = vadd.f32 %v2987_v14, %v8580_v46  ;;  %v2989_v24 = vpop.f32.mrb[21].mxu0  ;;  %3817 = vmatprep.mubr.bf16.mxu1 %v9732_v19  ;;  %3989 = vmatpush1.bf16.msra.mxu1 %v7449_v15 }
 0x39f   :  { %v3573_v35 = vpack.c.bf16 %v3471_v13, %v3469_v55  ;;  %v6602_v7 = vadd.f32 %v2989_v24, %v8583_v47  ;;  %v2991_v32 = vpop.f32.mrb[22].mxu0  ;;  %3990 = vmatprep.subr.bf16.mxu1 %v7454_v40  ;;  %v7455_v47 = vld [vmem:[%s9688_s3 + $0x20] ss:$8 sps:$4 sm:$0xff]  }
 0x3a0   :  { %v3360_v1 = vadd.f32 %v6601_v45, %v8729_v2  ;;  %v6603_v46 = vadd.f32 %v2991_v32, %v8585_v48  ;;  %v2993_v8 = vpop.f32.mrb[23].mxu0  ;;  %v7460_v48 = vld [vmem:[%s9688_s3 + $0x34] ss:$8 sps:$4 sm:$0xff]  }
 0x3a1   :  { %v3361_v15 = vadd.f32 %v6602_v7, %v8735_v41  ;;  %v6604_v3 = vadd.f32 %v2993_v8, %v8587_v49  ;;  %v3624_v11 = vmax.bf16 %v3573_v35, %v3572_v44  ;;  %v8854_v44 = vpop.f32.mrb[88].mxu1  ;;  %v7458_v7 = vld [vmem:[%s9688_s3 + $0x30] ss:$8 sps:$4 sm:$0xff]   ;;  %v7463_v8 = vld [vmem:[%s9688_s3 + $0x44] ss:$8 sps:$4 sm:$0xff]  }
 0x3a2   :  { %v3362_v43 = vadd.f32 %v6603_v46, %v8729_v2  ;;  %3991 = vmatpush1.bf16.msra.mxu1 %v7452_v62  ;;  %v3472_v55 = vmax.f32 %v3360_v1, 0.0  ;;  %v8860_v32 = vpop.f32.mrb[89].mxu1 }
 0x3a3   :  { %v3363_v40 = vadd.f32 %v6604_v3, %v8735_v41  ;;  %3992 = vmatprep.subr.bf16.mxu1 %v7457_v33  ;;  %v3473_v14 = vmax.f32 %v3361_v15, 0.0  ;;  %v8866_v15 = vpop.f32.mrb[90].mxu1 }
 0x3a4   :  { %v3474_v13 = vmax.f32 %v3362_v43, 0.0 }
 0x3a5   :  { %v3475_v45 = vmax.f32 %v3363_v40, 0.0  ;;  %v2997_v49 = vpop.f32.mrb[24].mxu0 }
 0x3a6   :  { %v3574_v24 = vpack.c.bf16 %v3474_v13, %v3472_v55  ;;  %v6605_v62 = vadd.f32 %v2997_v49, %v8592_v51  ;;  %v2999_v35 = vpop.f32.mrb[25].mxu0  ;;  %3993 = vmatpush1.bf16.msra.mxu1 %v7455_v47  ;;  %v8870_v47 = vpop.f32.mrb[91].mxu1  ;;  %v7461_v13 = vld [vmem:[%s9688_s3 + $0x40] ss:$8 sps:$4 sm:$0xff]  }
 0x3a7   :  { %v3575_v33 = vpack.c.bf16 %v3475_v45, %v3473_v14  ;;  %v6606_v1 = vadd.f32 %v2999_v35, %v8595_v52  ;;  %v3001_v46 = vpop.f32.mrb[26].mxu0  ;;  %3994 = vmatprep.subr.bf16.mxu1 %v7460_v48 }
 0x3a8   :  { %v3364_v51 = vadd.f32 %v6605_v62, %v8729_v2  ;;  %v6607_v3 = vadd.f32 %v3001_v46, %v8597_v53  ;;  %v3003_v43 = vpop.f32.mrb[27].mxu0  ;;  %v7466_v53 = vld [vmem:[%s9688_s3 + $0x54] ss:$8 sps:$4 sm:$0xff]  }
 0x3a9   :  { %v3365_v40 = vadd.f32 %v6606_v1, %v8735_v41  ;;  %v6608_v55 = vadd.f32 %v3003_v43, %v8599_v54  ;;  %v3625_v52 = vmax.bf16 %v3575_v33, %v3574_v24 }
 0x3aa   :  { %v3366_v48 = vadd.f32 %v6607_v3, %v8729_v2  ;;  %3995 = vmatpush1.bf16.msra.mxu1 %v7458_v7  ;;  %v3476_v49 = vmax.f32 %v3364_v51, 0.0  ;;  %v8885_v7 = vpop.f32.mrb[92].mxu1 }
 0x3ab   :  { %v3367_v14 = vadd.f32 %v6608_v55, %v8735_v41  ;;  %v8879_v45 = vmax.bf16 %v3625_v52, %v3624_v11  ;;  %3996 = vmatprep.subr.bf16.mxu1 %v7463_v8  ;;  %v3477_v54 = vmax.f32 %v3365_v40, 0.0  ;;  %v7464_v11 = vld [vmem:[%s9688_s3 + $0x50] ss:$8 sps:$4 sm:$0xff]   ;;  %v8892_v8 = vpop.f32.mrb[93].mxu1  ;;  %v7469_v40 = vld [vmem:[%s9688_s3 + $0x64] ss:$8 sps:$4 sm:$0xff]  }
 0x3ac   :  { %v3478_v62 = vmax.f32 %v3366_v48, 0.0 }
 0x3ad   :  { %v3479_v24 = vmax.f32 %v3367_v14, 0.0  ;;  %v3007_v35 = vpop.f32.mrb[28].mxu0  ;;  %3818 = vmatmul.mubr.bf16.gmra.mrb[116].mxu1 %v8879_v45 }
 0x3ae   :  { %v3576_v33 = vpack.c.bf16 %v3478_v62, %v3476_v49  ;;  %v6609_v1 = vadd.f32 %v3007_v35, %v8604_v56  ;;  %v3009_v46 = vpop.f32.mrb[29].mxu0  ;;  %3827 = vmatprep.mubr.bf16.mxu1 %v9732_v19  ;;  %3997 = vmatpush1.bf16.msra.mxu1 %v7461_v13  ;;  %v8898_v56 = vpop.f32.mrb[94].mxu1  ;;  %v7467_v62 = vld [vmem:[%s9688_s3 + $0x60] ss:$8 sps:$4 sm:$0xff]  }
 0x3af   :  { %v3577_v51 = vpack.c.bf16 %v3479_v24, %v3477_v54  ;;  %v6610_v3 = vadd.f32 %v3009_v46, %v8607_v57  ;;  %v3011_v43 = vpop.f32.mrb[30].mxu0  ;;  %3998 = vmatprep.subr.bf16.mxu1 %v7466_v53  ;;  %v8902_v13 = vpop.f32.mrb[95].mxu1 }
 0x3b0   :  { %v3368_v55 = vadd.f32 %v6609_v1, %v8729_v2  ;;  %v6611_v52 = vadd.f32 %v3011_v43, %v8609_v17  ;;  %v3013_v48 = vpop.f32.mrb[31].mxu0  ;;  %v7472_v17 = vld [vmem:[%s9688_s3 + $0x74] ss:$8 sps:$4 sm:$0xff]   ;;  %v7470_v43 = vld [vmem:[%s9688_s3 + $0x70] ss:$8 sps:$4 sm:$0xff]  }
 0x3b1   :  { %v3626_v14 = vmax.bf16 %v3577_v51, %v3576_v33  ;;  %v3369_v49 = vadd.f32 %v6610_v3, %v8735_v41  ;;  %v6612_v57 = vadd.f32 %v3013_v48, %v8611_v18  ;;  %v8914_v18 = vpop.f32.mrb[96].mxu1 }
 0x3b2   :  { %v3370_v53 = vadd.f32 %v6611_v52, %v8729_v2  ;;  %3999 = vmatpush1.bf16.msra.mxu1 %v7464_v11  ;;  %v3480_v24 = vmax.f32 %v3368_v55, 0.0 }
 0x3b3   :  { %v3371_v54 = vadd.f32 %v6612_v57, %v8735_v41  ;;  %4000 = vmatprep.subr.bf16.mxu1 %v7469_v40  ;;  %v3481_v33 = vmax.f32 %v3369_v49, 0.0  ;;  %v8920_v40 = vpop.f32.mrb[97].mxu1 }
 0x3b4   :  { %v3482_v35 = vmax.f32 %v3370_v53, 0.0  ;;  %v8923_v49 = vpop.f32.mrb[98].mxu1 }
 0x3b5   :  { %v3483_v1 = vmax.f32 %v3371_v54, 0.0  ;;  %v3017_v46 = vpop.f32.mrb[32].mxu0  ;;  %v8927_v54 = vpop.f32.mrb[99].mxu1 }
 0x3b6   :  { %v3578_v51 = vpack.c.bf16 %v3482_v35, %v3480_v24  ;;  %v6613_v11 = vadd.f32 %v3017_v46, %v8616_v20  ;;  %v3019_v3 = vpop.f32.mrb[33].mxu0  ;;  %4001 = vmatpush1.bf16.msra.mxu1 %v7467_v62 }
 0x3b7   :  { %v3579_v52 = vpack.c.bf16 %v3483_v1, %v3481_v33  ;;  %v6614_v55 = vadd.f32 %v3019_v3, %v8619_v21  ;;  %v3021_v48 = vpop.f32.mrb[34].mxu0  ;;  %4002 = vmatprep.subr.bf16.mxu1 %v7472_v17  ;;  %v7475_v21 = vld [vmem:[%s9688_s3 + $0x104] ss:$8 sps:$4 sm:$0xff]  }
 0x3b8   :  { %v3372_v57 = vadd.f32 %v6613_v11, %v8729_v2  ;;  %v6615_v53 = vadd.f32 %v3021_v48, %v8621_v22  ;;  %v3023_v20 = vpop.f32.mrb[35].mxu0 }
 0x3b9   :  { %v3627_v62 = vmax.bf16 %v3579_v52, %v3578_v51  ;;  %v3373_v24 = vadd.f32 %v6614_v55, %v8735_v41  ;;  %v6616_v35 = vadd.f32 %v3023_v20, %v8623_v23  ;;  %v8939_v23 = vpop.f32.mrb[100].mxu1 }
 0x3ba   :  { %v3374_v33 = vadd.f32 %v6615_v53, %v8729_v2  ;;  %4003 = vmatpush1.bf16.msra.mxu1 %v7470_v43  ;;  %v3484_v22 = vmax.f32 %v3372_v57, 0.0  ;;  %v8943_v48 = vpop.f32.mrb[101].mxu1 }
 0x3bb   :  { %v3375_v17 = vadd.f32 %v6616_v35, %v8735_v41  ;;  %v8936_v1 = vmax.bf16 %v3627_v62, %v3626_v14  ;;  %4218 = vmatprep.subr.bf16.mxu1 %v7475_v21  ;;  %v3485_v11 = vmax.f32 %v3373_v24, 0.0  ;;  %v8946_v20 = vpop.f32.mrb[102].mxu1 }
 0x3bc   :  { %v3486_v46 = vmax.f32 %v3374_v33, 0.0  ;;  %v8950_v33 = vpop.f32.mrb[103].mxu1 }
 0x3bd   :  { %9741 = vst [vmem:[#allocation30_spill] sm:$0xff] %v8936_v1  ;;  %v3487_v51 = vmax.f32 %v3375_v17, 0.0  ;;  %v3027_v3 = vpop.f32.mrb[36].mxu0  ;;  %3828 = vmatmul.mubr.bf16.gmra.mrb[120].mxu1 %v8936_v1 }
 0x3be   :  { %v3580_v52 = vpack.c.bf16 %v3486_v46, %v3484_v22  ;;  %v6617_v43 = vadd.f32 %v3027_v3, %v8628_v25  ;;  %v3029_v55 = vpop.f32.mrb[37].mxu0  ;;  %3837 = vmatprep.mubr.bf16.mxu1 %v9732_v19 }
 0x3bf   :  { %v3581_v14 = vpack.c.bf16 %v3487_v51, %v3485_v11  ;;  %v6618_v57 = vadd.f32 %v3029_v55, %v8631_v26  ;;  %v3031_v53 = vpop.f32.mrb[38].mxu0 }
 0x3c0   :  { %v3376_v62 = vadd.f32 %v6617_v43, %v8729_v2  ;;  %v6619_v24 = vadd.f32 %v3031_v53, %v8633_v31  ;;  %v3033_v35 = vpop.f32.mrb[39].mxu0  ;;  %v8956_v43 = vpop.f32.mrb[104].mxu1 }
 0x3c1   :  { %v3628_v21 = vmax.bf16 %v3581_v14, %v3580_v52  ;;  %v3377_v25 = vadd.f32 %v6618_v57, %v8735_v41  ;;  %v6620_v17 = vadd.f32 %v3033_v35, %v8635_v37  ;;  %v8959_v52 = vpop.f32.mrb[105].mxu1 }
 0x3c2   :  { %v3378_v22 = vadd.f32 %v6619_v24, %v8729_v2  ;;  %v3488_v26 = vmax.f32 %v3376_v62, 0.0  ;;  %v8962_v24 = vpop.f32.mrb[106].mxu1 }
 0x3c3   :  { %v3379_v46 = vadd.f32 %v6620_v17, %v8735_v41  ;;  %v3489_v51 = vmax.f32 %v3377_v25, 0.0  ;;  %v8966_v17 = vpop.f32.mrb[107].mxu1 }
 0x3c4   :  { %v3490_v11 = vmax.f32 %v3378_v22, 0.0  ;;  %9742 = vst [vmem:[#allocation31_spill] sm:$0xff] %v8966_v17 }
 0x3c5   :  { %v3491_v3 = vmax.f32 %v3379_v46, 0.0  ;;  %v3037_v55 = vpop.f32.mrb[40].mxu0 }
 0x3c6   :  { %v3582_v31 = vpack.c.bf16 %v3490_v11, %v3488_v26  ;;  %v6621_v53 = vadd.f32 %v3037_v55, %v8640_v58  ;;  %v3039_v1 = vpop.f32.mrb[41].mxu0 }
 0x3c7   :  { %v3583_v14 = vpack.c.bf16 %v3491_v3, %v3489_v51  ;;  %v6622_v37 = vadd.f32 %v3039_v1, %v8643_v60  ;;  %v3041_v57 = vpop.f32.mrb[42].mxu0 }
 0x3c8   :  { %v3380_v62 = vadd.f32 %v6621_v53, %v8729_v2  ;;  %v6623_v35 = vadd.f32 %v3041_v57, %v8645_v61  ;;  %v3043_v25 = vpop.f32.mrb[43].mxu0  ;;  %v8975_v61 = vpop.f32.mrb[108].mxu1 }
 0x3c9   :  { %v3629_v22 = vmax.bf16 %v3583_v14, %v3582_v31  ;;  %v3381_v46 = vadd.f32 %v6622_v37, %v8735_v41  ;;  %v6624_v58 = vadd.f32 %v3043_v25, %v8647_v0  ;;  %9744 = vst [vmem:[#allocation33_spill] sm:$0xff] %v8975_v61  ;;  %v8979_v0 = vpop.f32.mrb[109].mxu1 }
 0x3ca   :  { %v3382_v26 = vadd.f32 %v6623_v35, %v8729_v2  ;;  %v3492_v1 = vmax.f32 %v3380_v62, 0.0  ;;  %9745 = vst [vmem:[#allocation34_spill] sm:$0xff] %v8979_v0  ;;  %v8982_v35 = vpop.f32.mrb[110].mxu1  ;;  %v9750_v0 = vld [vmem:[#allocation4_spill] sm:$0xff] }
 0x3cb   :  { %v8971_v11 = vmax.bf16 %v3629_v22, %v3628_v21  ;;  %v3383_v60 = vadd.f32 %v6624_v58, %v8735_v41  ;;  %v3493_v3 = vmax.f32 %v3381_v46, 0.0  ;;  %9746 = vst [vmem:[#allocation35_spill] sm:$0xff] %v8982_v35  ;;  %v9747_v22 = vld [vmem:[#allocation2_spill] sm:$0xff] }
 0x3cc   :  { %v3494_v51 = vmax.f32 %v3382_v26, 0.0  ;;  %v8986_v26 = vpop.f32.mrb[111].mxu1 }
 0x3cd   :  { %9743 = vst [vmem:[#allocation32_spill] sm:$0xff] %v8971_v11  ;;  %v3495_v55 = vmax.f32 %v3383_v60, 0.0  ;;  %v3047_v53 = vpop.f32.mrb[44].mxu0  ;;  %3838 = vmatmul.mubr.bf16.gmra.mrb[124].mxu1 %v8971_v11  ;;  %9748 = vst [vmem:[#allocation2_spill] sm:$0xff] %v8986_v26  ;;  %v9751_v26 = vld [vmem:[#allocation5_spill] sm:$0xff] }
 0x3ce   :  { %v3584_v31 = vpack.c.bf16 %v3494_v51, %v3492_v1  ;;  %v6625_v14 = vadd.f32 %v3047_v53, %v8652_v4  ;;  %v3049_v37 = vpop.f32.mrb[45].mxu0  ;;  %3847 = vmatprep.mubr.bf16.mxu1 %v9732_v19  ;;  %v9749_v1 = vld [vmem:[#allocation3_spill] sm:$0xff] }
 0x3cf   :  { %v3585_v21 = vpack.c.bf16 %v3495_v55, %v3493_v3  ;;  %v6626_v57 = vadd.f32 %v3049_v37, %v8655_v6  ;;  %v3051_v62 = vpop.f32.mrb[46].mxu0 }
 0x3d0   :  { %v3384_v25 = vadd.f32 %v6625_v14, %v8729_v2  ;;  %v6627_v46 = vadd.f32 %v3051_v62, %v9747_v22  ;;  %v3053_v58 = vpop.f32.mrb[47].mxu0 }
 0x3d1   :  { %v3630_v60 = vmax.bf16 %v3585_v21, %v3584_v31  ;;  %v3385_v4 = vadd.f32 %v6626_v57, %v8735_v41  ;;  %v6628_v51 = vadd.f32 %v3053_v58, %v9749_v1  ;;  %v9752_v58 = vld [vmem:[#allocation6_spill] sm:$0xff] }
 0x3d2   :  { %v3386_v53 = vadd.f32 %v6627_v46, %v8729_v2  ;;  %v3496_v6 = vmax.f32 %v3384_v25, 0.0 }
 0x3d3   :  { %v3387_v3 = vadd.f32 %v6628_v51, %v8735_v41  ;;  %v3497_v37 = vmax.f32 %v3385_v4, 0.0  ;;  %v9753_v51 = vld [vmem:[#allocation7_spill] sm:$0xff] }
 0x3d4   :  { %v3498_v55 = vmax.f32 %v3386_v53, 0.0 }
 0x3d5   :  { %v3499_v11 = vmax.f32 %v3387_v3, 0.0  ;;  %v3057_v35 = vpop.f32.mrb[48].mxu0 }
 0x3d6   :  { %v3586_v14 = vpack.c.bf16 %v3498_v55, %v3496_v6  ;;  %v6629_v62 = vadd.f32 %v3057_v35, %v9750_v0  ;;  %v3059_v22 = vpop.f32.mrb[49].mxu0 }
 0x3d7   :  { %v3587_v61 = vpack.c.bf16 %v3499_v11, %v3497_v37  ;;  %v6630_v31 = vadd.f32 %v3059_v22, %v9751_v26  ;;  %v3061_v21 = vpop.f32.mrb[50].mxu0 }
 0x3d8   :  { %v3388_v57 = vadd.f32 %v6629_v62, %v8729_v2  ;;  %v6631_v1 = vadd.f32 %v3061_v21, %v9752_v58  ;;  %v3063_v46 = vpop.f32.mrb[51].mxu0  ;;  %v9755_v62 = vld [vmem:[#allocation8_spill] sm:$0xff]  ;;  %v9757_v58 = vld [vmem:[#allocation10_spill] sm:$0xff] }
 0x3d9   :  { %v3631_v17 = vmax.bf16 %v3587_v61, %v3586_v14  ;;  %v3389_v25 = vadd.f32 %v6630_v31, %v8735_v41  ;;  %v6632_v4 = vadd.f32 %v3063_v46, %v9753_v51  ;;  %v9756_v31 = vld [vmem:[#allocation9_spill] sm:$0xff]  ;;  %v9758_v51 = vld [vmem:[#allocation11_spill] sm:$0xff] }
 0x3da   :  { %v3390_v53 = vadd.f32 %v6631_v1, %v8729_v2  ;;  %v3500_v11 = vmax.f32 %v3388_v57, 0.0 }
 0x3db   :  { %v8999_v3 = vmax.bf16 %v3631_v17, %v3630_v60  ;;  %v3391_v0 = vadd.f32 %v6632_v4, %v8735_v41  ;;  %v3501_v26 = vmax.f32 %v3389_v25, 0.0 }
 0x3dc   :  { %v3502_v35 = vmax.f32 %v3390_v53, 0.0 }
 0x3dd   :  { %9754 = vst [vmem:[#allocation3_spill] sm:$0xff] %v8999_v3  ;;  %v3503_v6 = vmax.f32 %v3391_v0, 0.0  ;;  %v3067_v55 = vpop.f32.mrb[52].mxu0  ;;  %3848 = vmatmul.mubr.bf16.gmra.mrb[128].mxu1 %v8999_v3 }
 0x3de   :  { %v3588_v37 = vpack.c.bf16 %v3502_v35, %v3500_v11  ;;  %v6633_v61 = vadd.f32 %v3067_v55, %v9755_v62  ;;  %v3069_v14 = vpop.f32.mrb[53].mxu0  ;;  %3857 = vmatprep.mubr.bf16.mxu1 %v9732_v19 }
 0x3df   :  { %v3589_v22 = vpack.c.bf16 %v3503_v6, %v3501_v26  ;;  %v6634_v21 = vadd.f32 %v3069_v14, %v9756_v31  ;;  %v3071_v17 = vpop.f32.mrb[54].mxu0  ;;  %v9759_v14 = vld [vmem:[#allocation12_spill] sm:$0xff] }
 0x3e0   :  { %v3392_v60 = vadd.f32 %v6633_v61, %v8729_v2  ;;  %v6635_v57 = vadd.f32 %v3071_v17, %v9757_v58  ;;  %v3073_v1 = vpop.f32.mrb[55].mxu0  ;;  %v9760_v58 = vld [vmem:[#allocation13_spill] sm:$0xff] }
 0x3e1   :  { %v3632_v46 = vmax.bf16 %v3589_v22, %v3588_v37  ;;  %v3393_v25 = vadd.f32 %v6634_v21, %v8735_v41  ;;  %v6636_v4 = vadd.f32 %v3073_v1, %v9758_v51  ;;  %v9761_v1 = vld [vmem:[#allocation14_spill] sm:$0xff] }
 0x3e2   :  { %v3394_v53 = vadd.f32 %v6635_v57, %v8729_v2  ;;  %v3504_v11 = vmax.f32 %v3392_v60, 0.0 }
 0x3e3   :  { %v3395_v0 = vadd.f32 %v6636_v4, %v8735_v41  ;;  %v3505_v26 = vmax.f32 %v3393_v25, 0.0  ;;  %v9762_v4 = vld [vmem:[#allocation15_spill] sm:$0xff] }
 0x3e4   :  { %v3506_v35 = vmax.f32 %v3394_v53, 0.0 }
 0x3e5   :  { %v3507_v6 = vmax.f32 %v3395_v0, 0.0  ;;  %v3077_v55 = vpop.f32.mrb[56].mxu0 }
 0x3e6   :  { %v3590_v62 = vpack.c.bf16 %v3506_v35, %v3504_v11  ;;  %v6637_v61 = vadd.f32 %v3077_v55, %v9759_v14  ;;  %v3079_v31 = vpop.f32.mrb[57].mxu0 }
 0x3e7   :  { %v3591_v17 = vpack.c.bf16 %v3507_v6, %v3505_v26  ;;  %v6638_v37 = vadd.f32 %v3079_v31, %v9760_v58  ;;  %v3081_v22 = vpop.f32.mrb[58].mxu0  ;;  %v9764_v31 = vld [vmem:[#allocation16_spill] sm:$0xff] }
 0x3e8   :  { %v3396_v21 = vadd.f32 %v6637_v61, %v8729_v2  ;;  %v6639_v51 = vadd.f32 %v3081_v22, %v9761_v1  ;;  %v3083_v57 = vpop.f32.mrb[59].mxu0  ;;  %v9766_v1 = vld [vmem:[#allocation19_spill] sm:$0xff] }
 0x3e9   :  { %v3633_v3 = vmax.bf16 %v3591_v17, %v3590_v62  ;;  %v3397_v60 = vadd.f32 %v6638_v37, %v8735_v41  ;;  %v6640_v25 = vadd.f32 %v3083_v57, %v9762_v4  ;;  %v9765_v37 = vld [vmem:[#allocation17_spill] sm:$0xff]  ;;  %v9767_v4 = vld [vmem:[#allocation20_spill] sm:$0xff] }
 0x3ea   :  { %v3398_v53 = vadd.f32 %v6639_v51, %v8729_v2  ;;  %v3508_v35 = vmax.f32 %v3396_v21, 0.0 }
 0x3eb   :  { %v9019_v0 = vmax.bf16 %v3633_v3, %v3632_v46  ;;  %v3399_v11 = vadd.f32 %v6640_v25, %v8735_v41  ;;  %v3509_v6 = vmax.f32 %v3397_v60, 0.0 }
 0x3ec   :  { %v3510_v26 = vmax.f32 %v3398_v53, 0.0 }
 0x3ed   :  { %9763 = vst [vmem:[#allocation4_spill] sm:$0xff] %v9019_v0  ;;  %v3511_v55 = vmax.f32 %v3399_v11, 0.0  ;;  %v3087_v14 = vpop.f32.mrb[60].mxu0  ;;  %3858 = vmatmul.mubr.bf16.gmra.mrb[132].mxu1 %v9019_v0 }
 0x3ee   :  { %v3592_v61 = vpack.c.bf16 %v3510_v26, %v3508_v35  ;;  %v6641_v62 = vadd.f32 %v3087_v14, %v9764_v31  ;;  %v3089_v17 = vpop.f32.mrb[61].mxu0  ;;  %3867 = vmatprep.mubr.bf16.mxu1 %v9732_v19 }
 0x3ef   :  { %v3593_v58 = vpack.c.bf16 %v3511_v55, %v3509_v6  ;;  %v6642_v22 = vadd.f32 %v3089_v17, %v9765_v37  ;;  %v3091_v3 = vpop.f32.mrb[62].mxu0  ;;  %v9768_v17 = vld [vmem:[#allocation21_spill] sm:$0xff] }
 0x3f0   :  { %v3400_v46 = vadd.f32 %v6641_v62, %v8729_v2  ;;  %v6643_v21 = vadd.f32 %v3091_v3, %v9766_v1  ;;  %v3093_v51 = vpop.f32.mrb[63].mxu0  ;;  %v9769_v1 = vld [vmem:[#allocation22_spill] sm:$0xff] }
 0x3f1   :  { %v3634_v57 = vmax.bf16 %v3593_v58, %v3592_v61  ;;  %v3401_v60 = vadd.f32 %v6642_v22, %v8735_v41  ;;  %v6644_v25 = vadd.f32 %v3093_v51, %v9767_v4  ;;  %v9770_v51 = vld [vmem:[#allocation23_spill] sm:$0xff] }
 0x3f2   :  { %v3402_v53 = vadd.f32 %v6643_v21, %v8729_v2  ;;  %v3512_v35 = vmax.f32 %v3400_v46, 0.0 }
 0x3f3   :  { %v3403_v11 = vadd.f32 %v6644_v25, %v8735_v41  ;;  %v3513_v6 = vmax.f32 %v3401_v60, 0.0  ;;  %v9771_v25 = vld [vmem:[#allocation24_spill] sm:$0xff] }
 0x3f4   :  { %v3514_v26 = vmax.f32 %v3402_v53, 0.0 }
 0x3f5   :  { %v3515_v55 = vmax.f32 %v3403_v11, 0.0  ;;  %v3097_v14 = vpop.f32.mrb[64].mxu0 }
 0x3f6   :  { %v3594_v31 = vpack.c.bf16 %v3514_v26, %v3512_v35  ;;  %v6645_v62 = vadd.f32 %v3097_v14, %v9768_v17  ;;  %v3099_v37 = vpop.f32.mrb[65].mxu0 }
 0x3f7   :  { %v3595_v3 = vpack.c.bf16 %v3515_v55, %v3513_v6  ;;  %v6646_v61 = vadd.f32 %v3099_v37, %v9769_v1  ;;  %v3101_v58 = vpop.f32.mrb[66].mxu0  ;;  %v9772_v37 = vld [vmem:[#allocation25_spill] sm:$0xff] }
 0x3f8   :  { %v3404_v22 = vadd.f32 %v6645_v62, %v8729_v2  ;;  %v6647_v4 = vadd.f32 %v3101_v58, %v9770_v51  ;;  %v3103_v21 = vpop.f32.mrb[67].mxu0 }
 0x3f9   :  { %v3635_v0 = vmax.bf16 %v3595_v3, %v3594_v31  ;;  %v3405_v46 = vadd.f32 %v6646_v61, %v8735_v41  ;;  %v6648_v60 = vadd.f32 %v3103_v21, %v9771_v25  ;;  %v9773_v61 = vld [vmem:[#allocation26_spill] sm:$0xff] }
 0x3fa   :  { %v3406_v53 = vadd.f32 %v6647_v4, %v8729_v2  ;;  %v3516_v26 = vmax.f32 %v3404_v22, 0.0 }
 0x3fb   :  { %v9039_v11 = vmax.bf16 %v3635_v0, %v3634_v57  ;;  %v3407_v35 = vadd.f32 %v6648_v60, %v8735_v41  ;;  %v3517_v55 = vmax.f32 %v3405_v46, 0.0  ;;  %v9774_v46 = vld [vmem:[#allocation27_spill] sm:$0xff] }
 0x3fc   :  { %v3518_v6 = vmax.f32 %v3406_v53, 0.0 }
 0x3fd   :  { %v3519_v14 = vmax.f32 %v3407_v35, 0.0  ;;  %v3107_v17 = vpop.f32.mrb[68].mxu0  ;;  %3868 = vmatmul.mubr.bf16.gmra.mrb[136].mxu1 %v9039_v11 }
 0x3fe   :  { %v3596_v62 = vpack.c.bf16 %v3518_v6, %v3516_v26  ;;  %v6649_v31 = vadd.f32 %v3107_v17, %v9772_v37  ;;  %v3109_v3 = vpop.f32.mrb[69].mxu0  ;;  %3877 = vmatprep.mubr.bf16.mxu1 %v9732_v19 }
 0x3ff   :  { %v3597_v1 = vpack.c.bf16 %v3519_v14, %v3517_v55  ;;  %v6650_v58 = vadd.f32 %v3109_v3, %v9773_v61  ;;  %v3111_v0 = vpop.f32.mrb[70].mxu0 }
 0x400   :  { %v3408_v57 = vadd.f32 %v6649_v31, %v8729_v2  ;;  %v6651_v22 = vadd.f32 %v3111_v0, %v8754_v10  ;;  %v3113_v51 = vpop.f32.mrb[71].mxu0 }
 0x401   :  { %v3636_v4 = vmax.bf16 %v3597_v1, %v3596_v62  ;;  %v3409_v21 = vadd.f32 %v6650_v58, %v8735_v41  ;;  %v6652_v25 = vadd.f32 %v3113_v51, %v9774_v46 }
 0x402   :  { %v3410_v60 = vadd.f32 %v6651_v22, %v8729_v2  ;;  %v3520_v35 = vmax.f32 %v3408_v57, 0.0  ;;  %v9775_v22 = vld [vmem:[#allocation28_spill] sm:$0xff] }
 0x403   :  { %v3411_v53 = vadd.f32 %v6652_v25, %v8735_v41  ;;  %v3521_v6 = vmax.f32 %v3409_v21, 0.0 }
 0x404   :  { %v3522_v26 = vmax.f32 %v3410_v60, 0.0 }
 0x405   :  { %v3523_v55 = vmax.f32 %v3411_v53, 0.0  ;;  %v3117_v14 = vpop.f32.mrb[72].mxu0 }
 0x406   :  { %v3598_v17 = vpack.c.bf16 %v3522_v26, %v3520_v35  ;;  %v6653_v37 = vadd.f32 %v3117_v14, %v8765_v28  ;;  %v3119_v31 = vpop.f32.mrb[73].mxu0 }
 0x407   :  { %v3599_v10 = vpack.c.bf16 %v3523_v55, %v3521_v6  ;;  %v6654_v62 = vadd.f32 %v3119_v31, %v8768_v39  ;;  %v3121_v3 = vpop.f32.mrb[74].mxu0 }
 0x408   :  { %v3412_v1 = vadd.f32 %v6653_v37, %v8729_v2  ;;  %v6655_v61 = vadd.f32 %v3121_v3, %v8770_v29  ;;  %v3123_v58 = vpop.f32.mrb[75].mxu0 }
 0x409   :  { %v3637_v0 = vmax.bf16 %v3599_v10, %v3598_v17  ;;  %v3413_v57 = vadd.f32 %v6654_v62, %v8735_v41  ;;  %v6656_v51 = vadd.f32 %v3123_v58, %v9775_v22 }
 0x40a   :  { %v3414_v21 = vadd.f32 %v6655_v61, %v8729_v2  ;;  %v3524_v25 = vmax.f32 %v3412_v1, 0.0 }
 0x40b   :  { %v9059_v46 = vmax.bf16 %v3637_v0, %v3636_v4  ;;  %v3415_v28 = vadd.f32 %v6656_v51, %v8735_v41  ;;  %v3525_v39 = vmax.f32 %v3413_v57, 0.0 }
 0x40c   :  { %v3526_v60 = vmax.f32 %v3414_v21, 0.0 }
 0x40d   :  { %v3527_v53 = vmax.f32 %v3415_v28, 0.0  ;;  %v3127_v35 = vpop.f32.mrb[76].mxu0  ;;  %3878 = vmatmul.mubr.bf16.gmra.mrb[140].mxu1 %v9059_v46 }
 0x40e   :  { %v3600_v29 = vpack.c.bf16 %v3526_v60, %v3524_v25  ;;  %v6657_v26 = vadd.f32 %v3127_v35, %v8781_v34  ;;  %v3129_v6 = vpop.f32.mrb[77].mxu0  ;;  %3887 = vmatprep.mubr.bf16.mxu1 %v9732_v19 }
 0x40f   :  { %v3601_v55 = vpack.c.bf16 %v3527_v53, %v3525_v39  ;;  %v6658_v14 = vadd.f32 %v3129_v6, %v8786_v63  ;;  %v3131_v4 = vpop.f32.mrb[78].mxu0 }
 0x410   :  { %v3416_v17 = vadd.f32 %v6657_v26, %v8729_v2  ;;  %v6659_v37 = vadd.f32 %v3131_v4, %v8788_v27  ;;  %v3133_v31 = vpop.f32.mrb[79].mxu0 }
 0x411   :  { %v3638_v10 = vmax.bf16 %v3601_v55, %v3600_v29  ;;  %v3417_v62 = vadd.f32 %v6658_v14, %v8735_v41  ;;  %v6660_v3 = vadd.f32 %v3133_v31, %v8790_v12 }
 0x412   :  { %v3418_v1 = vadd.f32 %v6659_v37, %v8729_v2  ;;  %v3528_v61 = vmax.f32 %v3416_v17, 0.0 }
 0x413   :  { %v3419_v34 = vadd.f32 %v6660_v3, %v8735_v41  ;;  %v3529_v0 = vmax.f32 %v3417_v62, 0.0 }
 0x414   :  { %v3530_v58 = vmax.f32 %v3418_v1, 0.0 }
 0x415   :  { %v3531_v57 = vmax.f32 %v3419_v34, 0.0  ;;  %v3137_v63 = vpop.f32.mrb[80].mxu0 }
 0x416   :  { %v3602_v22 = vpack.c.bf16 %v3530_v58, %v3528_v61  ;;  %v6661_v51 = vadd.f32 %v3137_v63, %v8799_v50  ;;  %v3139_v21 = vpop.f32.mrb[81].mxu0 }
 0x417   :  { %v3603_v27 = vpack.c.bf16 %v3531_v57, %v3529_v0  ;;  %v6662_v28 = vadd.f32 %v3139_v21, %v8802_v42  ;;  %v3141_v25 = vpop.f32.mrb[82].mxu0 }
 0x418   :  { %v3420_v60 = vadd.f32 %v6661_v51, %v8729_v2  ;;  %v6663_v12 = vadd.f32 %v3141_v25, %v8804_v30  ;;  %v3143_v39 = vpop.f32.mrb[83].mxu0 }
 0x419   :  { %v3639_v53 = vmax.bf16 %v3603_v27, %v3602_v22  ;;  %v3421_v35 = vadd.f32 %v6662_v28, %v8735_v41  ;;  %v6664_v29 = vadd.f32 %v3143_v39, %v8806_v5 }
 0x41a   :  { %v3422_v26 = vadd.f32 %v6663_v12, %v8729_v2  ;;  %v3532_v55 = vmax.f32 %v3420_v60, 0.0 }
 0x41b   :  { %v9079_v6 = vmax.bf16 %v3639_v53, %v3638_v10  ;;  %v3423_v50 = vadd.f32 %v6664_v29, %v8735_v41  ;;  %v3533_v42 = vmax.f32 %v3421_v35, 0.0 }
 0x41c   :  { %v3534_v14 = vmax.f32 %v3422_v26, 0.0 }
 0x41d   :  { %v3535_v4 = vmax.f32 %v3423_v50, 0.0  ;;  %v3147_v17 = vpop.f32.mrb[84].mxu0  ;;  %3888 = vmatmul.mubr.bf16.gmra.mrb[144].mxu1 %v9079_v6 }
 0x41e   :  { %v3604_v30 = vpack.c.bf16 %v3534_v14, %v3532_v55  ;;  %v6665_v37 = vadd.f32 %v3147_v17, %v8818_v9  ;;  %v3149_v31 = vpop.f32.mrb[85].mxu0  ;;  %3897 = vmatprep.mubr.bf16.mxu1 %v9732_v19 }
 0x41f   :  { %v3605_v5 = vpack.c.bf16 %v3535_v4, %v3533_v42  ;;  %v6666_v62 = vadd.f32 %v3149_v31, %v8826_v59  ;;  %v3151_v10 = vpop.f32.mrb[86].mxu0 }
 0x420   :  { %v3424_v3 = vadd.f32 %v6665_v37, %v8729_v2  ;;  %v6667_v1 = vadd.f32 %v3151_v10, %v8828_v38  ;;  %v3153_v34 = vpop.f32.mrb[87].mxu0 }
 0x421   :  { %v3640_v61 = vmax.bf16 %v3605_v5, %v3604_v30  ;;  %v3425_v58 = vadd.f32 %v6666_v62, %v8735_v41  ;;  %v6668_v0 = vadd.f32 %v3153_v34, %v8831_v36 }
 0x422   :  { %v3426_v57 = vadd.f32 %v6667_v1, %v8729_v2  ;;  %v3536_v63 = vmax.f32 %v3424_v3, 0.0 }
 0x423   :  { %v3427_v9 = vadd.f32 %v6668_v0, %v8735_v41  ;;  %v3537_v51 = vmax.f32 %v3425_v58, 0.0 }
 0x424   :  { %v3538_v22 = vmax.f32 %v3426_v57, 0.0 }
 0x425   :  { %v3539_v21 = vmax.f32 %v3427_v9, 0.0  ;;  %v3157_v59 = vpop.f32.mrb[88].mxu0 }
 0x426   :  { %v3606_v27 = vpack.c.bf16 %v3538_v22, %v3536_v63  ;;  %v6669_v28 = vadd.f32 %v3157_v59, %v8854_v44  ;;  %v3159_v25 = vpop.f32.mrb[89].mxu0 }
 0x427   :  { %v3607_v38 = vpack.c.bf16 %v3539_v21, %v3537_v51  ;;  %v6670_v60 = vadd.f32 %v3159_v25, %v8860_v32  ;;  %v3161_v12 = vpop.f32.mrb[90].mxu0  ;;  %v9776_v51 = vld [vmem:[#allocation29_spill] sm:$0xff] }
 0x428   :  { %v3428_v39 = vadd.f32 %v6669_v28, %v8729_v2  ;;  %v6671_v36 = vadd.f32 %v3161_v12, %v8866_v15  ;;  %v3163_v53 = vpop.f32.mrb[91].mxu0 }
 0x429   :  { %v3641_v35 = vmax.bf16 %v3607_v38, %v3606_v27  ;;  %v3429_v29 = vadd.f32 %v6670_v60, %v8735_v41  ;;  %v6672_v26 = vadd.f32 %v3163_v53, %v8870_v47  ;;  %v7476_v27 = vld [vmem:[%s9688_s3 + $0x110] ss:$8 sps:$4 sm:$0xff]   ;;  %v7481_v60 = vld [vmem:[%s9688_s3 + $0x124] ss:$8 sps:$4 sm:$0xff]  }
 0x42a   :  { %v3430_v50 = vadd.f32 %v6671_v36, %v8729_v2  ;;  %v3540_v14 = vmax.f32 %v3428_v39, 0.0 }
 0x42b   :  { %v3431_v55 = vadd.f32 %v6672_v26, %v8735_v41  ;;  %v9100_v44 = vmax.bf16 %v3641_v35, %v3640_v61  ;;  %v3541_v32 = vmax.f32 %v3429_v29, 0.0 }
 0x42c   :  { %v3542_v42 = vmax.f32 %v3430_v50, 0.0 }
 0x42d   :  { %v3543_v4 = vmax.f32 %v3431_v55, 0.0  ;;  %v3167_v17 = vpop.f32.mrb[92].mxu0  ;;  %3898 = vmatmul.mubr.bf16.gmra.mrb[148].mxu1 %v9100_v44 }
 0x42e   :  { %v3608_v15 = vpack.c.bf16 %v3542_v42, %v3540_v14  ;;  %v6673_v30 = vadd.f32 %v3167_v17, %v8885_v7  ;;  %v3169_v37 = vpop.f32.mrb[93].mxu0  ;;  %4020 = vmatprep.mubr.bf16.mxu1 %v9732_v19  ;;  %v7473_v7 = vld [vmem:[%s9688_s3 + $0x100] ss:$8 sps:$4 sm:$0xff]  }
 0x42f   :  { %v3609_v47 = vpack.c.bf16 %v3543_v4, %v3541_v32  ;;  %v6674_v31 = vadd.f32 %v3169_v37, %v8892_v8  ;;  %v3171_v5 = vpop.f32.mrb[94].mxu0  ;;  %v7478_v8 = vld [vmem:[%s9688_s3 + $0x114] ss:$8 sps:$4 sm:$0xff]  }
 0x430   :  { %v3432_v62 = vadd.f32 %v6673_v30, %v8729_v2  ;;  %v6675_v10 = vadd.f32 %v3171_v5, %v8898_v56  ;;  %v3173_v3 = vpop.f32.mrb[95].mxu0  ;;  %v7482_v30 = vld [vmem:[%s9688_s3 + $0x130] ss:$8 sps:$4 sm:$0xff]  }
 0x431   :  { %v3433_v1 = vadd.f32 %v6674_v31, %v8735_v41  ;;  %v6676_v34 = vadd.f32 %v3173_v3, %v8902_v13  ;;  %v3642_v61 = vmax.bf16 %v3609_v47, %v3608_v15 }
 0x432   :  { %v3434_v58 = vadd.f32 %v6675_v10, %v8729_v2  ;;  %v3544_v57 = vmax.f32 %v3432_v62, 0.0 }
 0x433   :  { %v3435_v0 = vadd.f32 %v6676_v34, %v8735_v41  ;;  %v3545_v9 = vmax.f32 %v3433_v1, 0.0 }
 0x434   :  { %v3546_v56 = vmax.f32 %v3434_v58, 0.0 }
 0x435   :  { %v3547_v63 = vmax.f32 %v3435_v0, 0.0  ;;  %v3177_v22 = vpop.f32.mrb[96].mxu0  ;;  %4021 = vmatmul.mubr.bf16.vlgmr.msra.gmra.mrb[112].mxu1 %v9776_v51 }
 0x436   :  { %v3610_v13 = vpack.c.bf16 %v3546_v56, %v3544_v57  ;;  %v6677_v21 = vadd.f32 %v3177_v22, %v8914_v18  ;;  %v3179_v59 = vpop.f32.mrb[97].mxu0  ;;  %4219 = vmatpush1.bf16.msra.mxu1 %v7473_v7  ;;  %4030 = vmatprep.mubr.bf16.mxu1 %v9732_v19 }
 0x437   :  { %v3611_v28 = vpack.c.bf16 %v3547_v63, %v3545_v9  ;;  %v6678_v25 = vadd.f32 %v3179_v59, %v8920_v40  ;;  %v3181_v38 = vpop.f32.mrb[98].mxu0  ;;  %4220 = vmatprep.subr.bf16.mxu1 %v7478_v8  ;;  %v7479_v40 = vld [vmem:[%s9688_s3 + $0x120] ss:$8 sps:$4 sm:$0xff]   ;;  %v7488_v63 = vld [vmem:[%s9688_s3 + $0x150] ss:$8 sps:$4 sm:$0xff]  }
 0x438   :  { %v3436_v12 = vadd.f32 %v6677_v21, %v8729_v2  ;;  %v6679_v18 = vadd.f32 %v3181_v38, %v8923_v49  ;;  %v3183_v39 = vpop.f32.mrb[99].mxu0  ;;  %v7484_v49 = vld [vmem:[%s9688_s3 + $0x134] ss:$8 sps:$4 sm:$0xff]   ;;  %v7493_v21 = vld [vmem:[%s9688_s3 + $0x164] ss:$8 sps:$4 sm:$0xff]  }
 0x439   :  { %v3437_v36 = vadd.f32 %v6678_v25, %v8735_v41  ;;  %v6680_v53 = vadd.f32 %v3183_v39, %v8927_v54  ;;  %v3643_v35 = vmax.bf16 %v3611_v28, %v3610_v13  ;;  %v9777_v25 = vld [vmem:[#allocation31_spill] sm:$0xff] }
 0x43a   :  { %v3438_v29 = vadd.f32 %v6679_v18, %v8729_v2  ;;  %4221 = vmatpush1.bf16.msra.mxu1 %v7476_v27  ;;  %v3548_v55 = vmax.f32 %v3436_v12, 0.0 }
 0x43b   :  { %v3439_v26 = vadd.f32 %v6680_v53, %v8735_v41  ;;  %4222 = vmatprep.subr.bf16.mxu1 %v7481_v60  ;;  %v9140_v50 = vmax.bf16 %v3643_v35, %v3642_v61  ;;  %v3549_v54 = vmax.f32 %v3437_v36, 0.0 }
 0x43c   :  { %v3550_v14 = vmax.f32 %v3438_v29, 0.0 }
 0x43d   :  { %v3551_v42 = vmax.f32 %v3439_v26, 0.0  ;;  %v3187_v32 = vpop.f32.mrb[100].mxu0  ;;  %4031 = vmatmul.mubr.bf16.gmra.mrb[116].mxu1 %v8820_v16  ;;  %v7487_v16 = vld [vmem:[%s9688_s3 + $0x144] ss:$8 sps:$4 sm:$0xff]  }
 0x43e   :  { %v3612_v4 = vpack.c.bf16 %v3550_v14, %v3548_v55  ;;  %v6681_v17 = vadd.f32 %v3187_v32, %v8939_v23  ;;  %v3189_v15 = vpop.f32.mrb[101].mxu0  ;;  %4040 = vmatprep.mubr.bf16.mxu1 %v9732_v19  ;;  %4223 = vmatpush1.bf16.msra.mxu1 %v7479_v40  ;;  %v9778_v26 = vld [vmem:[#allocation30_spill] sm:$0xff]  ;;  %v9779_v55 = vld [vmem:[#allocation33_spill] sm:$0xff] }
 0x43f   :  { %v3613_v37 = vpack.c.bf16 %v3551_v42, %v3549_v54  ;;  %v6682_v47 = vadd.f32 %v3189_v15, %v8943_v48  ;;  %v3191_v31 = vpop.f32.mrb[102].mxu0  ;;  %4224 = vmatprep.subr.bf16.mxu1 %v7484_v49  ;;  %v7485_v48 = vld [vmem:[%s9688_s3 + $0x140] ss:$8 sps:$4 sm:$0xff]   ;;  %v7494_v42 = vld [vmem:[%s9688_s3 + $0x170] ss:$8 sps:$4 sm:$0xff]  }
 0x440   :  { %v3440_v5 = vadd.f32 %v6681_v17, %v8729_v2  ;;  %v6683_v23 = vadd.f32 %v3191_v31, %v8946_v20  ;;  %v3193_v62 = vpop.f32.mrb[103].mxu0  ;;  %v7490_v20 = vld [vmem:[%s9688_s3 + $0x154] ss:$8 sps:$4 sm:$0xff]  }
 0x441   :  { %v3441_v10 = vadd.f32 %v6682_v47, %v8735_v41  ;;  %v6684_v3 = vadd.f32 %v3193_v62, %v8950_v33  ;;  %v3644_v1 = vmax.bf16 %v3613_v37, %v3612_v4  ;;  %v9780_v4 = vld [vmem:[#allocation34_spill] sm:$0xff]  ;;  %v9781_v47 = vld [vmem:[#allocation35_spill] sm:$0xff] }
 0x442   :  { %v3442_v34 = vadd.f32 %v6683_v23, %v8729_v2  ;;  %4225 = vmatpush1.bf16.msra.mxu1 %v7482_v30  ;;  %v3552_v58 = vmax.f32 %v3440_v5, 0.0  ;;  %v7499_v30 = vld [vmem:[%s9688_s3 + $0x184] ss:$8 sps:$4 sm:$0xff]  }
 0x443   :  { %v3443_v61 = vadd.f32 %v6684_v3, %v8735_v41  ;;  %4226 = vmatprep.subr.bf16.mxu1 %v7487_v16  ;;  %v3553_v0 = vmax.f32 %v3441_v10, 0.0  ;;  %v9782_v23 = vld [vmem:[#allocation2_spill] sm:$0xff] }
 0x444   :  { %v3554_v7 = vmax.f32 %v3442_v34, 0.0 }
 0x445   :  { %v3555_v8 = vmax.f32 %v3443_v61, 0.0  ;;  %v3197_v33 = vpop.f32.mrb[104].mxu0  ;;  %4041 = vmatmul.mubr.bf16.gmra.mrb[120].mxu1 %v8879_v45 }
 0x446   :  { %v3614_v57 = vpack.c.bf16 %v3554_v7, %v3552_v58  ;;  %v6685_v56 = vadd.f32 %v3197_v33, %v8956_v43  ;;  %v3199_v9 = vpop.f32.mrb[105].mxu0  ;;  %4050 = vmatprep.mubr.bf16.mxu1 %v9732_v19  ;;  %4227 = vmatpush1.bf16.msra.mxu1 %v7485_v48  ;;  %v9783_v58 = vld [vmem:[#allocation32_spill] sm:$0xff] }
 0x447   :  { %v3615_v22 = vpack.c.bf16 %v3555_v8, %v3553_v0  ;;  %v6686_v51 = vadd.f32 %v3199_v9, %v8959_v52  ;;  %v3201_v13 = vpop.f32.mrb[106].mxu0  ;;  %4228 = vmatprep.subr.bf16.mxu1 %v7490_v20  ;;  %v7491_v52 = vld [vmem:[%s9688_s3 + $0x160] ss:$8 sps:$4 sm:$0xff]   ;;  %v7500_v9 = vld [vmem:[%s9688_s3 + $0x190] ss:$8 sps:$4 sm:$0xff]  }
 0x448   :  { %v3444_v59 = vadd.f32 %v6685_v56, %v8729_v2  ;;  %v6687_v43 = vadd.f32 %v3201_v13, %v8962_v24  ;;  %v3203_v27 = vpop.f32.mrb[107].mxu0  ;;  %v7496_v24 = vld [vmem:[%s9688_s3 + $0x174] ss:$8 sps:$4 sm:$0xff]   ;;  %v7511_v13 = vld [vmem:[%s9688_s3 + $0x1c4] ss:$8 sps:$4 sm:$0xff]  }
 0x449   :  { %v3445_v28 = vadd.f32 %v6686_v51, %v8735_v41  ;;  %v6688_v38 = vadd.f32 %v3203_v27, %v9777_v25  ;;  %v3645_v60 = vmax.bf16 %v3615_v22, %v3614_v57  ;;  %v9784_v57 = vld [vmem:[#allocation3_spill] sm:$0xff]  ;;  %v7502_v56 = vld [vmem:[%s9688_s3 + $0x194] ss:$8 sps:$4 sm:$0xff]   ;;  %v7506_v51 = vld [vmem:[%s9688_s3 + $0x1b0] ss:$8 sps:$4 sm:$0xff]  }
 0x44a   :  { %v3446_v12 = vadd.f32 %v6687_v43, %v8729_v2  ;;  %4229 = vmatpush1.bf16.msra.mxu1 %v7488_v63  ;;  %v3556_v36 = vmax.f32 %v3444_v59, 0.0  ;;  %v7505_v63 = vld [vmem:[%s9688_s3 + $0x1a4] ss:$8 sps:$4 sm:$0xff]   ;;  %v7503_v22 = vld [vmem:[%s9688_s3 + $0x1a0] ss:$8 sps:$4 sm:$0xff]  }
 0x44b   :  { %v3447_v18 = vadd.f32 %v6688_v38, %v8735_v41  ;;  %4230 = vmatprep.subr.bf16.mxu1 %v7493_v21  ;;  %v9186_v39 = vmax.bf16 %v3645_v60, %v3644_v1  ;;  %v3557_v35 = vmax.f32 %v3445_v28, 0.0  ;;  %v7509_v21 = vld [vmem:[%s9688_s3 + $0x1c0] ss:$8 sps:$4 sm:$0xff]   ;;  %v7514_v59 = vld [vmem:[%s9688_s3 + $0x1d4] ss:$8 sps:$4 sm:$0xff]  }
 0x44c   :  { %v3558_v53 = vmax.f32 %v3446_v12, 0.0  ;;  %v7512_v43 = vld [vmem:[%s9688_s3 + $0x1d0] ss:$8 sps:$4 sm:$0xff]   ;;  %v7517_v27 = vld [vmem:[%s9688_s3 + $0x1e4] ss:$8 sps:$4 sm:$0xff]  }
 0x44d   :  { %v3559_v29 = vmax.f32 %v3447_v18, 0.0  ;;  %v3207_v40 = vpop.f32.mrb[108].mxu0  ;;  %4051 = vmatmul.mubr.bf16.gmra.mrb[124].mxu1 %v9778_v26  ;;  %v7515_v28 = vld [vmem:[%s9688_s3 + $0x1e0] ss:$8 sps:$4 sm:$0xff]   ;;  %v7520_v25 = vld [vmem:[%s9688_s3 + $0x1f4] ss:$8 sps:$4 sm:$0xff]  }
 0x44e   :  { %v3616_v49 = vpack.c.bf16 %v3558_v53, %v3556_v36  ;;  %v6689_v14 = vadd.f32 %v3207_v40, %v9779_v55  ;;  %v3209_v54 = vpop.f32.mrb[109].mxu0  ;;  %4060 = vmatprep.mubr.bf16.mxu1 %v9732_v19  ;;  %4231 = vmatpush1.bf16.msra.mxu1 %v7491_v52  ;;  %v7518_v38 = vld [vmem:[%s9688_s3 + $0x1f0] ss:$8 sps:$4 sm:$0xff]   ;;  %v7523_v60 = vld [vmem:[%s9688_s3 + $0x204] ss:$8 sps:$4 sm:$0xff]  }
 0x44f   :  { %v3617_v32 = vpack.c.bf16 %v3559_v29, %v3557_v35  ;;  %v6690_v17 = vadd.f32 %v3209_v54, %v9780_v4  ;;  %v3211_v15 = vpop.f32.mrb[110].mxu0  ;;  %4232 = vmatprep.subr.bf16.mxu1 %v7496_v24  ;;  %v7521_v12 = vld [vmem:[%s9688_s3 + $0x200] ss:$8 sps:$4 sm:$0xff]   ;;  %v7526_v52 = vld [vmem:[%s9688_s3 + $0x214] ss:$8 sps:$4 sm:$0xff]  }
 0x450   :  { %v3448_v37 = vadd.f32 %v6689_v14, %v8729_v2  ;;  %v6691_v31 = vadd.f32 %v3211_v15, %v9781_v47  ;;  %v3213_v16 = vpop.f32.mrb[111].mxu0  ;;  %v7524_v18 = vld [vmem:[%s9688_s3 + $0x210] ss:$8 sps:$4 sm:$0xff]   ;;  %v7529_v24 = vld [vmem:[%s9688_s3 + $0x224] ss:$8 sps:$4 sm:$0xff]  }
 0x451   :  { %v3449_v5 = vadd.f32 %v6690_v17, %v8735_v41  ;;  %v6692_v62 = vadd.f32 %v3213_v16, %v9782_v23  ;;  %v3646_v10 = vmax.bf16 %v3617_v32, %v3616_v49  ;;  %v7527_v36 = vld [vmem:[%s9688_s3 + $0x220] ss:$8 sps:$4 sm:$0xff]   ;;  %v7532_v53 = vld [vmem:[%s9688_s3 + $0x234] ss:$8 sps:$4 sm:$0xff]   ;;  %v7530_v35 = vld [vmem:[%s9688_s3 + $0x230] ss:$8 sps:$4 sm:$0xff]  }
 0x452   :  { %v3450_v3 = vadd.f32 %v6691_v31, %v8729_v2  ;;  %4233 = vmatpush1.bf16.msra.mxu1 %v7494_v42  ;;  %v3560_v34 = vmax.f32 %v3448_v37, 0.0  ;;  %v9785_v2 = vld [vmem:[#allocation4_spill] sm:$0xff]  ;;  %v7535_v29 = vld [vmem:[%s9688_s3 + $0x244] ss:$8 sps:$4 sm:$0xff]   ;;  %v7533_v40 = vld [vmem:[%s9688_s3 + $0x240] ss:$8 sps:$4 sm:$0xff]  }
 0x453   :  { %v3451_v1 = vadd.f32 %v6692_v62, %v8735_v41  ;;  %4488 = vmatprep.subr.bf16.mxu1 %v7499_v30  ;;  %v3561_v61 = vmax.f32 %v3449_v5, 0.0  ;;  %v7497_v41 = vld [vmem:[%s9688_s3 + $0x180] ss:$8 sps:$4 sm:$0xff]   ;;  %v7536_v49 = vld [vmem:[%s9688_s3 + $0x250] ss:$8 sps:$4 sm:$0xff]   ;;  %v7620_v32 = vmov 0.0  }
 0x454   :  { %v3562_v48 = vmax.f32 %v3450_v3, 0.0  ;;  %v7541_v55 = vld [vmem:[%s9688_s3 + $0x264] ss:$8 sps:$4 sm:$0xff]   ;;  %v7539_v14 = vld [vmem:[%s9688_s3 + $0x260] ss:$8 sps:$4 sm:$0xff]   ;;  %v7547_v15 = vld [vmem:[%s9690_s5 + $0x50] sm:$0xff]  }
 0x455   :  { %v3563_v20 = vmax.f32 %v3451_v1, 0.0  ;;  %4061 = vmatmul.mubr.bf16.gmra.mrb[128].mxu1 %v9783_v58  ;;  %v7544_v54 = vld [vmem:[%s9688_s3 + $0x274] ss:$8 sps:$4 sm:$0xff]   ;;  %v7542_v42 = vld [vmem:[%s9688_s3 + $0x270] ss:$8 sps:$4 sm:$0xff]   ;;  %v7545_v4 = vld [vmem:[%s9690_s5 + $0x40] sm:$0xff]  }
 0x456   :  { %v3618_v7 = vpack.c.bf16 %v3562_v48, %v3560_v34  ;;  %4070 = vmatprep.mubr.bf16.mxu1 %v9732_v19  ;;  %v7546_v17 = vld [vmem:[%s9690_s5 + $0x48] sm:$0xff]   ;;  %v7548_v30 = vld [vmem:[%s9690_s5 + $0x58] sm:$0xff]   ;;  %v7549_v37 = vld [vmem:[%s9690_s5 + $0x60] sm:$0xff]  }
 0x457   :  { %v3619_v0 = vpack.c.bf16 %v3563_v20, %v3561_v61 }
 0x459   :  { %v3647_v8 = vmax.bf16 %v3619_v0, %v3618_v7 }
 0x45b   :  { %v9206_v33 = vmax.bf16 %v3647_v8, %v3646_v10 }
 0x45d   :  { %4071 = vmatmul.mubr.bf16.gmra.mrb[132].mxu1 %v9784_v57 }
 0x45e   :  { %4080 = vmatprep.mubr.bf16.mxu1 %v9732_v19 }
 0x465   :  { %4081 = vmatmul.mubr.bf16.gmra.mrb[136].mxu1 %v9785_v2 }
 0x466   :  { %4090 = vmatprep.mubr.bf16.mxu1 %v9732_v19 }
 0x46d   :  { %4091 = vmatmul.mubr.bf16.gmra.mrb[140].mxu1 %v9039_v11 }
 0x46e   :  { %4100 = vmatprep.mubr.bf16.mxu1 %v9732_v19 }
 0x475   :  { %4101 = vmatmul.mubr.bf16.gmra.mrb[144].mxu1 %v9059_v46 }
 0x476   :  { %4110 = vmatprep.mubr.bf16.mxu1 %v9732_v19 }
 0x47d   :  { %4111 = vmatmul.mubr.bf16.gmra.mrb[148].mxu1 %v9079_v6 }
 0x47e   :  { %4250 = vmatprep.mubr.bf16.mxu1 %v9732_v19 }
 0x485   :  { %4251 = vmatmul.mubr.bf16.vlgmr.msra.gmra.mrb[112].mxu1 %v8879_v45  ;;  %v7508_v45 = vld [vmem:[%s9688_s3 + $0x1b4] ss:$8 sps:$4 sm:$0xff]  }
 0x486   :  { %4489 = vmatpush1.bf16.msra.mxu1 %v7497_v41  ;;  %4260 = vmatprep.mubr.bf16.mxu1 %v9732_v19 }
 0x487   :  { %4490 = vmatprep.subr.bf16.mxu1 %v7502_v56 }
 0x48a   :  { %4491 = vmatpush1.bf16.msra.mxu1 %v7500_v9 }
 0x48b   :  { %4492 = vmatprep.subr.bf16.mxu1 %v7505_v63 }
 0x48d   :  { %4261 = vmatmul.mubr.bf16.gmra.mrb[116].mxu1 %v9778_v26 }
 0x48e   :  { %4270 = vmatprep.mubr.bf16.mxu1 %v9732_v19  ;;  %4493 = vmatpush1.bf16.msra.mxu1 %v7503_v22 }
 0x48f   :  { %4494 = vmatprep.subr.bf16.mxu1 %v7508_v45 }
 0x492   :  { %4495 = vmatpush1.bf16.msra.mxu1 %v7506_v51 }
 0x493   :  { %4496 = vmatprep.subr.bf16.mxu1 %v7511_v13 }
 0x495   :  { %4271 = vmatmul.mubr.bf16.gmra.mrb[120].mxu1 %v9783_v58 }
 0x496   :  { %4280 = vmatprep.mubr.bf16.mxu1 %v9732_v19  ;;  %4497 = vmatpush1.bf16.msra.mxu1 %v7509_v21 }
 0x497   :  { %4498 = vmatprep.subr.bf16.mxu1 %v7514_v59 }
 0x49a   :  { %4499 = vmatpush1.bf16.msra.mxu1 %v7512_v43 }
 0x49b   :  { %4500 = vmatprep.subr.bf16.mxu1 %v7517_v27 }
 0x49d   :  { %4281 = vmatmul.mubr.bf16.gmra.mrb[124].mxu1 %v9784_v57 }
 0x49e   :  { %4290 = vmatprep.mubr.bf16.mxu1 %v9732_v19  ;;  %4501 = vmatpush1.bf16.msra.mxu1 %v7515_v28 }
 0x49f   :  { %4502 = vmatprep.subr.bf16.mxu1 %v7520_v25 }
 0x4a2   :  { %4503 = vmatpush1.bf16.msra.mxu1 %v7518_v38 }
 0x4a3   :  { %4758 = vmatprep.subr.bf16.mxu1 %v7523_v60 }
 0x4a5   :  { %4291 = vmatmul.mubr.bf16.gmra.mrb[128].mxu1 %v9785_v2 }
 0x4a6   :  { %4300 = vmatprep.mubr.bf16.mxu1 %v9732_v19 }
 0x4ad   :  { %4301 = vmatmul.mubr.bf16.gmra.mrb[132].mxu1 %v9039_v11 }
 0x4ae   :  { %4310 = vmatprep.mubr.bf16.mxu1 %v9732_v19 }
 0x4b5   :  { %4311 = vmatmul.mubr.bf16.gmra.mrb[136].mxu1 %v9059_v46 }
 0x4b6   :  { %4320 = vmatprep.mubr.bf16.mxu1 %v9732_v19 }
 0x4bd   :  { %4321 = vmatmul.mubr.bf16.gmra.mrb[140].mxu1 %v9079_v6 }
 0x4be   :  { %4330 = vmatprep.mubr.bf16.mxu1 %v9732_v19 }
 0x4c5   :  { %4331 = vmatmul.mubr.bf16.gmra.mrb[144].mxu1 %v9100_v44 }
 0x4c6   :  { %4340 = vmatprep.mubr.bf16.mxu1 %v9732_v19 }
 0x4cd   :  { %4341 = vmatmul.mubr.bf16.gmra.mrb[148].mxu1 %v9140_v50 }
 0x4ce   :  { %4520 = vmatprep.mubr.bf16.mxu1 %v9732_v19 }
 0x4d5   :  { %4521 = vmatmul.mubr.bf16.vlgmr.msra.gmra.mrb[112].mxu1 %v9778_v26  ;;  %v7538_v26 = vld [vmem:[%s9688_s3 + $0x254] ss:$8 sps:$4 sm:$0xff]  }
 0x4d6   :  { %4759 = vmatpush1.bf16.msra.mxu1 %v7521_v12  ;;  %4530 = vmatprep.mubr.bf16.mxu1 %v9732_v19 }
 0x4d7   :  { %4760 = vmatprep.subr.bf16.mxu1 %v7526_v52 }
 0x4da   :  { %4761 = vmatpush1.bf16.msra.mxu1 %v7524_v18 }
 0x4db   :  { %4762 = vmatprep.subr.bf16.mxu1 %v7529_v24 }
 0x4dd   :  { %4531 = vmatmul.mubr.bf16.gmra.mrb[116].mxu1 %v9783_v58 }
 0x4de   :  { %4540 = vmatprep.mubr.bf16.mxu1 %v9732_v19  ;;  %4763 = vmatpush1.bf16.msra.mxu1 %v7527_v36 }
 0x4df   :  { %4764 = vmatprep.subr.bf16.mxu1 %v7532_v53 }
 0x4e2   :  { %4765 = vmatpush1.bf16.msra.mxu1 %v7530_v35 }
 0x4e3   :  { %4766 = vmatprep.subr.bf16.mxu1 %v7535_v29 }
 0x4e5   :  { %4541 = vmatmul.mubr.bf16.gmra.mrb[120].mxu1 %v9784_v57 }
 0x4e6   :  { %4550 = vmatprep.mubr.bf16.mxu1 %v9732_v19  ;;  %4767 = vmatpush1.bf16.msra.mxu1 %v7533_v40 }
 0x4e7   :  { %4768 = vmatprep.subr.bf16.mxu1 %v7538_v26 }
 0x4ea   :  { %4769 = vmatpush1.bf16.msra.mxu1 %v7536_v49 }
 0x4eb   :  { %4770 = vmatprep.subr.bf16.mxu1 %v7541_v55 }
 0x4ed   :  { %4551 = vmatmul.mubr.bf16.gmra.mrb[124].mxu1 %v9785_v2 }
 0x4ee   :  { %4560 = vmatprep.mubr.bf16.mxu1 %v9732_v19  ;;  %4771 = vmatpush1.bf16.msra.mxu1 %v7539_v14 }
 0x4ef   :  { %4772 = vmatprep.subr.bf16.mxu1 %v7544_v54 }
 0x4f2   :  { %4773 = vmatpush1.bf16.msra.mxu1 %v7542_v42 }
 0x4f3   :  { %6425 = vmatprep.subr.bf16.mxu1 %v7620_v32 }
 0x4f5   :  { %4561 = vmatmul.mubr.bf16.gmra.mrb[128].mxu1 %v9039_v11 }
 0x4f6   :  { %4570 = vmatprep.mubr.bf16.mxu1 %v9732_v19 }
 0x4fd   :  { %4571 = vmatmul.mubr.bf16.gmra.mrb[132].mxu1 %v9059_v46 }
 0x4fe   :  { %4580 = vmatprep.mubr.bf16.mxu1 %v9732_v19 }
 0x505   :  { %4581 = vmatmul.mubr.bf16.gmra.mrb[136].mxu1 %v9079_v6 }
 0x506   :  { %4590 = vmatprep.mubr.bf16.mxu1 %v9732_v19 }
 0x50d   :  { %4591 = vmatmul.mubr.bf16.gmra.mrb[140].mxu1 %v9100_v44 }
 0x50e   :  { %4600 = vmatprep.mubr.bf16.mxu1 %v9732_v19 }
 0x515   :  { %4601 = vmatmul.mubr.bf16.gmra.mrb[144].mxu1 %v9140_v50 }
 0x516   :  { %4610 = vmatprep.mubr.bf16.mxu1 %v9732_v19 }
 0x51d   :  { %4611 = vmatmul.mubr.bf16.gmra.mrb[148].mxu1 %v9186_v39 }
 0x51e   :  { %4790 = vmatprep.mubr.bf16.mxu1 %v9732_v19 }
 0x525   :  { %4791 = vmatmul.mubr.bf16.vlgmr.msra.gmra.mrb[112].mxu1 %v9783_v58 }
 0x526   :  { %4800 = vmatprep.mubr.bf16.mxu1 %v9732_v19  ;;  %6426 = vmatpush3.bf16.msra.mxu1 %v7545_v4 }
 0x527   :  { %6427 = vmatprep.subr.bf16.mxu1 %v7620_v32 }
 0x52a   :  { %6428 = vmatpush3.bf16.msra.mxu1 %v7546_v17 }
 0x52b   :  { %6429 = vmatprep.subr.bf16.mxu1 %v7620_v32 }
 0x52d   :  { %4801 = vmatmul.mubr.bf16.gmra.mrb[116].mxu1 %v9784_v57 }
 0x52e   :  { %4810 = vmatprep.mubr.bf16.mxu1 %v9732_v19  ;;  %6430 = vmatpush3.bf16.msra.mxu1 %v7547_v15 }
 0x52f   :  { %6431 = vmatprep.subr.bf16.mxu1 %v7620_v32 }
 0x532   :  { %6432 = vmatpush3.bf16.msra.mxu1 %v7548_v30 }
 0x533   :  { %6433 = vmatprep.subr.bf16.mxu1 %v7620_v32 }
 0x535   :  { %4811 = vmatmul.mubr.bf16.gmra.mrb[120].mxu1 %v9785_v2 }
 0x536   :  { %4820 = vmatprep.mubr.bf16.mxu1 %v9732_v19  ;;  %6434 = vmatpush3.bf16.msra.mxu1 %v7549_v37 }
 0x537   :  { %6435 = vmatprep.subr.bf16.mxu1 %v7620_v32 }
 0x53d   :  { %4821 = vmatmul.mubr.bf16.gmra.mrb[124].mxu1 %v9039_v11  ;;  %v7550_v11 = vld [vmem:[%s9690_s5 + $0x68] sm:$0xff]  }
 0x53e   :  { %4830 = vmatprep.mubr.bf16.mxu1 %v9732_v19  ;;  %6436 = vmatpush3.bf16.msra.mxu1 %v7550_v11 }
 0x53f   :  { %6437 = vmatprep.subr.bf16.mxu1 %v7620_v32 }
 0x545   :  { %4831 = vmatmul.mubr.bf16.gmra.mrb[128].mxu1 %v9059_v46  ;;  %v7551_v46 = vld [vmem:[%s9690_s5 + $0x70] sm:$0xff]  }
 0x546   :  { %4840 = vmatprep.mubr.bf16.mxu1 %v9732_v19  ;;  %6438 = vmatpush3.bf16.msra.mxu1 %v7551_v46 }
 0x547   :  { %6439 = vmatprep.subr.bf16.mxu1 %v7620_v32 }
 0x54d   :  { %4841 = vmatmul.mubr.bf16.gmra.mrb[132].mxu1 %v9079_v6  ;;  %v4931_v6 = vld [vmem:[%s9691_s4] sm:$0x3] }
 0x54e   :  { %4850 = vmatprep.mubr.bf16.mxu1 %v9732_v19 }
 0x555   :  { %4851 = vmatmul.mubr.bf16.gmra.mrb[136].mxu1 %v9100_v44  ;;  %v9786_v44 = vld [vmem:[#allocation18_spill] sm:$0xff] }
 0x556   :  { %4860 = vmatprep.mubr.bf16.mxu1 %v9732_v19  ;;  %v9788_v47 = vsub.s32 1, %v9786_v44 }
 0x558   :  { %v9414_v31 = vrot.slane %v4931_v6, %v9788_v47 }
 0x55d   :  { %4861 = vmatmul.mubr.bf16.gmra.mrb[140].mxu1 %v9140_v50  ;;  %v9787_v50 = vsub.s32 0, %v9786_v44 }
 0x55e   :  { %4870 = vmatprep.mubr.bf16.mxu1 %v9732_v19 }
 0x565   :  { %4871 = vmatmul.mubr.bf16.gmra.mrb[144].mxu1 %v9186_v39  ;;  %v9410_v39 = vrot.slane %v4931_v6, %v9787_v50 }
 0x566   :  { %4880 = vmatprep.mubr.bf16.mxu1 %v9732_v19  ;;  %v7552_v19 = vld [vmem:[%s9690_s5 + $0x78] sm:$0xff]  }
 0x567   :  { %6440 = vmatpush3.bf16.msra.mxu1 %v7552_v19 }
 0x568   :  { %6445 = vmatprep.subr.bf16.mxu1 %v7620_v32 }
 0x56d   :  { %4881 = vmatmul.mubr.bf16.gmra.mrb[148].mxu1 %v9206_v33 }
 0x56e   :  { %6441 = vmatprep.mubr.msk.bf16.mxu1 %vm7621_vm0, %v7620_v32 }
 0x5f8   :  { %v4792_v16 = vpop.f32.mrb[112].mxu1 }
 0x5f9   :  { %v4943_v5 = vadd.f32 %v9410_v39, %v4792_v16  ;;  %v4794_v23 = vpop.f32.mrb[113].mxu1 }
 0x5fa   :  { %v4944_v62 = vadd.f32 %v9414_v31, %v4794_v23  ;;  %v4796_v10 = vpop.f32.mrb[114].mxu1 }
 0x5fb   :  { %v4945_v3 = vadd.f32 %v9410_v39, %v4796_v10  ;;  %v4798_v1 = vpop.f32.mrb[115].mxu1  ;;  %v4983_v48 = vmax.f32 %v4943_v5, 0.0 }
 0x5fc   :  { %v4946_v34 = vadd.f32 %v9414_v31, %v4798_v1  ;;  %v4984_v20 = vmax.f32 %v4944_v62, 0.0 }
 0x5fd   :  { %v4985_v61 = vmax.f32 %v4945_v3, 0.0 }
 0x5fe   :  { %v4986_v58 = vmax.f32 %v4946_v34, 0.0  ;;  %v7553_v34 = vld [vmem:[%s9690_s5] sm:$0xff]  }
 0x5ff   :  { %v5023_v7 = vpack.c.bf16 %v4985_v61, %v4983_v48 }
 0x600   :  { %v5024_v0 = vpack.c.bf16 %v4986_v58, %v4984_v20  ;;  %v4802_v8 = vpop.f32.mrb[116].mxu1 }
 0x601   :  { %v4947_v33 = vadd.f32 %v9410_v39, %v4802_v8  ;;  %v4804_v57 = vpop.f32.mrb[117].mxu1 }
 0x602   :  { %v5043_v2 = vmax.bf16 %v5024_v0, %v5023_v7  ;;  %v4948_v41 = vadd.f32 %v9414_v31, %v4804_v57  ;;  %v4806_v56 = vpop.f32.mrb[118].mxu1 }
 0x603   :  { %v4949_v9 = vadd.f32 %v9410_v39, %v4806_v56  ;;  %v4808_v63 = vpop.f32.mrb[119].mxu1  ;;  %v4987_v45 = vmax.f32 %v4947_v33, 0.0  ;;  %v7554_v33 = vld [vmem:[%s9690_s5 + $0x8] sm:$0xff]  }
 0x604   :  { %v4950_v22 = vadd.f32 %v9414_v31, %v4808_v63  ;;  %v4988_v13 = vmax.f32 %v4948_v41, 0.0 }
 0x605   :  { %v4989_v51 = vmax.f32 %v4949_v9, 0.0 }
 0x606   :  { %v4990_v21 = vmax.f32 %v4950_v22, 0.0 }
 0x607   :  { %v5025_v59 = vpack.c.bf16 %v4989_v51, %v4987_v45 }
 0x608   :  { %v5026_v43 = vpack.c.bf16 %v4990_v21, %v4988_v13  ;;  %v4812_v27 = vpop.f32.mrb[120].mxu1  ;;  %v7555_v13 = vld [vmem:[%s9690_s5 + $0x10] sm:$0xff]  }
 0x609   :  { %v4951_v28 = vadd.f32 %v9410_v39, %v4812_v27  ;;  %v4814_v25 = vpop.f32.mrb[121].mxu1 }
 0x60a   :  { %v5044_v38 = vmax.bf16 %v5026_v43, %v5025_v59  ;;  %v4952_v60 = vadd.f32 %v9414_v31, %v4814_v25  ;;  %v4816_v12 = vpop.f32.mrb[122].mxu1 }
 0x60b   :  { %v4953_v52 = vadd.f32 %v9410_v39, %v4816_v12  ;;  %v4818_v18 = vpop.f32.mrb[123].mxu1  ;;  %v4991_v53 = vmax.f32 %v4951_v28, 0.0 }
 0x60c   :  { %v9427_v24 = vmax.bf16 %v5044_v38, %v5043_v2  ;;  %v4954_v36 = vadd.f32 %v9414_v31, %v4818_v18  ;;  %v4992_v29 = vmax.f32 %v4952_v60, 0.0  ;;  %v7556_v38 = vld [vmem:[%s9690_s5 + $0x18] sm:$0xff]  }
 0x60d   :  { %v4993_v35 = vmax.f32 %v4953_v52, 0.0 }
 0x60e   :  { %v4994_v40 = vmax.f32 %v4954_v36, 0.0 }
 0x60f   :  { %v5027_v26 = vpack.c.bf16 %v4993_v35, %v4991_v53 }
 0x610   :  { %v5028_v49 = vpack.c.bf16 %v4994_v40, %v4992_v29  ;;  %v4822_v55 = vpop.f32.mrb[124].mxu1 }
 0x611   :  { %v4955_v14 = vadd.f32 %v9410_v39, %v4822_v55  ;;  %v4824_v54 = vpop.f32.mrb[125].mxu1 }
 0x612   :  { %v5045_v42 = vmax.bf16 %v5028_v49, %v5027_v26  ;;  %v4956_v4 = vadd.f32 %v9414_v31, %v4824_v54  ;;  %v4826_v17 = vpop.f32.mrb[126].mxu1  ;;  %v7557_v26 = vld [vmem:[%s9690_s5 + $0x20] sm:$0xff]  }
 0x613   :  { %v4957_v15 = vadd.f32 %v9410_v39, %v4826_v17  ;;  %v4828_v30 = vpop.f32.mrb[127].mxu1  ;;  %v4995_v11 = vmax.f32 %v4955_v14, 0.0 }
 0x614   :  { %v4958_v37 = vadd.f32 %v9414_v31, %v4828_v30  ;;  %v4996_v19 = vmax.f32 %v4956_v4, 0.0 }
 0x615   :  { %v4997_v46 = vmax.f32 %v4957_v15, 0.0  ;;  %v7558_v15 = vld [vmem:[%s9690_s5 + $0x28] sm:$0xff]  }
 0x616   :  { %v4998_v6 = vmax.f32 %v4958_v37, 0.0 }
 0x617   :  { %v5029_v44 = vpack.c.bf16 %v4997_v46, %v4995_v11 }
 0x618   :  { %v5030_v50 = vpack.c.bf16 %v4998_v6, %v4996_v19  ;;  %v4832_v47 = vpop.f32.mrb[128].mxu1 }
 0x619   :  { %v4959_v16 = vadd.f32 %v9410_v39, %v4832_v47  ;;  %v4834_v5 = vpop.f32.mrb[129].mxu1 }
 0x61a   :  { %v5046_v23 = vmax.bf16 %v5030_v50, %v5029_v44  ;;  %v4960_v62 = vadd.f32 %v9414_v31, %v4834_v5  ;;  %v4836_v10 = vpop.f32.mrb[130].mxu1 }
 0x61b   :  { %v4961_v3 = vadd.f32 %v9410_v39, %v4836_v10  ;;  %v4838_v1 = vpop.f32.mrb[131].mxu1  ;;  %v4999_v20 = vmax.f32 %v4959_v16, 0.0  ;;  %v7559_v16 = vld [vmem:[%s9690_s5 + $0x30] sm:$0xff]  }
 0x61c   :  { %v5054_v48 = vmax.bf16 %v5046_v23, %v5045_v42  ;;  %v4962_v61 = vadd.f32 %v9414_v31, %v4838_v1  ;;  %v5000_v7 = vmax.f32 %v4960_v62, 0.0 }
 0x61d   :  { %v5001_v58 = vmax.f32 %v4961_v3, 0.0 }
 0x61e   :  { %v5002_v0 = vmax.f32 %v4962_v61, 0.0  ;;  %6442 = vmatmul.mubr.bf16.vlgmr.msra.gmra.mrb[152].mxu1 %v5054_v48 }
 0x61f   :  { %v5031_v8 = vpack.c.bf16 %v5001_v58, %v4999_v20  ;;  %6446 = vmatpush3.bf16.msra.mxu1 %v7553_v34  ;;  %6461 = vmatprep.mubr.msk.bf16.mxu1 %vm7621_vm0, %v7620_v32  ;;  %v7560_v34 = vld [vmem:[%s9690_s5 + $0x38] sm:$0xff]  }
 0x620   :  { %v5032_v57 = vpack.c.bf16 %v5002_v0, %v5000_v7  ;;  %v4842_v2 = vpop.f32.mrb[132].mxu1  ;;  %6447 = vmatprep.subr.bf16.mxu1 %v7620_v32 }
 0x621   :  { %v4963_v41 = vadd.f32 %v9410_v39, %v4842_v2  ;;  %v4844_v56 = vpop.f32.mrb[133].mxu1  ;;  %v7561_v2 = vld [vmem:[%s9690_s5 + $0x80] sm:$0xff]  }
 0x622   :  { %v5047_v9 = vmax.bf16 %v5032_v57, %v5031_v8  ;;  %v4964_v63 = vadd.f32 %v9414_v31, %v4844_v56  ;;  %v4846_v22 = vpop.f32.mrb[134].mxu1 }
 0x623   :  { %v4965_v45 = vadd.f32 %v9410_v39, %v4846_v22  ;;  %6448 = vmatpush3.bf16.msra.mxu1 %v7554_v33  ;;  %v4848_v51 = vpop.f32.mrb[135].mxu1  ;;  %v5003_v59 = vmax.f32 %v4963_v41, 0.0 }
 0x624   :  { %v4966_v21 = vadd.f32 %v9414_v31, %v4848_v51  ;;  %6449 = vmatprep.subr.bf16.mxu1 %v7620_v32  ;;  %v5004_v27 = vmax.f32 %v4964_v63, 0.0 }
 0x625   :  { %v5005_v43 = vmax.f32 %v4965_v45, 0.0 }
 0x626   :  { %v5006_v28 = vmax.f32 %v4966_v21, 0.0 }
 0x627   :  { %v5033_v25 = vpack.c.bf16 %v5005_v43, %v5003_v59  ;;  %6450 = vmatpush3.bf16.msra.mxu1 %v7555_v13  ;;  %v7562_v13 = vld [vmem:[%s9690_s5 + $0x88] sm:$0xff]  }
 0x628   :  { %v5034_v60 = vpack.c.bf16 %v5006_v28, %v5004_v27  ;;  %v4852_v12 = vpop.f32.mrb[136].mxu1  ;;  %6451 = vmatprep.subr.bf16.mxu1 %v7620_v32 }
 0x629   :  { %v4967_v52 = vadd.f32 %v9410_v39, %v4852_v12  ;;  %v4854_v18 = vpop.f32.mrb[137].mxu1  ;;  %v7563_v12 = vld [vmem:[%s9690_s5 + $0x90] sm:$0xff]  }
 0x62a   :  { %v5048_v36 = vmax.bf16 %v5034_v60, %v5033_v25  ;;  %v4968_v53 = vadd.f32 %v9414_v31, %v4854_v18  ;;  %v4856_v35 = vpop.f32.mrb[138].mxu1 }
 0x62b   :  { %v4969_v29 = vadd.f32 %v9410_v39, %v4856_v35  ;;  %6452 = vmatpush3.bf16.msra.mxu1 %v7556_v38  ;;  %v4858_v40 = vpop.f32.mrb[139].mxu1  ;;  %v5007_v14 = vmax.f32 %v4967_v52, 0.0 }
 0x62c   :  { %v9465_v49 = vmax.bf16 %v5048_v36, %v5047_v9  ;;  %v4970_v55 = vadd.f32 %v9414_v31, %v4858_v40  ;;  %6453 = vmatprep.subr.bf16.mxu1 %v7620_v32  ;;  %v5008_v42 = vmax.f32 %v4968_v53, 0.0 }
 0x62d   :  { %v5009_v54 = vmax.f32 %v4969_v29, 0.0 }
 0x62e   :  { %v5010_v4 = vmax.f32 %v4970_v55, 0.0 }
 0x62f   :  { %v5035_v17 = vpack.c.bf16 %v5009_v54, %v5007_v14  ;;  %6454 = vmatpush3.bf16.msra.mxu1 %v7557_v26  ;;  %v7566_v14 = vld [vmem:[%s9690_s5 + $0xa8] sm:$0xff]   ;;  %v7567_v54 = vld [vmem:[%s9690_s5 + $0xb0] sm:$0xff]  }
 0x630   :  { %v5036_v30 = vpack.c.bf16 %v5010_v4, %v5008_v42  ;;  %v4862_v37 = vpop.f32.mrb[140].mxu1  ;;  %6455 = vmatprep.subr.bf16.mxu1 %v7620_v32  ;;  %v7568_v42 = vld [vmem:[%s9690_s5 + $0xb8] sm:$0xff]   ;;  %v7569_v4 = vld [vmem:[%s9690_s5 + $0xc0] sm:$0xff]  }
 0x631   :  { %v4971_v11 = vadd.f32 %v9410_v39, %v4862_v37  ;;  %v4864_v46 = vpop.f32.mrb[141].mxu1  ;;  %v7574_v37 = vld [vmem:[%s9690_s5 + $0xe8] sm:$0xff]  }
 0x632   :  { %v5049_v19 = vmax.bf16 %v5036_v30, %v5035_v17  ;;  %v4972_v6 = vadd.f32 %v9414_v31, %v4864_v46  ;;  %v4866_v44 = vpop.f32.mrb[142].mxu1  ;;  %v7570_v17 = vld [vmem:[%s9690_s5 + $0xc8] sm:$0xff]   ;;  %v7573_v30 = vld [vmem:[%s9690_s5 + $0xe0] sm:$0xff]   ;;  %v7576_v46 = vld [vmem:[%s9690_s5 + $0xf8] sm:$0xff]  }
 0x633   :  { %v4973_v50 = vadd.f32 %v9410_v39, %v4866_v44  ;;  %6456 = vmatpush3.bf16.msra.mxu1 %v7558_v15  ;;  %v4868_v47 = vpop.f32.mrb[143].mxu1  ;;  %v5011_v23 = vmax.f32 %v4971_v11, 0.0  ;;  %v7571_v15 = vld [vmem:[%s9690_s5 + $0xd0] sm:$0xff]  }
 0x634   :  { %v4974_v5 = vadd.f32 %v9414_v31, %v4868_v47  ;;  %6457 = vmatprep.subr.bf16.mxu1 %v7620_v32  ;;  %v5012_v10 = vmax.f32 %v4972_v6, 0.0  ;;  %v7575_v11 = vld [vmem:[%s9690_s5 + $0xf0] sm:$0xff]   ;;  %v7578_v6 = vld [vmem:[%s9690_s5 + $0x108] sm:$0xff]   ;;  %v7581_v47 = vld [vmem:[%s9690_s5 + $0x120] sm:$0xff]  }
 0x635   :  { %v5013_v62 = vmax.f32 %v4973_v50, 0.0  ;;  %v7579_v44 = vld [vmem:[%s9690_s5 + $0x110] sm:$0xff]   ;;  %v7580_v50 = vld [vmem:[%s9690_s5 + $0x118] sm:$0xff]  }
 0x636   :  { %v5014_v3 = vmax.f32 %v4974_v5, 0.0  ;;  %v7583_v5 = vld [vmem:[%s9690_s5 + $0x130] sm:$0xff]  }
 0x637   :  { %v5037_v1 = vpack.c.bf16 %v5013_v62, %v5011_v23  ;;  %6458 = vmatpush3.bf16.msra.mxu1 %v7559_v16  ;;  %v7582_v16 = vld [vmem:[%s9690_s5 + $0x128] sm:$0xff]   ;;  %v7584_v23 = vld [vmem:[%s9690_s5 + $0x138] sm:$0xff]   ;;  %v7585_v62 = vld [vmem:[%s9692_s7] sm:$0xff]  }
 0x638   :  { %v5038_v48 = vpack.c.bf16 %v5014_v3, %v5012_v10  ;;  %v4872_v61 = vpop.f32.mrb[144].mxu1  ;;  %6459 = vmatprep.subr.bf16.mxu1 %v7620_v32  ;;  %v7586_v10 = vld [vmem:[%s9692_s7 + $0x8] sm:$0xff]   ;;  %v7587_v3 = vld [vmem:[%s9692_s7 + $0x10] sm:$0xff]  }
 0x639   :  { %v4975_v20 = vadd.f32 %v9410_v39, %v4872_v61  ;;  %v4874_v58 = vpop.f32.mrb[145].mxu1 }
 0x63a   :  { %v5050_v7 = vmax.bf16 %v5038_v48, %v5037_v1  ;;  %v4976_v0 = vadd.f32 %v9414_v31, %v4874_v58  ;;  %v4876_v8 = vpop.f32.mrb[146].mxu1  ;;  %v7588_v1 = vld [vmem:[%s9692_s7 + $0x18] sm:$0xff]   ;;  %v7590_v48 = vld [vmem:[%s9692_s7 + $0x28] sm:$0xff]  }
 0x63b   :  { %v4977_v33 = vadd.f32 %v9410_v39, %v4876_v8  ;;  %6460 = vmatpush3.bf16.msra.mxu1 %v7560_v34  ;;  %v4878_v57 = vpop.f32.mrb[147].mxu1  ;;  %v5015_v9 = vmax.f32 %v4975_v20, 0.0  ;;  %v7589_v34 = vld [vmem:[%s9692_s7 + $0x20] sm:$0xff]   ;;  %v7592_v8 = vld [vmem:[%s9692_s7 + $0x38] sm:$0xff]  }
 0x63c   :  { %v9491_v41 = vmax.bf16 %v5050_v7, %v5049_v19  ;;  %v4978_v56 = vadd.f32 %v9414_v31, %v4878_v57  ;;  %6465 = vmatprep.subr.bf16.mxu1 %v7620_v32  ;;  %v5016_v22 = vmax.f32 %v4976_v0, 0.0  ;;  %v7577_v19 = vld [vmem:[%s9690_s5 + $0x100] sm:$0xff]   ;;  %v7591_v7 = vld [vmem:[%s9692_s7 + $0x30] sm:$0xff]  }
 0x63d   :  { %v5017_v63 = vmax.f32 %v4977_v33, 0.0 }
 0x63e   :  { %v5018_v45 = vmax.f32 %v4978_v56, 0.0  ;;  %6462 = vmatmul.mubr.bf16.vlgmr.msra.gmra.mrb[156].mxu1 %v9427_v24 }
 0x63f   :  { %v5039_v51 = vpack.c.bf16 %v5017_v63, %v5015_v9  ;;  %6466 = vmatpush3.bf16.msra.mxu1 %v7561_v2  ;;  %6481 = vmatprep.mubr.msk.bf16.mxu1 %vm7621_vm0, %v7620_v32 }
 0x640   :  { %v5040_v21 = vpack.c.bf16 %v5018_v45, %v5016_v22  ;;  %v4882_v59 = vpop.f32.mrb[148].mxu1  ;;  %6467 = vmatprep.subr.bf16.mxu1 %v7620_v32 }
 0x641   :  { %v4979_v43 = vadd.f32 %v9410_v39, %v4882_v59  ;;  %v4884_v27 = vpop.f32.mrb[149].mxu1 }
 0x642   :  { %v5051_v28 = vmax.bf16 %v5040_v21, %v5039_v51  ;;  %v4980_v25 = vadd.f32 %v9414_v31, %v4884_v27  ;;  %v4886_v24 = vpop.f32.mrb[150].mxu1 }
 0x643   :  { %v4981_v38 = vadd.f32 %v9410_v39, %v4886_v24  ;;  %6468 = vmatpush3.bf16.msra.mxu1 %v7562_v13  ;;  %v4888_v60 = vpop.f32.mrb[151].mxu1  ;;  %v5019_v18 = vmax.f32 %v4979_v43, 0.0  ;;  %v7564_v39 = vld [vmem:[%s9690_s5 + $0x98] sm:$0xff]  }
 0x644   :  { %v4982_v52 = vadd.f32 %v9414_v31, %v4888_v60  ;;  %6469 = vmatprep.subr.bf16.mxu1 %v7620_v32  ;;  %v5020_v53 = vmax.f32 %v4980_v25, 0.0  ;;  %v7565_v31 = vld [vmem:[%s9690_s5 + $0xa0] sm:$0xff]  }
 0x645   :  { %v5021_v36 = vmax.f32 %v4981_v38, 0.0  ;;  %v6343_v60 = vld [vmem:[%s9694_s6] ss:$0 sm:$0xff] }
 0x646   :  { %v5022_v35 = vmax.f32 %v4982_v52, 0.0 }
 0x647   :  { %v5041_v29 = vpack.c.bf16 %v5021_v36, %v5019_v18  ;;  %6470 = vmatpush3.bf16.msra.mxu1 %v7563_v12 }
 0x648   :  { %v5042_v40 = vpack.c.bf16 %v5022_v35, %v5020_v53  ;;  %6471 = vmatprep.subr.bf16.mxu1 %v7620_v32 }
 0x64a   :  { %v5052_v26 = vmax.bf16 %v5042_v40, %v5041_v29 }
 0x64b   :  { %6472 = vmatpush3.bf16.msra.mxu1 %v7564_v39 }
 0x64c   :  { %v9517_v55 = vmax.bf16 %v5052_v26, %v5051_v28  ;;  %6473 = vmatprep.subr.bf16.mxu1 %v7620_v32  ;;  %v7593_v26 = vld [vmem:[%s9693_s9] sm:$0xff]  }
 0x64f   :  { %6474 = vmatpush3.bf16.msra.mxu1 %v7565_v31 }
 0x650   :  { %6475 = vmatprep.subr.bf16.mxu1 %v7620_v32 }
 0x653   :  { %6476 = vmatpush3.bf16.msra.mxu1 %v7566_v14  ;;  %v7595_v14 = vld [vmem:[%s9693_s9 + $0x10] sm:$0xff]  }
 0x654   :  { %6477 = vmatprep.subr.bf16.mxu1 %v7620_v32 }
 0x657   :  { %6478 = vmatpush3.bf16.msra.mxu1 %v7567_v54  ;;  %v7596_v54 = vld [vmem:[%s9693_s9 + $0x18] sm:$0xff]  }
 0x658   :  { %6479 = vmatprep.subr.bf16.mxu1 %v7620_v32 }
 0x65b   :  { %6480 = vmatpush3.bf16.msra.mxu1 %v7568_v42  ;;  %v7597_v42 = vld [vmem:[%s9693_s9 + $0x20] sm:$0xff]  }
 0x65c   :  { %6485 = vmatprep.subr.bf16.mxu1 %v7620_v32 }
 0x65e   :  { %6482 = vmatmul.mubr.bf16.vlgmr.msra.gmra.mrb[160].mxu1 %v9465_v49  ;;  %v7572_v49 = vld [vmem:[%s9690_s5 + $0xd8] sm:$0xff]  }
 0x65f   :  { %6486 = vmatpush3.bf16.msra.mxu1 %v7569_v4  ;;  %6501 = vmatprep.mubr.msk.bf16.mxu1 %vm7621_vm0, %v7620_v32  ;;  %v7598_v4 = vld [vmem:[%s9693_s9 + $0x28] sm:$0xff]  }
 0x660   :  { %6487 = vmatprep.subr.bf16.mxu1 %v7620_v32 }
 0x663   :  { %6488 = vmatpush3.bf16.msra.mxu1 %v7570_v17  ;;  %v7599_v17 = vld [vmem:[%s9693_s9 + $0x30] sm:$0xff]  }
 0x664   :  { %6489 = vmatprep.subr.bf16.mxu1 %v7620_v32 }
 0x667   :  { %6490 = vmatpush3.bf16.msra.mxu1 %v7571_v15  ;;  %v7600_v15 = vld [vmem:[%s9693_s9 + $0x38] sm:$0xff]  }
 0x668   :  { %6491 = vmatprep.subr.bf16.mxu1 %v7620_v32 }
 0x66b   :  { %6492 = vmatpush3.bf16.msra.mxu1 %v7572_v49  ;;  %v6344_v49 = vld [vmem:[%s9695_s8] ss:$0 sm:$0xff] }
 0x66c   :  { %6493 = vmatprep.subr.bf16.mxu1 %v7620_v32 }
 0x66f   :  { %6494 = vmatpush3.bf16.msra.mxu1 %v7573_v30 }
 0x670   :  { %6495 = vmatprep.subr.bf16.mxu1 %v7620_v32 }
 0x673   :  { %6496 = vmatpush3.bf16.msra.mxu1 %v7574_v37 }
 0x674   :  { %6497 = vmatprep.subr.bf16.mxu1 %v7620_v32 }
 0x677   :  { %6498 = vmatpush3.bf16.msra.mxu1 %v7575_v11 }
 0x678   :  { %6499 = vmatprep.subr.bf16.mxu1 %v7620_v32 }
 0x67b   :  { %6500 = vmatpush3.bf16.msra.mxu1 %v7576_v46 }
 0x67c   :  { %6505 = vmatprep.subr.bf16.mxu1 %v7620_v32 }
 0x67e   :  { %6502 = vmatmul.mubr.bf16.vlgmr.msra.gmra.mrb[164].mxu1 %v9491_v41 }
 0x67f   :  { %6506 = vmatpush3.bf16.msra.mxu1 %v7577_v19  ;;  %6521 = vmatprep.mubr.msk.bf16.mxu1 %vm7621_vm0, %v7620_v32 }
 0x680   :  { %6507 = vmatprep.subr.bf16.mxu1 %v7620_v32 }
 0x683   :  { %6508 = vmatpush3.bf16.msra.mxu1 %v7578_v6 }
 0x684   :  { %6509 = vmatprep.subr.bf16.mxu1 %v7620_v32 }
 0x687   :  { %6510 = vmatpush3.bf16.msra.mxu1 %v7579_v44 }
 0x688   :  { %6511 = vmatprep.subr.bf16.mxu1 %v7620_v32 }
 0x68b   :  { %6512 = vmatpush3.bf16.msra.mxu1 %v7580_v50 }
 0x68c   :  { %6513 = vmatprep.subr.bf16.mxu1 %v7620_v32 }
 0x68f   :  { %6514 = vmatpush3.bf16.msra.mxu1 %v7581_v47 }
 0x690   :  { %6515 = vmatprep.subr.bf16.mxu1 %v7620_v32 }
 0x693   :  { %6516 = vmatpush3.bf16.msra.mxu1 %v7582_v16 }
 0x694   :  { %6517 = vmatprep.subr.bf16.mxu1 %v7620_v32 }
 0x697   :  { %6518 = vmatpush3.bf16.msra.mxu1 %v7583_v5 }
 0x698   :  { %6519 = vmatprep.subr.bf16.mxu1 %v7620_v32 }
 0x69b   :  { %6520 = vmatpush3.bf16.msra.mxu1 %v7584_v23 }
 0x69c   :  { %6525 = vmatprep.subr.bf16.mxu1 %v7620_v32 }
 0x69e   :  { %6522 = vmatmul.mubr.bf16.vlgmr.msra.gmra.mrb[168].mxu1 %v9517_v55  ;;  %v7594_v55 = vld [vmem:[%s9693_s9 + $0x8] sm:$0xff]  }
 0x69f   :  { %6541 = vmatprep.mubr.msk.bf16.mxu1 %vm7621_vm0, %v7620_v32  ;;  %6526 = vmatpush3.bf16.msra.mxu1 %v7585_v62 }
 0x6a0   :  { %6527 = vmatprep.subr.bf16.mxu1 %v7620_v32 }
 0x6a3   :  { %6528 = vmatpush3.bf16.msra.mxu1 %v7586_v10 }
 0x6a4   :  { %6529 = vmatprep.subr.bf16.mxu1 %v7620_v32 }
 0x6a7   :  { %6530 = vmatpush3.bf16.msra.mxu1 %v7587_v3 }
 0x6a8   :  { %6531 = vmatprep.subr.bf16.mxu1 %v7620_v32 }
 0x6ab   :  { %6532 = vmatpush3.bf16.msra.mxu1 %v7588_v1 }
 0x6ac   :  { %6533 = vmatprep.subr.bf16.mxu1 %v7620_v32 }
 0x6af   :  { %6534 = vmatpush3.bf16.msra.mxu1 %v7589_v34 }
 0x6b0   :  { %6535 = vmatprep.subr.bf16.mxu1 %v7620_v32 }
 0x6b3   :  { %6536 = vmatpush3.bf16.msra.mxu1 %v7590_v48 }
 0x6b4   :  { %6537 = vmatprep.subr.bf16.mxu1 %v7620_v32 }
 0x6b7   :  { %6538 = vmatpush3.bf16.msra.mxu1 %v7591_v7 }
 0x6b8   :  { %6539 = vmatprep.subr.bf16.mxu1 %v7620_v32 }
 0x6bb   :  { %6540 = vmatpush3.bf16.msra.mxu1 %v7592_v8 }
 0x6bc   :  { %6545 = vmatprep.subr.bf16.mxu1 %v7620_v32 }
 0x6f1   :  { %v5173_v61 = vpop.f32.mrb[152].mxu1 }
 0x6f2   :  { %v6443_v20 = vpop.f32.mrb[153].mxu1 }
 0x6f3   :  { %v5176_v58 = vpop.f32.mrb[154].mxu1 }
 0x6f4   :  { %v6444_v0 = vpop.f32.mrb[155].mxu1 }
 0x711   :  { %v5262_v33 = vpop.f32.mrb[156].mxu1 }
 0x712   :  { %v5263_v57 = vadd.f32 %v5262_v33, %v5173_v61  ;;  %v6463_v2 = vpop.f32.mrb[157].mxu1 }
 0x713   :  { %v5265_v41 = vpop.f32.mrb[158].mxu1 }
 0x714   :  { %v5266_v56 = vadd.f32 %v5265_v41, %v5176_v58  ;;  %v6464_v9 = vpop.f32.mrb[159].mxu1 }
 0x731   :  { %v5368_v63 = vpop.f32.mrb[160].mxu1 }
 0x732   :  { %v5375_v22 = vadd.f32 %v5368_v63, %v5263_v57  ;;  %v6483_v45 = vpop.f32.mrb[161].mxu1 }
 0x733   :  { %v5371_v51 = vpop.f32.mrb[162].mxu1 }
 0x734   :  { %v5376_v13 = vadd.f32 %v5371_v51, %v5266_v56  ;;  %v6484_v21 = vpop.f32.mrb[163].mxu1 }
 0x751   :  { %v5476_v59 = vpop.f32.mrb[164].mxu1 }
 0x752   :  { %v5483_v43 = vadd.f32 %v5476_v59, %v5375_v22  ;;  %v6503_v27 = vpop.f32.mrb[165].mxu1 }
 0x753   :  { %v5479_v28 = vpop.f32.mrb[166].mxu1 }
 0x754   :  { %v5484_v25 = vadd.f32 %v5479_v28, %v5376_v13  ;;  %v6504_v24 = vpop.f32.mrb[167].mxu1 }
 0x771   :  { %v5584_v38 = vpop.f32.mrb[168].mxu1 }
 0x772   :  { %v5591_v12 = vadd.f32 %v5584_v38, %v5483_v43  ;;  %v6523_v52 = vpop.f32.mrb[169].mxu1 }
 0x773   :  { %v5587_v18 = vpop.f32.mrb[170].mxu1 }
 0x774   :  { %v5600_v36 = vadd.f32 %v6343_v60, %v5591_v12  ;;  %v5592_v53 = vadd.f32 %v5587_v18, %v5484_v25  ;;  %v6524_v35 = vpop.f32.mrb[171].mxu1 }
 0x776   :  { %v5601_v29 = vadd.f32 %v6343_v60, %v5592_v53  ;;  %v5602_v39 = vmax.f32 %v5600_v36, 0.0 }
 0x778   :  { %v5603_v40 = vmax.f32 %v5601_v29, 0.0 }
 0x77a   :  { %v5604_v31 = vpack.c.bf16 %v5603_v40, %v5602_v39 }
 0x77c   :  { %6542 = vmatmul.mubr.bf16.vlgmr.msra.gmra.mrb[172].mxu1 %v5604_v31 }
 0x77d   :  { %6546 = vmatpush3.bf16.msra.mxu1 %v7593_v26  ;;  %6561 = vmatprep.mubr.msk.bf16.mxu1 %vm7621_vm0, %v7620_v32 }
 0x77e   :  { %6547 = vmatprep.subr.bf16.mxu1 %v7620_v32 }
 0x781   :  { %6548 = vmatpush3.bf16.msra.mxu1 %v7594_v55 }
 0x782   :  { %6549 = vmatprep.subr.bf16.mxu1 %v7620_v32 }
 0x785   :  { %6550 = vmatpush3.bf16.msra.mxu1 %v7595_v14 }
 0x786   :  { %6551 = vmatprep.subr.bf16.mxu1 %v7620_v32 }
 0x789   :  { %6552 = vmatpush3.bf16.msra.mxu1 %v7596_v54 }
 0x78a   :  { %6553 = vmatprep.subr.bf16.mxu1 %v7620_v32 }
 0x78d   :  { %6554 = vmatpush3.bf16.msra.mxu1 %v7597_v42 }
 0x78e   :  { %6555 = vmatprep.subr.bf16.mxu1 %v7620_v32 }
 0x791   :  { %6556 = vmatpush3.bf16.msra.mxu1 %v7598_v4 }
 0x792   :  { %6557 = vmatprep.subr.bf16.mxu1 %v7620_v32 }
 0x795   :  { %6558 = vmatpush3.bf16.msra.mxu1 %v7599_v17 }
 0x796   :  { %6559 = vmatprep.subr.bf16.mxu1 %v7620_v32  ;;  %v6353_v32 = vld [vmem:[%s9696_s10] ss:$0 sm:$0xff] }
 0x799   :  { %6560 = vmatpush3.bf16.msra.mxu1 %v7600_v15 }
 0x84f   :  { %v5710_v30 = vpop.f32.mrb[172].mxu1 }
 0x850   :  { %v5711_v37 = vadd.f32 %v6344_v49, %v5710_v30  ;;  %v6543_v11 = vpop.f32.mrb[173].mxu1 }
 0x851   :  { %v5713_v46 = vpop.f32.mrb[174].mxu1 }
 0x852   :  { %v5714_v19 = vadd.f32 %v6344_v49, %v5713_v46  ;;  %v6544_v6 = vpop.f32.mrb[175].mxu1  ;;  %v5717_v44 = vmax.f32 %v5711_v37, 0.0 }
 0x854   :  { %v5718_v50 = vmax.f32 %v5714_v19, 0.0 }
 0x856   :  { %v5719_v47 = vpack.c.bf16 %v5718_v50, %v5717_v44 }
 0x858   :  { %6562 = vmatmul.mubr.bf16.vlgmr.msra.gmra.mrb[176].mxu1 %v5719_v47 }
 0x92b   :  { %v5825_v16 = vpop.f32.mrb[176].mxu1 }
 0x92c   :  { %v5826_v5 = vadd.f32 %v6353_v32, %v5825_v16  ;;  %v6563_v23 = vpop.f32.mrb[177].mxu1 }
 0x92d   :  { %v5828_v62 = vpop.f32.mrb[178].mxu1 }
 0x92e   :  { %5832 = vst [vmem:[%s9697_s11] sm:$0xff] %v5826_v5  ;;  %v5829_v10 = vadd.f32 %v6353_v32, %v5828_v62  ;;  %v6564_v3 = vpop.f32.mrb[179].mxu1 }
 0x930   :  { %5833 = vst [vmem:[%s9697_s11 + $0x8] sm:$0xff] %v5829_v10 }

</bundles_post_ra>
